<compile_context>
chip_gen: v6e
topology: v6e:2x2x1
jax: 0.10.0
libtpu: 0.0.40
codegen_flags: <defaults>
</compile_context>

<pallas_src>
import numpy as np
import jax
import jax.numpy as jnp
from jax.experimental import pallas as pl
from jax.experimental.pallas import tpu as pltpu

IN_CHANNELS = 3
BOARD_SHAPE = (8, 8)          # required so that 2x down-sample twice -> 2x2 -> 4*128
FC_UNITS = 256
C1, C2 = 64, 128


# ------------------------- host-side constant helpers ------------------------

def _conv2_masks(bt):
    """Boundary masks for the 9 conv2 taps on the 4x4 pooled map.

    Row ordering inside a batch tile is p*bt + b with p = i*4 + j, so the mask for
    tap (kh, kw) only depends on p and is replicated bt times along rows.
    Shape: (9, 16*bt, 1) float32, values in {0, 1}.
    """
    m = np.zeros((9, 16), np.float32)
    for kh in range(3):
        for kw in range(3):
            k = kh * 3 + kw
            di, dj = kh - 1, kw - 1
            for i in range(4):
                for j in range(4):
                    if 0 <= i + di < 4 and 0 <= j + dj < 4:
                        m[k, i * 4 + j] = 1.0
    m = np.repeat(m[:, :, None], bt, axis=2).reshape(9, 16 * bt, 1)
    return m


def _im2col_conv1(x_nchw):
    """(B, 3, 8, 8) -> (64, B, 27) patches.

    Row ordering: q = (dh*2 + dw)*16 + (i*4 + j) for output pixel (h, w) = (2i+dh,
    2j+dw)  -> the 2x2 pool-window position is the major factor.
    Column ordering: k*3 + c with k = kh*3 + kw (tap-major, channel-minor).
    """
    B = x_nchw.shape[0]
    xp = jnp.pad(x_nchw, ((0, 0), (0, 0), (1, 1), (1, 1)))        # (B,3,10,10)
    taps = [xp[:, :, kh:kh + 8, kw:kw + 8]
            for kh in range(3) for kw in range(3)]                 # 9 x (B,3,8,8)
    pat = jnp.stack(taps, axis=0)                                  # (9,B,3,8,8)
    pat = jnp.transpose(pat, (3, 4, 1, 0, 2))                      # (h,w,B,k,c)
    pat = pat.reshape(4, 2, 4, 2, B, 9 * IN_CHANNELS)              # (i,dh,j,dw,B,27)
    pat = jnp.transpose(pat, (1, 3, 0, 2, 4, 5))                   # (dh,dw,i,j,B,27)
    return pat.reshape(64, B, 9 * IN_CHANNELS)


# --------------------------------- kernel -----------------------------------

def cnn_kernel(x_ref, w1_ref, b1_ref, w2_ref, b2_ref, mask_ref, wfc_ref, bfc_ref,
               out_ref):
    bt = out_ref.shape[0]                 # batch tile
    sp = 16 * bt                          # rows of the pooled 4x4 map (p-major, b-minor)
    c1 = w1_ref.shape[1]                  # 64
    # ---- conv1: (64*bt, 27) @ (27, 64), bf16 operands, f32 accumulate ----
    h1 = jnp.dot(x_ref[0], w1_ref[...], preferred_element_type=jnp.float32)
    h1 = jnp.tanh(h1 + b1_ref[...])                                   # (64*bt, 64) f32

    # ---- avgpool1 (2x2): window position is the leading row factor -> 4 slab adds ----
    h1p = 0.25 * (h1[0:sp] + h1[sp:2 * sp] + h1[2 * sp:3 * sp] + h1[3 * sp:4 * sp])

    # ---- conv2 im2col: 9 tile-aligned row shifts + boundary mask, lane-concat ----
    zpad = jnp.zeros((5 * bt, c1), jnp.float32)
    padded = jnp.concatenate([zpad, h1p, zpad], axis=0)               # (26*bt, 64)
    cols = []
    for kh in range(3):
        for kw in range(3):
            k = kh * 3 + kw
            start = 5 * bt + ((kh - 1) * 4 + (kw - 1)) * bt
            cols.append(padded[start:start + sp, :] * mask_ref[k])    # (16*bt, 64)
    x2 = jnp.concatenate(cols, axis=1).astype(jnp.bfloat16)           # (16*bt, 576)

    # ---- conv2: (16*bt, 576) @ (576, 128) ----
    h2 = jnp.dot(x2, w2_ref[...], preferred_element_type=jnp.float32)
    h2 = jnp.tanh(h2 + b2_ref[...])                                   # (16*bt, 128) f32

    # ---- avgpool2 (2x2) + flatten (torch order n = c*4 + s) folded into FC input ----
    pools = []
    for ip in range(2):
        for jp in range(2):
            p0 = (2 * ip) * 4 + 2 * jp
            blk = (h2[p0 * bt:(p0 + 1) * bt]
                   + h2[(p0 + 1) * bt:(p0 + 2) * bt]
                   + h2[(p0 + 4) * bt:(p0 + 5) * bt]
                   + h2[(p0 + 5) * bt:(p0 + 6) * bt])
            pools.append(0.25 * blk)                                  # (bt, 128)
    z = jnp.concatenate(pools, axis=1).astype(jnp.bfloat16)           # (bt, 512)

    # ---- fc (bt, 512) @ (512, 256) + ReLU ----
    fc = jnp.dot(z, wfc_ref[...], preferred_element_type=jnp.float32)
    out_ref[...] = jnp.maximum(fc + bfc_ref[...], 0.0)


# -------------------------------- wrapper ------------------------------------

def cnn_forward(x_nchw, params):
    w1, b1, w2, b2, wfc, bfc = params
    B, Cin, H, W = x_nchw.shape
    assert (H, W) == BOARD_SHAPE and Cin == IN_CHANNELS

    # batch tile: keep >=2 grid steps for larger batches (v7x), fill MXU M rows.
    if B >= 128:
        bt = 32
    elif B >= 32:
        bt = 16
    else:
        bt = 8
    b_pad = ((B + bt - 1) // bt) * bt
    n_tiles = b_pad // bt

    # --- layout prep (plain XLA; constants + cheap gathers) ---
    x_col = _im2col_conv1(x_nchw)                                    # (64, B, 27)
    if b_pad != B:
        x_col = jnp.pad(x_col, ((0, 0), (0, b_pad - B), (0, 0)))
    # pre-tile the batch: (n_tiles, 64*bt, 27) with in-tile rows ordered q*bt + b
    x_col = (x_col.reshape(64, n_tiles, bt, 9 * IN_CHANNELS)
             .transpose(1, 0, 2, 3)
             .reshape(n_tiles, 64 * bt, 9 * IN_CHANNELS)
             .astype(jnp.bfloat16))

    w1c = jnp.transpose(w1, (2, 3, 1, 0)).reshape(9 * IN_CHANNELS, C1).astype(jnp.bfloat16)
    w2c = jnp.transpose(w2, (2, 3, 1, 0)).reshape(9 * C1, C2).astype(jnp.bfloat16)
    wfc_c = (jnp.transpose(wfc.reshape(FC_UNITS, C2, 4), (2, 1, 0))
             .reshape(4 * C2, FC_UNITS).astype(jnp.bfloat16))
    b1_ = b1.reshape(1, C1).astype(jnp.float32)
    b2_ = b2.reshape(1, C2).astype(jnp.float32)
    bfc_ = bfc.reshape(1, FC_UNITS).astype(jnp.float32)
    masks = jnp.asarray(_conv2_masks(bt))                            # (9, 16*bt, 1)

    in_specs = [
        pl.BlockSpec((1, 64 * bt, 9 * IN_CHANNELS), lambda t: (t, 0, 0)),  # x patches
        pl.BlockSpec(w1c.shape, lambda t: (0, 0)),
        pl.BlockSpec(b1_.shape, lambda t: (0, 0)),
        pl.BlockSpec(w2c.shape, lambda t: (0, 0)),
        pl.BlockSpec(b2_.shape, lambda t: (0, 0)),
        pl.BlockSpec(masks.shape, lambda t: (0, 0, 0)),
        pl.BlockSpec(wfc_c.shape, lambda t: (0, 0)),
        pl.BlockSpec(bfc_.shape, lambda t: (0, 0)),
    ]
    out_specs = pl.BlockSpec((bt, FC_UNITS), lambda t: (t, 0))

    out = pl.pallas_call(
        cnn_kernel,
        out_shape=jax.ShapeDtypeStruct((b_pad, FC_UNITS), jnp.float32),
        grid=(n_tiles,),
        in_specs=in_specs,
        out_specs=out_specs,
        compiler_params=pltpu.CompilerParams(dimension_semantics=("parallel",)),
    )(x_col, w1c, b1_, w2c, b2_, masks, wfc_c, bfc_)
    return out[:B]


# ---------------------------- pure-JAX reference -----------------------------

def reference_forward(x, params):
    w1, b1, w2, b2, wfc, bfc = params
    dn = ('NCHW', 'OIHW', 'NCHW')
    hi = jax.lax.Precision.HIGHEST

    y = jax.lax.conv_general_dilated(x, w1, (1, 1), 'SAME',
                                     dimension_numbers=dn, precision=hi)
    y = jnp.tanh(y + b1[None, :, None, None])
    B, C, H, W = y.shape
    y = y.reshape(B, C, H // 2, 2, W // 2, 2).mean(axis=(3, 5))

    y = jax.lax.conv_general_dilated(y, w2, (1, 1), 'SAME',
                                     dimension_numbers=dn, precision=hi)
    y = jnp.tanh(y + b2[None, :, None, None])
    B, C, H, W = y.shape
    y = y.reshape(B, C, H // 2, 2, W // 2, 2).mean(axis=(3, 5))

    y = y.reshape(B, -1)                                  # torch.flatten(x, 1)
    y = jnp.maximum(jnp.dot(y, wfc.T, precision=hi) + bfc, 0.0)
    return y


# ----------------------------------- main ------------------------------------

if __name__ == "__main__":
    key = jax.random.PRNGKey(0)
    kx, k1, k2, k3, k4, k5, k6 = jax.random.split(key, 7)

    B = 2
    H, W = BOARD_SHAPE
    x = jax.random.normal(kx, (B, IN_CHANNELS, H, W), jnp.float32)

    # Deterministic synthetic parameters (layer_init uses orthogonal(sqrt(2)) /
    # zero bias; here scaled Gaussians + small random biases to exercise all paths).
    w1 = jax.random.normal(k1, (C1, IN_CHANNELS, 3, 3), jnp.float32) * np.sqrt(2.0 / (IN_CHANNELS * 9))
    b1 = jax.random.normal(k4, (C1,), jnp.float32) * 0.1
    w2 = jax.random.normal(k2, (C2, C1, 3, 3), jnp.float32) * np.sqrt(2.0 / (C1 * 9))
    b2 = jax.random.normal(k5, (C2,), jnp.float32) * 0.1
    wfc = jax.random.normal(k3, (FC_UNITS, 4 * C2), jnp.float32) * np.sqrt(2.0 / (4 * C2))
    bfc = jax.random.normal(k6, (FC_UNITS,), jnp.float32) * 0.1
    params = (w1, b1, w2, b2, wfc, bfc)

    fwd = jax.jit(cnn_forward)
    out = jax.block_until_ready(fwd(x, params))
    ref = reference_forward(x, params)

    assert out.shape == (B, FC_UNITS)
    # bf16 MXU operands (f32 accumulation) vs f32 HIGHEST reference -> 2e-2 tolerance.
    np.testing.assert_allclose(np.asarray(out), np.asarray(ref), rtol=2e-2, atol=2e-2)
    print("KERNEL_OK")
</pallas_src>

<mosaic_0001>
module attributes {stable_mosaic.version = 11 : i64} {
  func.func @cnn_kernel(%arg0: i32, %arg1: memref<1x512x27xbf16, #tpu.memory_space<vmem>>, %arg2: memref<27x64xbf16, #tpu.memory_space<vmem>>, %arg3: memref<1x64xf32, #tpu.memory_space<vmem>>, %arg4: memref<576x128xbf16, #tpu.memory_space<vmem>>, %arg5: memref<1x128xf32, #tpu.memory_space<vmem>>, %arg6: memref<9x128x1xf32, #tpu.memory_space<vmem>>, %arg7: memref<512x256xbf16, #tpu.memory_space<vmem>>, %arg8: memref<1x256xf32, #tpu.memory_space<vmem>>, %arg9: memref<8x256xf32, #tpu.memory_space<vmem>>) attributes {dimension_semantics = [#tpu.dimension_semantics<parallel>], iteration_bounds = array<i64: 1>, scalar_prefetch = 0 : i64, scratch_operands = 0 : i64, tpu.core_type = #tpu.core_type<tc>, window_params = [{transform_indices = @transform_0, window_bounds = array<i64: 1, 512, 27>}, {pipeline_mode = #tpu.pipeline_mode<synchronous>, transform_indices = @transform_1, window_bounds = array<i64: 27, 64>}, {pipeline_mode = #tpu.pipeline_mode<synchronous>, transform_indices = @transform_2, window_bounds = array<i64: 1, 64>}, {pipeline_mode = #tpu.pipeline_mode<synchronous>, transform_indices = @transform_3, window_bounds = array<i64: 576, 128>}, {pipeline_mode = #tpu.pipeline_mode<synchronous>, transform_indices = @transform_4, window_bounds = array<i64: 1, 128>}, {pipeline_mode = #tpu.pipeline_mode<synchronous>, transform_indices = @transform_5, window_bounds = array<i64: 9, 128, 1>}, {pipeline_mode = #tpu.pipeline_mode<synchronous>, transform_indices = @transform_6, window_bounds = array<i64: 512, 256>}, {pipeline_mode = #tpu.pipeline_mode<synchronous>, transform_indices = @transform_7, window_bounds = array<i64: 1, 256>}, {transform_indices = @transform_8, window_bounds = array<i64: 8, 256>}]} {
    %c0 = arith.constant 0 : index
    %c0_0 = arith.constant 0 : index
    %c0_1 = arith.constant 0 : index
    %0 = vector.load %arg1[%c0, %c0_0, %c0_1] : memref<1x512x27xbf16, #tpu.memory_space<vmem>>, vector<1x512x27xbf16>
    %1 = vector.shape_cast %0 : vector<1x512x27xbf16> to vector<512x27xbf16>
    %c0_2 = arith.constant 0 : index
    %c0_3 = arith.constant 0 : index
    %2 = vector.load %arg2[%c0_2, %c0_3] : memref<27x64xbf16, #tpu.memory_space<vmem>>, vector<27x64xbf16>
    %cst = arith.constant dense<0.000000e+00> : vector<512x64xf32>
    %3 = tpu.matmul %1, %2, %cst {dimension_numbers = #tpu.dot_dimension_numbers<[1], [0], [0], [1], [0, 0, 1, 1], [], []>} : vector<512x27xbf16>, vector<27x64xbf16>, vector<512x64xf32> -> vector<512x64xf32>
    %c0_4 = arith.constant 0 : index
    %c0_5 = arith.constant 0 : index
    %4 = vector.load %arg3[%c0_4, %c0_5] : memref<1x64xf32, #tpu.memory_space<vmem>>, vector<1x64xf32>
    %5 = vector.broadcast %4 : vector<1x64xf32> to vector<512x64xf32>
    %6 = arith.addf %3, %5 : vector<512x64xf32>
    %7 = math.tanh %6 : vector<512x64xf32>
    %8 = vector.extract_strided_slice %7 {offsets = [0, 0], sizes = [128, 64], strides = [1, 1]} : vector<512x64xf32> to vector<128x64xf32>
    %9 = vector.extract_strided_slice %7 {offsets = [128, 0], sizes = [128, 64], strides = [1, 1]} : vector<512x64xf32> to vector<128x64xf32>
    %10 = arith.addf %8, %9 : vector<128x64xf32>
    %11 = vector.extract_strided_slice %7 {offsets = [256, 0], sizes = [128, 64], strides = [1, 1]} : vector<512x64xf32> to vector<128x64xf32>
    %12 = arith.addf %10, %11 : vector<128x64xf32>
    %13 = vector.extract_strided_slice %7 {offsets = [384, 0], sizes = [128, 64], strides = [1, 1]} : vector<512x64xf32> to vector<128x64xf32>
    %14 = arith.addf %12, %13 : vector<128x64xf32>
    %cst_6 = arith.constant 2.500000e-01 : f32
    %15 = vector.broadcast %cst_6 : f32 to vector<128x64xf32>
    %16 = arith.mulf %15, %14 : vector<128x64xf32>
    %cst_7 = arith.constant 0.000000e+00 : f32
    %17 = vector.broadcast %cst_7 : f32 to vector<40x64xf32>
    %18 = tpu.concatenate %17, %16, %17 in 0 : vector<40x64xf32>, vector<128x64xf32>, vector<40x64xf32> -> vector<208x64xf32>
    %19 = vector.extract_strided_slice %18 {offsets = [0, 0], sizes = [128, 64], strides = [1, 1]} : vector<208x64xf32> to vector<128x64xf32>
    %c0_8 = arith.constant 0 : index
    %c0_9 = arith.constant 0 : index
    %c0_10 = arith.constant 0 : index
    %20 = vector.load %arg6[%c0_8, %c0_9, %c0_10] : memref<9x128x1xf32, #tpu.memory_space<vmem>>, vector<1x128x1xf32>
    %21 = vector.shape_cast %20 : vector<1x128x1xf32> to vector<128x1xf32>
    %22 = vector.broadcast %21 : vector<128x1xf32> to vector<128x64xf32>
    %23 = arith.mulf %19, %22 : vector<128x64xf32>
    %24 = vector.extract_strided_slice %18 {offsets = [8, 0], sizes = [128, 64], strides = [1, 1]} : vector<208x64xf32> to vector<128x64xf32>
    %c1 = arith.constant 1 : index
    %c0_11 = arith.constant 0 : index
    %c0_12 = arith.constant 0 : index
    %25 = vector.load %arg6[%c1, %c0_11, %c0_12] : memref<9x128x1xf32, #tpu.memory_space<vmem>>, vector<1x128x1xf32>
    %26 = vector.shape_cast %25 : vector<1x128x1xf32> to vector<128x1xf32>
    %27 = vector.broadcast %26 : vector<128x1xf32> to vector<128x64xf32>
    %28 = arith.mulf %24, %27 : vector<128x64xf32>
    %29 = vector.extract_strided_slice %18 {offsets = [16, 0], sizes = [128, 64], strides = [1, 1]} : vector<208x64xf32> to vector<128x64xf32>
    %c2 = arith.constant 2 : index
    %c0_13 = arith.constant 0 : index
    %c0_14 = arith.constant 0 : index
    %30 = vector.load %arg6[%c2, %c0_13, %c0_14] : memref<9x128x1xf32, #tpu.memory_space<vmem>>, vector<1x128x1xf32>
    %31 = vector.shape_cast %30 : vector<1x128x1xf32> to vector<128x1xf32>
    %32 = vector.broadcast %31 : vector<128x1xf32> to vector<128x64xf32>
    %33 = arith.mulf %29, %32 : vector<128x64xf32>
    %34 = vector.extract_strided_slice %18 {offsets = [32, 0], sizes = [128, 64], strides = [1, 1]} : vector<208x64xf32> to vector<128x64xf32>
    %c3 = arith.constant 3 : index
    %c0_15 = arith.constant 0 : index
    %c0_16 = arith.constant 0 : index
    %35 = vector.load %arg6[%c3, %c0_15, %c0_16] : memref<9x128x1xf32, #tpu.memory_space<vmem>>, vector<1x128x1xf32>
    %36 = vector.shape_cast %35 : vector<1x128x1xf32> to vector<128x1xf32>
    %37 = vector.broadcast %36 : vector<128x1xf32> to vector<128x64xf32>
    %38 = arith.mulf %34, %37 : vector<128x64xf32>
    %39 = vector.extract_strided_slice %18 {offsets = [40, 0], sizes = [128, 64], strides = [1, 1]} : vector<208x64xf32> to vector<128x64xf32>
    %c4 = arith.constant 4 : index
    %c0_17 = arith.constant 0 : index
    %c0_18 = arith.constant 0 : index
    %40 = vector.load %arg6[%c4, %c0_17, %c0_18] : memref<9x128x1xf32, #tpu.memory_space<vmem>>, vector<1x128x1xf32>
    %41 = vector.shape_cast %40 : vector<1x128x1xf32> to vector<128x1xf32>
    %42 = vector.broadcast %41 : vector<128x1xf32> to vector<128x64xf32>
    %43 = arith.mulf %39, %42 : vector<128x64xf32>
    %44 = vector.extract_strided_slice %18 {offsets = [48, 0], sizes = [128, 64], strides = [1, 1]} : vector<208x64xf32> to vector<128x64xf32>
    %c5 = arith.constant 5 : index
    %c0_19 = arith.constant 0 : index
    %c0_20 = arith.constant 0 : index
    %45 = vector.load %arg6[%c5, %c0_19, %c0_20] : memref<9x128x1xf32, #tpu.memory_space<vmem>>, vector<1x128x1xf32>
    %46 = vector.shape_cast %45 : vector<1x128x1xf32> to vector<128x1xf32>
    %47 = vector.broadcast %46 : vector<128x1xf32> to vector<128x64xf32>
    %48 = arith.mulf %44, %47 : vector<128x64xf32>
    %49 = vector.extract_strided_slice %18 {offsets = [64, 0], sizes = [128, 64], strides = [1, 1]} : vector<208x64xf32> to vector<128x64xf32>
    %c6 = arith.constant 6 : index
    %c0_21 = arith.constant 0 : index
    %c0_22 = arith.constant 0 : index
    %50 = vector.load %arg6[%c6, %c0_21, %c0_22] : memref<9x128x1xf32, #tpu.memory_space<vmem>>, vector<1x128x1xf32>
    %51 = vector.shape_cast %50 : vector<1x128x1xf32> to vector<128x1xf32>
    %52 = vector.broadcast %51 : vector<128x1xf32> to vector<128x64xf32>
    %53 = arith.mulf %49, %52 : vector<128x64xf32>
    %54 = vector.extract_strided_slice %18 {offsets = [72, 0], sizes = [128, 64], strides = [1, 1]} : vector<208x64xf32> to vector<128x64xf32>
    %c7 = arith.constant 7 : index
    %c0_23 = arith.constant 0 : index
    %c0_24 = arith.constant 0 : index
    %55 = vector.load %arg6[%c7, %c0_23, %c0_24] : memref<9x128x1xf32, #tpu.memory_space<vmem>>, vector<1x128x1xf32>
    %56 = vector.shape_cast %55 : vector<1x128x1xf32> to vector<128x1xf32>
    %57 = vector.broadcast %56 : vector<128x1xf32> to vector<128x64xf32>
    %58 = arith.mulf %54, %57 : vector<128x64xf32>
    %59 = vector.extract_strided_slice %18 {offsets = [80, 0], sizes = [128, 64], strides = [1, 1]} : vector<208x64xf32> to vector<128x64xf32>
    %c8 = arith.constant 8 : index
    %c0_25 = arith.constant 0 : index
    %c0_26 = arith.constant 0 : index
    %60 = vector.load %arg6[%c8, %c0_25, %c0_26] : memref<9x128x1xf32, #tpu.memory_space<vmem>>, vector<1x128x1xf32>
    %61 = vector.shape_cast %60 : vector<1x128x1xf32> to vector<128x1xf32>
    %62 = vector.broadcast %61 : vector<128x1xf32> to vector<128x64xf32>
    %63 = arith.mulf %59, %62 : vector<128x64xf32>
    %64 = tpu.concatenate %23, %28, %33, %38, %43, %48, %53, %58, %63 in 1 : vector<128x64xf32>, vector<128x64xf32>, vector<128x64xf32>, vector<128x64xf32>, vector<128x64xf32>, vector<128x64xf32>, vector<128x64xf32>, vector<128x64xf32>, vector<128x64xf32> -> vector<128x576xf32>
    %65 = arith.truncf %64 : vector<128x576xf32> to vector<128x576xbf16>
    %c0_27 = arith.constant 0 : index
    %c0_28 = arith.constant 0 : index
    %66 = vector.load %arg4[%c0_27, %c0_28] : memref<576x128xbf16, #tpu.memory_space<vmem>>, vector<576x128xbf16>
    %cst_29 = arith.constant dense<0.000000e+00> : vector<128x128xf32>
    %67 = tpu.matmul %65, %66, %cst_29 {dimension_numbers = #tpu.dot_dimension_numbers<[1], [0], [0], [1], [0, 0, 1, 1], [], []>} : vector<128x576xbf16>, vector<576x128xbf16>, vector<128x128xf32> -> vector<128x128xf32>
    %c0_30 = arith.constant 0 : index
    %c0_31 = arith.constant 0 : index
    %68 = vector.load %arg5[%c0_30, %c0_31] : memref<1x128xf32, #tpu.memory_space<vmem>>, vector<1x128xf32>
    %69 = vector.broadcast %68 : vector<1x128xf32> to vector<128x128xf32>
    %70 = arith.addf %67, %69 : vector<128x128xf32>
    %71 = math.tanh %70 : vector<128x128xf32>
    %72 = vector.extract_strided_slice %71 {offsets = [0, 0], sizes = [8, 128], strides = [1, 1]} : vector<128x128xf32> to vector<8x128xf32>
    %73 = vector.extract_strided_slice %71 {offsets = [8, 0], sizes = [8, 128], strides = [1, 1]} : vector<128x128xf32> to vector<8x128xf32>
    %74 = arith.addf %72, %73 : vector<8x128xf32>
    %75 = vector.extract_strided_slice %71 {offsets = [32, 0], sizes = [8, 128], strides = [1, 1]} : vector<128x128xf32> to vector<8x128xf32>
    %76 = arith.addf %74, %75 : vector<8x128xf32>
    %77 = vector.extract_strided_slice %71 {offsets = [40, 0], sizes = [8, 128], strides = [1, 1]} : vector<128x128xf32> to vector<8x128xf32>
    %78 = arith.addf %76, %77 : vector<8x128xf32>
    %cst_32 = arith.constant 2.500000e-01 : f32
    %79 = vector.broadcast %cst_32 : f32 to vector<8x128xf32>
    %80 = arith.mulf %79, %78 : vector<8x128xf32>
    %81 = vector.extract_strided_slice %71 {offsets = [16, 0], sizes = [8, 128], strides = [1, 1]} : vector<128x128xf32> to vector<8x128xf32>
    %82 = vector.extract_strided_slice %71 {offsets = [24, 0], sizes = [8, 128], strides = [1, 1]} : vector<128x128xf32> to vector<8x128xf32>
    %83 = arith.addf %81, %82 : vector<8x128xf32>
    %84 = vector.extract_strided_slice %71 {offsets = [48, 0], sizes = [8, 128], strides = [1, 1]} : vector<128x128xf32> to vector<8x128xf32>
    %85 = arith.addf %83, %84 : vector<8x128xf32>
    %86 = vector.extract_strided_slice %71 {offsets = [56, 0], sizes = [8, 128], strides = [1, 1]} : vector<128x128xf32> to vector<8x128xf32>
    %87 = arith.addf %85, %86 : vector<8x128xf32>
    %cst_33 = arith.constant 2.500000e-01 : f32
    %88 = vector.broadcast %cst_33 : f32 to vector<8x128xf32>
    %89 = arith.mulf %88, %87 : vector<8x128xf32>
    %90 = vector.extract_strided_slice %71 {offsets = [64, 0], sizes = [8, 128], strides = [1, 1]} : vector<128x128xf32> to vector<8x128xf32>
    %91 = vector.extract_strided_slice %71 {offsets = [72, 0], sizes = [8, 128], strides = [1, 1]} : vector<128x128xf32> to vector<8x128xf32>
    %92 = arith.addf %90, %91 : vector<8x128xf32>
    %93 = vector.extract_strided_slice %71 {offsets = [96, 0], sizes = [8, 128], strides = [1, 1]} : vector<128x128xf32> to vector<8x128xf32>
    %94 = arith.addf %92, %93 : vector<8x128xf32>
    %95 = vector.extract_strided_slice %71 {offsets = [104, 0], sizes = [8, 128], strides = [1, 1]} : vector<128x128xf32> to vector<8x128xf32>
    %96 = arith.addf %94, %95 : vector<8x128xf32>
    %cst_34 = arith.constant 2.500000e-01 : f32
    %97 = vector.broadcast %cst_34 : f32 to vector<8x128xf32>
    %98 = arith.mulf %97, %96 : vector<8x128xf32>
    %99 = vector.extract_strided_slice %71 {offsets = [80, 0], sizes = [8, 128], strides = [1, 1]} : vector<128x128xf32> to vector<8x128xf32>
    %100 = vector.extract_strided_slice %71 {offsets = [88, 0], sizes = [8, 128], strides = [1, 1]} : vector<128x128xf32> to vector<8x128xf32>
    %101 = arith.addf %99, %100 : vector<8x128xf32>
    %102 = vector.extract_strided_slice %71 {offsets = [112, 0], sizes = [8, 128], strides = [1, 1]} : vector<128x128xf32> to vector<8x128xf32>
    %103 = arith.addf %101, %102 : vector<8x128xf32>
    %104 = vector.extract_strided_slice %71 {offsets = [120, 0], sizes = [8, 128], strides = [1, 1]} : vector<128x128xf32> to vector<8x128xf32>
    %105 = arith.addf %103, %104 : vector<8x128xf32>
    %cst_35 = arith.constant 2.500000e-01 : f32
    %106 = vector.broadcast %cst_35 : f32 to vector<8x128xf32>
    %107 = arith.mulf %106, %105 : vector<8x128xf32>
    %108 = tpu.concatenate %80, %89, %98, %107 in 1 : vector<8x128xf32>, vector<8x128xf32>, vector<8x128xf32>, vector<8x128xf32> -> vector<8x512xf32>
    %109 = arith.truncf %108 : vector<8x512xf32> to vector<8x512xbf16>
    %c0_36 = arith.constant 0 : index
    %c0_37 = arith.constant 0 : index
    %110 = vector.load %arg7[%c0_36, %c0_37] : memref<512x256xbf16, #tpu.memory_space<vmem>>, vector<512x256xbf16>
    %cst_38 = arith.constant dense<0.000000e+00> : vector<8x256xf32>
    %111 = tpu.matmul %109, %110, %cst_38 {dimension_numbers = #tpu.dot_dimension_numbers<[1], [0], [0], [1], [0, 0, 1, 1], [], []>} : vector<8x512xbf16>, vector<512x256xbf16>, vector<8x256xf32> -> vector<8x256xf32>
    %c0_39 = arith.constant 0 : index
    %c0_40 = arith.constant 0 : index
    %112 = vector.load %arg8[%c0_39, %c0_40] : memref<1x256xf32, #tpu.memory_space<vmem>>, vector<1x256xf32>
    %113 = vector.broadcast %112 : vector<1x256xf32> to vector<8x256xf32>
    %114 = arith.addf %111, %113 : vector<8x256xf32>
    %cst_41 = arith.constant 0.000000e+00 : f32
    %115 = vector.broadcast %cst_41 : f32 to vector<8x256xf32>
    %116 = arith.maximumf %114, %115 : vector<8x256xf32>
    %c0_42 = arith.constant 0 : index
    %c0_43 = arith.constant 0 : index
    %117 = vector.load %arg9[%c0_42, %c0_43] : memref<8x256xf32, #tpu.memory_space<vmem>>, vector<8x256xf32>
    tpu.vector_store %arg9[%c0_42, %c0_43], %116 {strides = array<i32>} : memref<8x256xf32, #tpu.memory_space<vmem>>, vector<8x256xf32>,
    return
  }
  func.func @transform_0(%arg0: i32) -> (i32, i32, i32) {
    %c0_i32 = arith.constant 0 : i32
    %c0_i32_0 = arith.constant 0 : i32
    %c0_i32_1 = arith.constant 0 : i32
    return %arg0, %c0_i32, %c0_i32_0 : i32, i32, i32
  }
  func.func @transform_1(%arg0: i32) -> (i32, i32) {
    %c0_i32 = arith.constant 0 : i32
    %c0_i32_0 = arith.constant 0 : i32
    %c0_i32_1 = arith.constant 0 : i32
    return %c0_i32, %c0_i32_0 : i32, i32
  }
  func.func @transform_2(%arg0: i32) -> (i32, i32) {
    %c0_i32 = arith.constant 0 : i32
    %c0_i32_0 = arith.constant 0 : i32
    %c0_i32_1 = arith.constant 0 : i32
    return %c0_i32, %c0_i32_0 : i32, i32
  }
  func.func @transform_3(%arg0: i32) -> (i32, i32) {
    %c0_i32 = arith.constant 0 : i32
    %c0_i32_0 = arith.constant 0 : i32
    %c0_i32_1 = arith.constant 0 : i32
    return %c0_i32, %c0_i32_0 : i32, i32
  }
  func.func @transform_4(%arg0: i32) -> (i32, i32) {
    %c0_i32 = arith.constant 0 : i32
    %c0_i32_0 = arith.constant 0 : i32
    %c0_i32_1 = arith.constant 0 : i32
    return %c0_i32, %c0_i32_0 : i32, i32
  }
  func.func @transform_5(%arg0: i32) -> (i32, i32, i32) {
    %c0_i32 = arith.constant 0 : i32
    %c0_i32_0 = arith.constant 0 : i32
    %c0_i32_1 = arith.constant 0 : i32
    %c0_i32_2 = arith.constant 0 : i32
    return %c0_i32, %c0_i32_0, %c0_i32_1 : i32, i32, i32
  }
  func.func @transform_6(%arg0: i32) -> (i32, i32) {
    %c0_i32 = arith.constant 0 : i32
    %c0_i32_0 = arith.constant 0 : i32
    %c0_i32_1 = arith.constant 0 : i32
    return %c0_i32, %c0_i32_0 : i32, i32
  }
  func.func @transform_7(%arg0: i32) -> (i32, i32) {
    %c0_i32 = arith.constant 0 : i32
    %c0_i32_0 = arith.constant 0 : i32
    %c0_i32_1 = arith.constant 0 : i32
    return %c0_i32, %c0_i32_0 : i32, i32
  }
  func.func @transform_8(%arg0: i32) -> (i32, i32) {
    %c0_i32 = arith.constant 0 : i32
    %c0_i32_0 = arith.constant 0 : i32
    return %arg0, %c0_i32 : i32, i32
  }
}

</mosaic_0001>

<bundles_post_ra>
// kernel: cnn_forward.1
= control target key start
LH: loop header
LB: loop body
LE: loop exit
PB: predicated region body
PF: predicated region fallthrough
CT: control target
= control target key end

     0   :  { %vm373_vm0 = vcmask 1044480   ;;  %vm374_vm1 = vcmask 1045504   ;;  %v4372_v0 = vmov 0   ;;  %v4373_v3 = vmov 65535   ;;  %s4374_s24 = smov 64   ;;  %s6338_s5 = inlined_call_operand.vmem [shape: f32[9,128,1], index: 5, kind: input, shape index: {}]   ;;  %s6339_s1 = inlined_call_operand.vmem [shape: bf16[27,64], index: 1, kind: input, shape index: {}]   ;;  %s6340_s0 = inlined_call_operand.vmem [shape: bf16[1,512,27], index: 0, kind: input, shape index: {}]   ;;  %s6341_s2 = inlined_call_operand.vmem [shape: f32[1,64], index: 2, kind: input, shape index: {}]   ;;  %s6342_s3 = inlined_call_operand.vmem [shape: bf16[576,128], index: 3, kind: input, shape index: {}]   ;;  %s6343_s6 = inlined_call_operand.vmem [shape: bf16[512,256], index: 6, kind: input, shape index: {}]   ;;  %s6344_s4 = inlined_call_operand.vmem [shape: f32[1,128], index: 4, kind: input, shape index: {}]   ;;  %s6345_s7 = inlined_call_operand.vmem [shape: f32[1,256], index: 7, kind: input, shape index: {}]   ;;  %s6346_s8 = inlined_call_operand.vmem [shape: f32[8,256], index: 8, kind: output, shape index: {}]  }
   0x1   :  { %3884 = vset.pattern.permute.xlu1 %v4372_v0  ;;  %3883 = vset.pattern.permute.xlu0 %v4372_v0  ;;  %v799_v1 = vld [vmem:[%s6338_s5 + $0x10] sm:$0xff]  ;;  %v797_v2 = vld [vmem:[%s6338_s5] sm:$0xff]  ;;  %v375_v4 = vsel %vm373_vm0, 4294967295, %v4373_v3  ;;  %v800_v6 = vld [vmem:[%s6338_s5 + $0x18] sm:$0xff]  ;;  %vm276_vm2 = vcmask 220160   ;;  %vm2069_vm3 = vcmask 523264  }
   0x2   :  { %825 = vperm.xlu1 %3884, %v799_v1   ;;  %815 = vperm.xlu0 %3883, %v797_v2   ;;  %v376_v5 = vsel %vm374_vm1, %v375_v4, 0  ;;  %v798_v7 = vld [vmem:[%s6338_s5 + $0x8] sm:$0xff]  ;;  %v4046_v9 = vld [vmem:[%s6339_s1] sm:$0xff]   ;;  %v804_v14 = vld [vmem:[%s6338_s5 + $0x38] sm:$0xff] }
   0x3   :  { %v4045_v8 = vld [vmem:[%s6339_s1 + $0x8] sm:$0x3f]   ;;  %v4047_v11 = vld [vmem:[%s6340_s0] sm:$0xff]   ;;  %v803_v15 = vld [vmem:[%s6338_s5 + $0x30] sm:$0xff] }
   0x4   :  { %v378_v10 = vand.u32 %v4045_v8, %v376_v5  ;;  %v802_v12 = vld [vmem:[%s6338_s5 + $0x28] sm:$0xff]  ;;  %v801_v13 = vld [vmem:[%s6338_s5 + $0x20] sm:$0xff]  ;;  %3788 = vmatprep.mubr.msk.bf16.mxu0 %vm276_vm2, %v4047_v11  ;;  %v4049_v17 = vld [vmem:[%s6340_s0 + $0x10] sm:$0xff]  }
   0x5   :  { %v4048_v16 = vld [vmem:[%s6340_s0 + $0x8] sm:$0xff]   ;;  %v3405_v19 = vld [vmem:[%s6338_s5 + $0x180] sm:$0xff]  ;;  %v4050_v22 = vld [vmem:[%s6340_s0 + $0x18] sm:$0xff]  }
   0x6   :  { %830 = vperm.xlu1 %3884, %v800_v6   ;;  %820 = vperm.xlu0 %3883, %v798_v7   ;;  %v3406_v18 = vld [vmem:[%s6338_s5 + $0x188] sm:$0xff]  ;;  %v3373_v21 = vld [vmem:[%s6338_s5 + $0x80] sm:$0xff]  ;;  %v3408_v24 = vld [vmem:[%s6338_s5 + $0x198] sm:$0xff] }
   0x7   :  { %3784 = vmatprep.subr.bf16.mxu0 %v378_v10  ;;  %3876 = vmatprep.subr.bf16.mxu1 %v378_v10  ;;  %v3374_v20 = vld [vmem:[%s6338_s5 + $0x88] sm:$0xff]  ;;  %v4051_v23 = vld [vmem:[%s6340_s0 + $0x20] sm:$0xff]   ;;  %v3407_v25 = vld [vmem:[%s6338_s5 + $0x190] sm:$0xff] }
   0x8   :  { %3785 = vmatpush3.bf16.msra.mxu0 %v378_v10  ;;  %3878 = vmatpush3.bf16.msra.mxu1 %v378_v10  ;;  %v3376_v26 = vld [vmem:[%s6338_s5 + $0x98] sm:$0xff]  ;;  %v3375_v27 = vld [vmem:[%s6338_s5 + $0x90] sm:$0xff]  ;;  %v4052_v28 = vld [vmem:[%s6340_s0 + $0x28] sm:$0xff]  }
   0x9   :  { %3786 = vmatprep.subr.bf16.mxu0 %v4046_v9  ;;  %3877 = vmatprep.subr.bf16.mxu1 %v4046_v9  ;;  %v4053_v29 = vld [vmem:[%s6340_s0 + $0x30] sm:$0xff]   ;;  %v3410_v30 = vld [vmem:[%s6338_s5 + $0x1a8] sm:$0xff]  ;;  %v3409_v31 = vld [vmem:[%s6338_s5 + $0x1a0] sm:$0xff] }
   0xa   :  { %840 = vperm.xlu1 %3884, %v802_v12   ;;  %835 = vperm.xlu0 %3883, %v801_v13   ;;  %v4063_v32 = vld [vmem:[%s6340_s0 + $0xc0] sm:$0xff]   ;;  %v4064_v33 = vld [vmem:[%s6340_s0 + $0xc8] sm:$0xff]   ;;  %v4054_v36 = vld [vmem:[%s6340_s0 + $0x38] sm:$0xff]  }
   0xb   :  { %3836 = vmatprep.mubr.msk.bf16.mxu1 %vm276_vm2, %v4063_v32  ;;  %v3378_v34 = vld [vmem:[%s6338_s5 + $0xa8] sm:$0xff]  ;;  %v3377_v35 = vld [vmem:[%s6338_s5 + $0xa0] sm:$0xff]  ;;  %v4068_v38 = vld [vmem:[%s6340_s0 + $0xd0] sm:$0xff]  }
   0xc   :  { %3787 = vmatpush3.bf16.msra.mxu0 %v4046_v9  ;;  %3879 = vmatpush3.bf16.msra.mxu1 %v4046_v9  ;;  %v4055_v37 = vld [vmem:[%s6340_s0 + $0x40] sm:$0xff]   ;;  %v3412_v39 = vld [vmem:[%s6338_s5 + $0x1b8] sm:$0xff]  ;;  %v3411_v40 = vld [vmem:[%s6338_s5 + $0x1b0] sm:$0xff] }
   0xd   :  { %v4070_v41 = vld [vmem:[%s6340_s0 + $0xd8] sm:$0xff]   ;;  %v3379_v43 = vld [vmem:[%s6338_s5 + $0xb0] sm:$0xff]  ;;  %v4056_v44 = vld [vmem:[%s6340_s0 + $0x48] sm:$0xff]  }
   0xe   :  { %850 = vperm.xlu1 %3884, %v804_v14   ;;  %845 = vperm.xlu0 %3883, %v803_v15   ;;  %v3380_v42 = vld [vmem:[%s6338_s5 + $0xb8] sm:$0xff]  ;;  %v4057_v45 = vld [vmem:[%s6340_s0 + $0x50] sm:$0xff]   ;;  %v4073_v46 = vld [vmem:[%s6340_s0 + $0xe0] sm:$0xff]  }
   0xf   :  { %3789 = vmatmul.mubr.msk.bf16.vlgmr.msra.gmra.mxu0 %vm276_vm2, %v4048_v16  ;;  %3837 = vmatmul.mubr.msk.bf16.vlgmr.msra.gmra.mxu1 %vm276_vm2, %v4064_v33  ;;  %v3414_v47 = vld [vmem:[%s6338_s5 + $0x1c8] sm:$0xff]  ;;  %v3413_v48 = vld [vmem:[%s6338_s5 + $0x1c0] sm:$0xff]  ;;  %v4058_v52 = vld [vmem:[%s6340_s0 + $0x58] sm:$0xff]  }
  0x10   :  { %3792 = vmatprep.mubr.msk.bf16.mxu0 %vm276_vm2, %v4049_v17  ;;  %3840 = vmatprep.mubr.msk.bf16.mxu1 %vm276_vm2, %v4068_v38  ;;  %v4074_v49 = vld [vmem:[%s6340_s0 + $0xe8] sm:$0xff]   ;;  %v3381_v51 = vld [vmem:[%s6338_s5 + $0xc0] sm:$0xff]  ;;  %v4077_v53 = vld [vmem:[%s6340_s0 + $0xf0] sm:$0xff]  }
  0x11   :  { %v3382_v50 = vld [vmem:[%s6338_s5 + $0xc8] sm:$0xff]  ;;  %v4059_v54 = vld [vmem:[%s6340_s0 + $0x60] sm:$0xff]   ;;  %v3416_v55 = vld [vmem:[%s6338_s5 + $0x1d8] sm:$0xff] }
  0x12   :  { %1159 = vperm.xlu1 %3884, %v3406_v18   ;;  %1154 = vperm.xlu0 %3883, %v3405_v19   ;;  %v3415_v56 = vld [vmem:[%s6338_s5 + $0x1d0] sm:$0xff]  ;;  %v4078_v57 = vld [vmem:[%s6340_s0 + $0xf8] sm:$0xff]   ;;  %v4060_v60 = vld [vmem:[%s6340_s0 + $0x68] sm:$0xff]  }
  0x13   :  { %v3384_v58 = vld [vmem:[%s6338_s5 + $0xd8] sm:$0xff]  ;;  %v3383_v59 = vld [vmem:[%s6338_s5 + $0xd0] sm:$0xff]  ;;  %v3418_v62 = vld [vmem:[%s6338_s5 + $0x1e8] sm:$0xff] }
  0x14   :  { %v4061_v61 = vld [vmem:[%s6340_s0 + $0x70] sm:$0xff]   ;;  %v3417_v63 = vld [vmem:[%s6338_s5 + $0x1e0] sm:$0xff]  ;;  %v3386_v0 = vld [vmem:[%s6338_s5 + $0xe8] sm:$0xff] }
  0x15   :  { %v3385_v1 = vld [vmem:[%s6338_s5 + $0xe0] sm:$0xff]  ;;  %v4062_v2 = vld [vmem:[%s6340_s0 + $0x78] sm:$0xff]   ;;  %v3419_v5 = vld [vmem:[%s6338_s5 + $0x1f0] sm:$0xff] }
  0x16   :  { %933 = vperm.xlu1 %3884, %v3374_v20   ;;  %928 = vperm.xlu0 %3883, %v3373_v21   ;;  %v4065_v3 = vld [vmem:[%s6340_s0 + $0x80] sm:$0xff]   ;;  %v3420_v4 = vld [vmem:[%s6338_s5 + $0x1f8] sm:$0xff]  ;;  %v3387_v7 = vld [vmem:[%s6338_s5 + $0xf0] sm:$0xff] }
  0x17   :  { %3793 = vmatmul.mubr.msk.bf16.gmra.mxu0 %vm276_vm2, %v4050_v22  ;;  %3841 = vmatmul.mubr.msk.bf16.gmra.mxu1 %vm276_vm2, %v4070_v41  ;;  %v3388_v6 = vld [vmem:[%s6338_s5 + $0xf8] sm:$0xff]  ;;  %v4066_v8 = vld [vmem:[%s6340_s0 + $0x88] sm:$0xff]   ;;  %v4067_v9 = vld [vmem:[%s6340_s0 + $0x90] sm:$0xff]  }
  0x18   :  { %3796 = vmatprep.mubr.msk.bf16.mxu0 %vm276_vm2, %v4051_v23  ;;  %3844 = vmatprep.mubr.msk.bf16.mxu1 %vm276_vm2, %v4073_v46  ;;  %v3390_v10 = vld [vmem:[%s6338_s5 + $0x108] sm:$0xff]  ;;  %v3389_v11 = vld [vmem:[%s6338_s5 + $0x100] sm:$0xff]  ;;  %v4069_v14 = vld [vmem:[%s6340_s0 + $0x98] sm:$0xff]  }
  0x19   :  { %v3470_v12 = vld [vmem:[%s6338_s5 + $0x388] sm:$0xff]  ;;  %v3469_v13 = vld [vmem:[%s6338_s5 + $0x380] sm:$0xff]  ;;  %v3391_v18 = vld [vmem:[%s6338_s5 + $0x110] sm:$0xff] }
  0x1a   :  { %1169 = vperm.xlu1 %3884, %v3408_v24   ;;  %1164 = vperm.xlu0 %3883, %v3407_v25   ;;  %v4071_v15 = vld [vmem:[%s6340_s0 + $0xa0] sm:$0xff]   ;;  %v3438_v16 = vld [vmem:[%s6338_s5 + $0x288] sm:$0xff]  ;;  %v3392_v19 = vld [vmem:[%s6338_s5 + $0x118] sm:$0xff] }
  0x1b   :  { %v3437_v17 = vld [vmem:[%s6338_s5 + $0x280] sm:$0xff]  ;;  %v4072_v20 = vld [vmem:[%s6340_s0 + $0xa8] sm:$0xff]   ;;  %v4075_v21 = vld [vmem:[%s6340_s0 + $0xb0] sm:$0xff]  }
  0x1c   :  { %v3472_v22 = vld [vmem:[%s6338_s5 + $0x398] sm:$0xff]  ;;  %v3471_v23 = vld [vmem:[%s6338_s5 + $0x390] sm:$0xff]  ;;  %v3441_v32 = vld [vmem:[%s6338_s5 + $0x2a0] sm:$0xff] }
  0x1d   :  { %v3440_v24 = vld [vmem:[%s6338_s5 + $0x298] sm:$0xff]  ;;  %v3439_v25 = vld [vmem:[%s6338_s5 + $0x290] sm:$0xff]  ;;  %v3477_v46 = vld [vmem:[%s6338_s5 + $0x3c0] sm:$0xff] }
  0x1e   :  { %943 = vperm.xlu1 %3884, %v3376_v26   ;;  %938 = vperm.xlu0 %3883, %v3375_v27   ;;  %v4076_v26 = vld [vmem:[%s6340_s0 + $0xb8] sm:$0xff]   ;;  %v3393_v27 = vld [vmem:[%s6338_s5 + $0x120] sm:$0xff]  ;;  %v3395_v33 = vld [vmem:[%s6338_s5 + $0x130] sm:$0xff] }
  0x1f   :  { %3797 = vmatmul.mubr.msk.bf16.gmra.mxu0 %vm276_vm2, %v4052_v28  ;;  %3845 = vmatmul.mubr.msk.bf16.gmra.mxu1 %vm276_vm2, %v4074_v49  ;;  %v3394_v28 = vld [vmem:[%s6338_s5 + $0x128] sm:$0xff]  ;;  %v3445_v49 = vld [vmem:[%s6338_s5 + $0x2c0] sm:$0xff] }
  0x20   :  { %3800 = vmatprep.mubr.msk.bf16.mxu0 %vm276_vm2, %v4053_v29  ;;  %3848 = vmatprep.mubr.msk.bf16.mxu1 %vm276_vm2, %v4077_v53  ;;  %v3474_v29 = vld [vmem:[%s6338_s5 + $0x3a8] sm:$0xff] }
  0x22   :  { %1179 = vperm.xlu1 %3884, %v3410_v30   ;;  %1174 = vperm.xlu0 %3883, %v3409_v31   ;;  %v3473_v30 = vld [vmem:[%s6338_s5 + $0x3a0] sm:$0xff]  ;;  %v3442_v31 = vld [vmem:[%s6338_s5 + $0x2a8] sm:$0xff] }
  0x26   :  { %953 = vperm.xlu1 %3884, %v3378_v34   ;;  %948 = vperm.xlu0 %3883, %v3377_v35   ;;  %v3396_v34 = vld [vmem:[%s6338_s5 + $0x138] sm:$0xff] }
  0x27   :  { %3801 = vmatmul.mubr.msk.bf16.gmra.mxu0 %vm276_vm2, %v4054_v36  ;;  %3849 = vmatmul.mubr.msk.bf16.gmra.mxu1 %vm276_vm2, %v4078_v57  ;;  %v3476_v35 = vld [vmem:[%s6338_s5 + $0x3b8] sm:$0xff]  ;;  %v3475_v36 = vld [vmem:[%s6338_s5 + $0x3b0] sm:$0xff] }
  0x28   :  { %3804 = vmatprep.mubr.msk.bf16.mxu0 %vm276_vm2, %v4055_v37  ;;  %v3443_v37 = vld [vmem:[%s6338_s5 + $0x2b0] sm:$0xff] }
  0x29   :  { %v807_v57 = vld [vmem:[%s6338_s5 + $0x50] sm:$0xff] }
  0x2a   :  { %1189 = vperm.xlu1 %3884, %v3412_v39   ;;  %1184 = vperm.xlu0 %3883, %v3411_v40   ;;  %v3398_v40 = vld [vmem:[%s6338_s5 + $0x148] sm:$0xff] }
  0x2e   :  { %963 = vperm.xlu1 %3884, %v3380_v42   ;;  %958 = vperm.xlu0 %3883, %v3379_v43   ;;  %v805_v43 = vld [vmem:[%s6338_s5 + $0x40] sm:$0xff] }
  0x2f   :  { %3805 = vmatmul.mubr.msk.bf16.gmra.mxu0 %vm276_vm2, %v4056_v44 }
  0x30   :  { %3808 = vmatprep.mubr.msk.bf16.mxu0 %vm276_vm2, %v4057_v45 }
  0x32   :  { %1199 = vperm.xlu1 %3884, %v3414_v47   ;;  %1194 = vperm.xlu0 %3883, %v3413_v48  }
  0x36   :  { %973 = vperm.xlu1 %3884, %v3382_v50   ;;  %968 = vperm.xlu0 %3883, %v3381_v51  }
  0x37   :  { %3809 = vmatmul.mubr.msk.bf16.gmra.mxu0 %vm276_vm2, %v4058_v52  ;;  %v3400_v52 = vld [vmem:[%s6338_s5 + $0x158] sm:$0xff] }
  0x38   :  { %3812 = vmatprep.mubr.msk.bf16.mxu0 %vm276_vm2, %v4059_v54 }
  0x3a   :  { %1209 = vperm.xlu1 %3884, %v3416_v55   ;;  %1204 = vperm.xlu0 %3883, %v3415_v56  }
  0x3e   :  { %983 = vperm.xlu1 %3884, %v3384_v58   ;;  %978 = vperm.xlu0 %3883, %v3383_v59  }
  0x3f   :  { %3813 = vmatmul.mubr.msk.bf16.gmra.mxu0 %vm276_vm2, %v4060_v60 }
  0x40   :  { %3816 = vmatprep.mubr.msk.bf16.mxu0 %vm276_vm2, %v4061_v61  ;;  %v3479_v61 = vld [vmem:[%s6338_s5 + $0x3d0] sm:$0xff] }
  0x42   :  { %1219 = vperm.xlu1 %3884, %v3418_v62   ;;  %1214 = vperm.xlu0 %3883, %v3417_v63  }
  0x46   :  { %993 = vperm.xlu1 %3884, %v3386_v0   ;;  %988 = vperm.xlu0 %3883, %v3385_v1  }
  0x47   :  { %3817 = vmatmul.mubr.msk.bf16.gmra.mxu0 %vm276_vm2, %v4062_v2  ;;  %v3447_v2 = vld [vmem:[%s6338_s5 + $0x2d0] sm:$0xff] }
  0x48   :  { %3820 = vmatprep.mubr.msk.bf16.mxu0 %vm276_vm2, %v4065_v3 }
  0x4a   :  { %1229 = vperm.xlu1 %3884, %v3420_v4   ;;  %1224 = vperm.xlu0 %3883, %v3419_v5  }
  0x4e   :  { %1003 = vperm.xlu1 %3884, %v3388_v6   ;;  %998 = vperm.xlu0 %3883, %v3387_v7   ;;  %v3402_v6 = vld [vmem:[%s6338_s5 + $0x168] sm:$0xff]  ;;  %v3444_v7 = vld [vmem:[%s6338_s5 + $0x2b8] sm:$0xff] }
  0x4f   :  { %3821 = vmatmul.mubr.msk.bf16.gmra.mxu0 %vm276_vm2, %v4066_v8 }
  0x50   :  { %3824 = vmatprep.mubr.msk.bf16.mxu0 %vm276_vm2, %v4067_v9 }
  0x52   :  { %1046 = vperm.xlu1 %3884, %v3390_v10   ;;  %1041 = vperm.xlu0 %3883, %v3389_v11   ;;  %v809_v10 = vld [vmem:[%s6338_s5 + $0x60] sm:$0xff] }
  0x53   :  { %v3397_v11 = vld [vmem:[%s6338_s5 + $0x140] sm:$0xff] }
  0x56   :  { %1611 = vperm.xlu1 %3884, %v3470_v12   ;;  %1606 = vperm.xlu0 %3883, %v3469_v13  }
  0x57   :  { %3825 = vmatmul.mubr.msk.bf16.gmra.mxu0 %vm276_vm2, %v4069_v14  ;;  %v3481_v14 = vld [vmem:[%s6338_s5 + $0x3e0] sm:$0xff] }
  0x58   :  { %3828 = vmatprep.mubr.msk.bf16.mxu0 %vm276_vm2, %v4071_v15  ;;  %v806_v15 = vld [vmem:[%s6338_s5 + $0x48] sm:$0xff] }
  0x5a   :  { %1385 = vperm.xlu1 %3884, %v3438_v16   ;;  %1380 = vperm.xlu0 %3883, %v3437_v17  }
  0x5e   :  { %1051 = vperm.xlu1 %3884, %v3391_v18   ;;  %1056 = vperm.xlu0 %3883, %v3392_v19   ;;  %v3449_v18 = vld [vmem:[%s6338_s5 + $0x2e0] sm:$0xff]  ;;  %v3478_v19 = vld [vmem:[%s6338_s5 + $0x3c8] sm:$0xff] }
  0x5f   :  { %3829 = vmatmul.mubr.msk.bf16.gmra.mxu0 %vm276_vm2, %v4072_v20 }
  0x60   :  { %3832 = vmatprep.mubr.msk.bf16.mxu0 %vm276_vm2, %v4075_v21 }
  0x62   :  { %1621 = vperm.xlu1 %3884, %v3472_v22   ;;  %1616 = vperm.xlu0 %3883, %v3471_v23   ;;  %v3404_v22 = vld [vmem:[%s6338_s5 + $0x178] sm:$0xff]  ;;  %v3446_v23 = vld [vmem:[%s6338_s5 + $0x2c8] sm:$0xff] }
  0x66   :  { %1395 = vperm.xlu1 %3884, %v3440_v24   ;;  %1390 = vperm.xlu0 %3883, %v3439_v25  }
  0x67   :  { %3833 = vmatmul.mubr.msk.bf16.gmra.mxu0 %vm276_vm2, %v4076_v26  ;;  %v811_v26 = vld [vmem:[%s6338_s5 + $0x70] sm:$0xff] }
  0x6a   :  { %1061 = vperm.xlu1 %3884, %v3393_v27   ;;  %1066 = vperm.xlu0 %3883, %v3394_v28   ;;  %v3399_v27 = vld [vmem:[%s6338_s5 + $0x150] sm:$0xff] }
  0x6e   :  { %1631 = vperm.xlu1 %3884, %v3474_v29   ;;  %1626 = vperm.xlu0 %3883, %v3473_v30   ;;  %v3483_v30 = vld [vmem:[%s6338_s5 + $0x3f0] sm:$0xff] }
  0x72   :  { %1405 = vperm.xlu1 %3884, %v3442_v31   ;;  %1400 = vperm.xlu0 %3883, %v3441_v32   ;;  %v808_v31 = vld [vmem:[%s6338_s5 + $0x58] sm:$0xff] }
  0x76   :  { %1071 = vperm.xlu1 %3884, %v3395_v33   ;;  %1076 = vperm.xlu0 %3883, %v3396_v34   ;;  %v3451_v34 = vld [vmem:[%s6338_s5 + $0x2f0] sm:$0xff] }
  0x7a   :  { %1641 = vperm.xlu1 %3884, %v3476_v35   ;;  %1636 = vperm.xlu0 %3883, %v3475_v36   ;;  %v3480_v35 = vld [vmem:[%s6338_s5 + $0x3d8] sm:$0xff] }
  0x7d   :  { %v4743_v38 = vpop.permute.xlu1 %825  ;;  %v4745_v39 = vpop.permute.xlu0 %815 }
  0x7e   :  { %6357 = vst [vmem:[#allocation2_spill] sm:$0xff] %v4743_v38  ;;  %6358 = vst [vmem:[#allocation3_spill] sm:$0xff] %v4745_v39  ;;  %1410 = vperm.xlu0 %3883, %v3443_v37   ;;  %v5023_v38 = vld [vmem:[%s6341_s2] ss:$0 sm:$0xff] }
  0x81   :  { %v4750_v41 = vpop.permute.xlu1 %830  ;;  %v4752_v42 = vpop.permute.xlu0 %820 }
  0x82   :  { %6359 = vst [vmem:[#allocation4_spill] sm:$0xff] %v4750_v41  ;;  %6360 = vst [vmem:[#allocation5_spill] sm:$0xff] %v4752_v42  ;;  %1086 = vperm.xlu0 %3883, %v3398_v40   ;;  %v3454_v40 = vld [vmem:[%s6338_s5 + $0x308] sm:$0xff]  ;;  %v3424_v41 = vld [vmem:[%s6338_s5 + $0x218] sm:$0xff] }
  0x85   :  { %v4757_v44 = vpop.permute.xlu1 %840  ;;  %v4759_v45 = vpop.permute.xlu0 %835 }
  0x86   :  { %6361 = vst [vmem:[#allocation6_spill] sm:$0xff] %v4757_v44  ;;  %6362 = vst [vmem:[#allocation7_spill] sm:$0xff] %v4759_v45  ;;  %855 = vperm.xlu0 %3883, %v805_v43   ;;  %v3448_v43 = vld [vmem:[%s6338_s5 + $0x2d8] sm:$0xff] }
  0x89   :  { %v4764_v47 = vpop.permute.xlu1 %850  ;;  %v4766_v48 = vpop.permute.xlu0 %845 }
  0x8a   :  { %6363 = vst [vmem:[#allocation8_spill] sm:$0xff] %v4764_v47  ;;  %6364 = vst [vmem:[#allocation9_spill] sm:$0xff] %v4766_v48  ;;  %1646 = vperm.xlu0 %3883, %v3477_v46  }
  0x8d   :  { %v4771_v50 = vpop.permute.xlu1 %1159  ;;  %v4773_v51 = vpop.permute.xlu0 %1154 }
  0x8e   :  { %1420 = vperm.xlu0 %3883, %v3445_v49  }
  0x91   :  { %v934_v53 = vpop.permute.xlu1 %933  ;;  %v929_v54 = vpop.permute.xlu0 %928 }
  0x92   :  { %v1007_v55 = vmul.f32 0.0, %v934_v53  ;;  %v1006_v56 = vmul.f32 0.0, %v929_v54  ;;  %1096 = vperm.xlu0 %3883, %v3400_v52   ;;  %v3421_v52 = vld [vmem:[%s6338_s5 + $0x200] sm:$0xff] }
  0x93   :  { %v3401_v53 = vld [vmem:[%s6338_s5 + $0x160] sm:$0xff] }
  0x94   :  { %v3885_v58 = vpack.i.bf16 %v1007_v55, %v1006_v56  ;;  %v3456_v55 = vld [vmem:[%s6338_s5 + $0x318] sm:$0xff]  ;;  %v810_v56 = vld [vmem:[%s6338_s5 + $0x68] sm:$0xff] }
  0x95   :  { %v4781_v59 = vpop.permute.xlu1 %1169  ;;  %v4783_v60 = vpop.permute.xlu0 %1164 }
  0x96   :  { %865 = vperm.xlu0 %3883, %v807_v57   ;;  %3886 = vrot.lane.b32.xlu1 %v3885_v58, %s4374_s24 }
  0x99   :  { %v944_v62 = vpop.permute.xlu1 %943  ;;  %v939_v63 = vpop.permute.xlu0 %938 }
  0x9a   :  { %v1009_v0 = vmul.f32 0.0, %v944_v62  ;;  %v1008_v1 = vmul.f32 0.0, %v939_v63  ;;  %1656 = vperm.xlu0 %3883, %v3479_v61   ;;  %v3423_v61 = vld [vmem:[%s6338_s5 + $0x210] sm:$0xff]  ;;  %v3482_v62 = vld [vmem:[%s6338_s5 + $0x3e8] sm:$0xff] }
  0x9c   :  { %v3890_v3 = vpack.i.bf16 %v1009_v0, %v1008_v1 }
  0x9d   :  { %v4792_v4 = vpop.permute.xlu1 %1179  ;;  %v4794_v5 = vpop.permute.xlu0 %1174 }
  0x9e   :  { %1430 = vperm.xlu0 %3883, %v3447_v2   ;;  %3891 = vrot.lane.b32.xlu1 %v3890_v3, %s4374_s24  ;;  %v3458_v2 = vld [vmem:[%s6338_s5 + $0x328] sm:$0xff] }
  0x9f   :  { %v3450_v3 = vld [vmem:[%s6338_s5 + $0x2e8] sm:$0xff] }
  0xa1   :  { %v4803_v8 = vpop.permute.xlu1 %953  ;;  %v4805_v9 = vpop.permute.xlu0 %948 }
  0xa2   :  { %1106 = vperm.xlu0 %3883, %v3402_v6   ;;  %1415 = vperm.xlu1 %3884, %v3444_v7  }
  0xa5   :  { %v4813_v12 = vpop.permute.xlu1 %1189  ;;  %v4815_v13 = vpop.permute.xlu0 %1184 }
  0xa6   :  { %6365 = vst [vmem:[#allocation10_spill] sm:$0xff] %v4813_v12  ;;  %6366 = vst [vmem:[#allocation11_spill] sm:$0xff] %v4815_v13  ;;  %875 = vperm.xlu0 %3883, %v809_v10   ;;  %1081 = vperm.xlu1 %3884, %v3397_v11   ;;  %v3425_v11 = vld [vmem:[%s6338_s5 + $0x220] sm:$0xff] }
  0xa9   :  { %v4823_v16 = vpop.permute.xlu1 %963  ;;  %v4825_v17 = vpop.permute.xlu0 %958 }
  0xaa   :  { %1666 = vperm.xlu0 %3883, %v3481_v14   ;;  %860 = vperm.xlu1 %3884, %v806_v15   ;;  %v3403_v14 = vld [vmem:[%s6338_s5 + $0x170] sm:$0xff] }
  0xad   :  { %v4833_v20 = vpop.permute.xlu1 %1199  ;;  %v4835_v21 = vpop.permute.xlu0 %1194 }
  0xae   :  { %6367 = vst [vmem:[#allocation12_spill] sm:$0xff] %v4833_v20  ;;  %6368 = vst [vmem:[#allocation13_spill] sm:$0xff] %v4835_v21  ;;  %1440 = vperm.xlu0 %3883, %v3449_v18   ;;  %1651 = vperm.xlu1 %3884, %v3478_v19  }
  0xb1   :  { %v4843_v24 = vpop.permute.xlu1 %973  ;;  %v4845_v25 = vpop.permute.xlu0 %968 }
  0xb2   :  { %6369 = vst [vmem:[#allocation14_spill] sm:$0xff] %v4843_v24  ;;  %6370 = vst [vmem:[#allocation15_spill] sm:$0xff] %v4845_v25  ;;  %1116 = vperm.xlu0 %3883, %v3404_v22   ;;  %1425 = vperm.xlu1 %3884, %v3446_v23   ;;  %v3460_v23 = vld [vmem:[%s6338_s5 + $0x338] sm:$0xff] }
  0xb5   :  { %v4853_v28 = vpop.permute.xlu1 %1209  ;;  %v4855_v29 = vpop.permute.xlu0 %1204 }
  0xb6   :  { %6371 = vst [vmem:[#allocation16_spill] sm:$0xff] %v4853_v28  ;;  %6372 = vst [vmem:[#allocation17_spill] sm:$0xff] %v4855_v29  ;;  %885 = vperm.xlu0 %3883, %v811_v26   ;;  %1091 = vperm.xlu1 %3884, %v3399_v27   ;;  %v812_v26 = vld [vmem:[%s6338_s5 + $0x78] sm:$0xff] }
  0xb9   :  { %v4863_v32 = vpop.permute.xlu1 %983  ;;  %v4865_v33 = vpop.permute.xlu0 %978 }
  0xba   :  { %1676 = vperm.xlu0 %3883, %v3483_v30   ;;  %870 = vperm.xlu1 %3884, %v808_v31  }
  0xbd   :  { %v4873_v36 = vpop.permute.xlu1 %1219  ;;  %v4875_v37 = vpop.permute.xlu0 %1214 }
  0xbe   :  { %6373 = vst [vmem:[#allocation18_spill] sm:$0xff] %v4873_v36  ;;  %6374 = vst [vmem:[#allocation19_spill] sm:$0xff] %v4875_v37  ;;  %1450 = vperm.xlu0 %3883, %v3451_v34   ;;  %1661 = vperm.xlu1 %3884, %v3480_v35   ;;  %v3427_v35 = vld [vmem:[%s6338_s5 + $0x230] sm:$0xff]  ;;  %v3426_v37 = vld [vmem:[%s6338_s5 + $0x228] sm:$0xff] }
  0xc1   :  { %v4883_v46 = vpop.permute.xlu0 %988  ;;  %v4885_v49 = vpop.permute.xlu1 %993 }
  0xc2   :  { %6375 = vst [vmem:[#allocation20_spill] sm:$0xff] %v4883_v46  ;;  %1498 = vperm.xlu0 %3883, %v3454_v40   ;;  %1435 = vperm.xlu1 %3884, %v3448_v43   ;;  %6376 = vst [vmem:[#allocation21_spill] sm:$0xff] %v4885_v49  ;;  %v3484_v40 = vld [vmem:[%s6338_s5 + $0x3f8] sm:$0xff] }
  0xc5   :  { %v4893_v54 = vpop.permute.xlu0 %1224  ;;  %v4901_v57 = vpop.permute.xlu1 %1229 }
  0xc6   :  { %6377 = vst [vmem:[#allocation22_spill] sm:$0xff] %v4893_v54  ;;  %1267 = vperm.xlu0 %3883, %v3421_v52   ;;  %1101 = vperm.xlu1 %3884, %v3401_v53   ;;  %6378 = vst [vmem:[#allocation23_spill] sm:$0xff] %v4901_v57 }
  0xc9   :  { %v4903_v58 = vpop.permute.xlu0 %998  ;;  %v4913_v0 = vpop.permute.xlu1 %1003 }
  0xca   :  { %6379 = vst [vmem:[#allocation24_spill] sm:$0xff] %v4903_v58  ;;  %1508 = vperm.xlu0 %3883, %v3456_v55   ;;  %880 = vperm.xlu1 %3884, %v810_v56   ;;  %6381 = vst [vmem:[#allocation26_spill] sm:$0xff] %v4913_v0  ;;  %v3452_v55 = vld [vmem:[%s6338_s5 + $0x2f8] sm:$0xff]  ;;  %v3462_v56 = vld [vmem:[%s6338_s5 + $0x348] sm:$0xff] }
  0xcb   :  { %v4081_v58 = vld [vmem:[%s6342_s3 + $0x70] sm:$0xff]  }
  0xcd   :  { %v4911_v63 = vpop.permute.xlu0 %1041  ;;  %v4935_v15 = vpop.permute.xlu1 %1046 }
  0xce   :  { %6380 = vst [vmem:[#allocation25_spill] sm:$0xff] %v4911_v63  ;;  %1277 = vperm.xlu0 %3883, %v3423_v61   ;;  %1671 = vperm.xlu1 %3884, %v3482_v62   ;;  %6383 = vst [vmem:[#allocation28_spill] sm:$0xff] %v4935_v15 }
  0xcf   :  { %v4915_v1 = vpop.f32.mrf.mxu0 }
  0xd0   :  { %v423_v15 = vadd.f32 %v4915_v1, %v5023_v38 }
  0xd1   :  { %v4923_v6 = vpop.f32.mrf.mxu0  ;;  %v4925_v7 = vpop.permute.xlu0 %1606 }
  0xd2   :  { %6382 = vst [vmem:[#allocation27_spill] sm:$0xff] %v4925_v7  ;;  %1518 = vperm.xlu0 %3883, %v3458_v2   ;;  %1445 = vperm.xlu1 %3884, %v3450_v3   ;;  %v4953_v31 = vpop.permute.xlu1 %1611  ;;  %v415_v39 = vadd.f32 %v5023_v38, %v4923_v6  ;;  %4211 = vtanh.f32 %v423_v15 }
  0xd3   :  { %v4927_v10 = vpop.f32.mrf.mxu0  ;;  %6385 = vst [vmem:[#allocation30_spill] sm:$0xff] %v4953_v31 }
  0xd4   :  { %4213 = vtanh.f32 %v415_v39 }
  0xd5   :  { %v4937_v18 = vpop.f32.mrf.mxu0  ;;  %v4939_v19 = vpop.permute.xlu0 %1380 }
  0xd6   :  { %1287 = vperm.xlu0 %3883, %v3425_v11   ;;  %1111 = vperm.xlu1 %3884, %v3403_v14   ;;  %v4975_v61 = vpop.permute.xlu1 %1385  ;;  %v3453_v11 = vld [vmem:[%s6338_s5 + $0x300] sm:$0xff]  ;;  %v418_v1 = vadd.f32 %v5023_v38, %v4937_v18 }
  0xd7   :  { %v4941_v22 = vpop.f32.mrf.mxu0  ;;  %v3429_v14 = vld [vmem:[%s6338_s5 + $0x240] sm:$0xff] }
  0xd8   :  { %v439_v6 = vadd.f32 %v4941_v22, %v5023_v38  ;;  %v3459_v22 = vld [vmem:[%s6338_s5 + $0x330] sm:$0xff] }
  0xd9   :  { %v4949_v27 = vpop.f32.mrf.mxu0  ;;  %v4951_v30 = vpop.permute.xlu0 %1056 }
  0xda   :  { %6384 = vst [vmem:[#allocation29_spill] sm:$0xff] %v4951_v30  ;;  %1528 = vperm.xlu0 %3883, %v3460_v23   ;;  %890 = vperm.xlu1 %3884, %v812_v26  }
  0xdb   :  { %v4955_v34 = vpop.f32.mrf.mxu0 }
  0xdc   :  { %v442_v18 = vadd.f32 %v4955_v34, %v5023_v38 }
  0xdd   :  { %v4963_v43 = vpop.f32.mrf.mxu0  ;;  %v4965_v52 = vpop.permute.xlu0 %1616 }
  0xde   :  { %1297 = vperm.xlu0 %3883, %v3427_v35   ;;  %1681 = vperm.xlu1 %3884, %v3484_v40   ;;  %v4991_v35 = vpop.permute.xlu1 %1051  ;;  %v434_v39 = vadd.f32 %v5023_v38, %v4963_v43 }
  0xdf   :  { %v4967_v53 = vpop.f32.mrf.mxu0  ;;  %6387 = vst [vmem:[#allocation32_spill] sm:$0xff] %v4991_v35 }
  0xe1   :  { %v446_v62 = vpop.f32.mrf.mxu0  ;;  %v4977_v2 = vpop.permute.xlu0 %1390 }
  0xe2   :  { %1455 = vperm.xlu1 %3884, %v3452_v55   ;;  %1538 = vperm.xlu0 %3883, %v3462_v56   ;;  %v3422_v55 = vld [vmem:[%s6338_s5 + $0x208] sm:$0xff] }
  0xe3   :  { %v4979_v3 = vpop.f32.mrf.mxu0 }
  0xe5   :  { %v4987_v23 = vpop.f32.mrf.mxu0  ;;  %v4989_v26 = vpop.permute.xlu0 %1066 }
  0xe6   :  { %6386 = vst [vmem:[#allocation31_spill] sm:$0xff] %v4989_v26  ;;  %1493 = vperm.xlu1 %3884, %v3453_v11   ;;  %1307 = vperm.xlu0 %3883, %v3429_v14   ;;  %v3455_v11 = vld [vmem:[%s6338_s5 + $0x310] sm:$0xff]  ;;  %v5007_v14 = vpop.permute.xlu1 %1621 }
  0xe7   :  { %v4993_v40 = vpop.f32.mrf.mxu0 }
  0xe9   :  { %v4998_v56 = vpop.f32.mrf.mxu0  ;;  %v5000_v44 = vpop.permute.xlu0 %1626 }
  0xea   :  { %6388 = vst [vmem:[#allocation33_spill] sm:$0xff] %v5000_v44  ;;  %1272 = vperm.xlu1 %3884, %v3422_v55   ;;  %v5027_v48 = vpop.permute.xlu1 %1395 }
  0xeb   :  { %v5002_v45 = vpop.f32.mrf.mxu0 }
  0xed   :  { %v5009_v26 = vpop.f32.mrf.mxu0  ;;  %v5011_v30 = vpop.permute.xlu0 %1400 }
  0xee   :  { %6389 = vst [vmem:[#allocation34_spill] sm:$0xff] %v5011_v30  ;;  %1503 = vperm.xlu1 %3884, %v3455_v11   ;;  %v3457_v11 = vld [vmem:[%s6338_s5 + $0x320] sm:$0xff]  ;;  %v5053_v36 = vpop.permute.xlu1 %1061 }
  0xef   :  { %v5013_v35 = vpop.f32.mrf.mxu0  ;;  %6392 = vst [vmem:[#allocation37_spill] sm:$0xff] %v5053_v36 }
  0xf1   :  { %v5018_v55 = vpop.f32.mrf.mxu0  ;;  %v5025_v47 = vpop.permute.xlu0 %1076 }
  0xf2   :  { %6390 = vst [vmem:[#allocation35_spill] sm:$0xff] %v5025_v47  ;;  %1282 = vperm.xlu1 %3884, %v3424_v41   ;;  %v3838_v41 = vpop.f32.mrf.mxu1  ;;  %v426_v47 = vadd.f32 %v4927_v10, %v5023_v38  ;;  %v431_v10 = vadd.f32 %v5023_v38, %v4949_v27  ;;  %v455_v27 = vadd.f32 %v4967_v53, %v5023_v38  ;;  %v5079_v49 = vpop.permute.xlu1 %1631  ;;  %v3428_v53 = vld [vmem:[%s6338_s5 + $0x238] sm:$0xff] }
  0xf3   :  { %v5029_v63 = vpop.f32.mrf.mxu0  ;;  %6395 = vst [vmem:[#allocation40_spill] sm:$0xff] %v5079_v49 }
  0xf4   :  { %v606_v46 = vpop.f32.mrf.mxu1  ;;  %4215 = vtanh.f32 %v426_v47  ;;  %v447_v47 = vadd.f32 %v5023_v38, %v446_v62  ;;  %v450_v62 = vadd.f32 %v5023_v38, %v4987_v23 }
  0xf5   :  { %v5036_v42 = vpop.f32.mrf.mxu0  ;;  %v5040_v57 = vpop.permute.xlu0 %1636  ;;  %4217 = vtanh.f32 %v418_v1  ;;  %v458_v1 = vadd.f32 %v4979_v3, %v5023_v38  ;;  %v607_v3 = vadd.f32 %v5023_v38, %v606_v46  ;;  %v3430_v46 = vld [vmem:[%s6338_s5 + $0x248] sm:$0xff] }
  0xf6   :  { %6391 = vst [vmem:[#allocation36_spill] sm:$0xff] %v5040_v57  ;;  %1513 = vperm.xlu1 %3884, %v3457_v11   ;;  %4219 = vtanh.f32 %v439_v6  ;;  %v3839_v36 = vpop.f32.mrf.mxu1  ;;  %v615_v6 = vadd.f32 %v3838_v41, %v5023_v38  ;;  %v3461_v41 = vld [vmem:[%s6338_s5 + $0x340] sm:$0xff] }
  0xf7   :  { %v5044_v54 = vpop.f32.mrf.mxu0  ;;  %4221 = vtanh.f32 %v431_v10  ;;  %v618_v23 = vadd.f32 %v3839_v36, %v5023_v38  ;;  %v4079_v36 = vld [vmem:[%s6342_s3 + $0x78] sm:$0xff]  }
  0xf8   :  { %4223 = vtanh.f32 %v442_v18  ;;  %3644 = vmatprep.subr.bf16.mxu1 %v4079_v36 }
  0xf9   :  { %v5055_v11 = vpop.f32.mrf.mxu0  ;;  %v5059_v44 = vpop.permute.xlu0 %1410  ;;  %4225 = vtanh.f32 %v434_v39 }
  0xfa   :  { %6393 = vst [vmem:[#allocation38_spill] sm:$0xff] %v5059_v44  ;;  %1292 = vperm.xlu1 %3884, %v3426_v37   ;;  %4227 = vtanh.f32 %v455_v27 }
  0xfb   :  { %v5063_v15 = vpop.f32.mrf.mxu0  ;;  %4229 = vtanh.f32 %v447_v47  ;;  %v5102_v47 = vpop.permute.xlu1 %1405 }
  0xfc   :  { %4231 = vtanh.f32 %v458_v1  ;;  %6397 = vst [vmem:[#allocation42_spill] sm:$0xff] %v5102_v47  ;;  %v5110_v1 = vpop.eup %4211 }
  0xfd   :  { %v5072_v37 = vpop.f32.mrf.mxu0  ;;  %v5075_v34 = vpop.permute.xlu0 %1086  ;;  %4233 = vtanh.f32 %v615_v6 }
  0xfe   :  { %6394 = vst [vmem:[#allocation39_spill] sm:$0xff] %v5075_v34  ;;  %1523 = vperm.xlu1 %3884, %v3459_v22   ;;  %v609_v22 = vpop.f32.mrf.mxu1  ;;  %v471_v34 = vadd.f32 %v4993_v40, %v5023_v38  ;;  %4235 = vtanh.f32 %v450_v62  ;;  %v5117_v6 = vpop.eup %4213  ;;  %v474_v62 = vadd.f32 %v5002_v45, %v5023_v38 }
  0xff   :  { %v5081_v43 = vpop.f32.mrf.mxu0  ;;  %v610_v40 = vadd.f32 %v5023_v38, %v609_v22  ;;  %4237 = vtanh.f32 %v607_v3  ;;  %v4080_v22 = vld [vmem:[%s6342_s3 + $0x38] sm:$0xff]  }
 0x100   :  { %v3842_v27 = vpop.f32.mrf.mxu1  ;;  %4239 = vtanh.f32 %v471_v34  ;;  %v487_v34 = vadd.f32 %v5013_v35, %v5023_v38  ;;  %3645 = vmatpush3.bf16.msra.mxu1 %v4080_v22  ;;  %v5146_v35 = vpop.permute.xlu1 %1071 }
 0x101   :  { %v5089_v10 = vpop.f32.mrf.mxu0  ;;  %v5091_v18 = vpop.permute.xlu0 %855  ;;  %4241 = vtanh.f32 %v618_v23  ;;  %v631_v3 = vadd.f32 %v3842_v27, %v5023_v38  ;;  %v4082_v23 = vld [vmem:[%s6342_s3 + $0x30] sm:$0xff]   ;;  %6400 = vst [vmem:[#allocation45_spill] sm:$0xff] %v5146_v35  ;;  %3646 = vmatprep.subr.bf16.mxu1 %v4081_v58  ;;  %v4083_v58 = vld [vmem:[%s6342_s3 + $0x68] sm:$0xff]  }
 0x102   :  { %6396 = vst [vmem:[#allocation41_spill] sm:$0xff] %v5091_v18  ;;  %1302 = vperm.xlu1 %3884, %v3428_v53   ;;  %v5124_v28 = vpop.eup %4215  ;;  %4243 = vtanh.f32 %v610_v40 }
 0x103   :  { %v5096_v39 = vpop.f32.mrf.mxu0  ;;  %v5128_v29 = vpop.eup %4217 }
 0x104   :  { %v5137_v0 = vpop.eup %4219  ;;  %3647 = vmatpush3.bf16.msra.mxu1 %v4082_v23 }
 0x105   :  { %v5104_v53 = vpop.f32.mrf.mxu0  ;;  %v5112_v18 = vpop.permute.xlu0 %1646  ;;  %3648 = vmatprep.subr.bf16.mxu1 %v4083_v58 }
 0x106   :  { %6398 = vst [vmem:[#allocation43_spill] sm:$0xff] %v5112_v18  ;;  %1533 = vperm.xlu1 %3884, %v3461_v41   ;;  %v622_v18 = vpop.f32.mrf.mxu1  ;;  %v5144_v27 = vpop.eup %4221 }
 0x107   :  { %v3818_v49 = vpop.f32.mrf.mxu0  ;;  %v623_v36 = vadd.f32 %v5023_v38, %v622_v18  ;;  %v5149_v22 = vpop.eup %4223 }
 0x108   :  { %v535_v41 = vadd.f32 %v3818_v49, %v5023_v38  ;;  %v5154_v57 = vpop.eup %4225 }
 0x109   :  { %v5132_v45 = vpop.f32.mrf.mxu0  ;;  %v5139_v49 = vpop.permute.xlu0 %1420 }
 0x10a   :  { %4245 = vtanh.f32 %v535_v41  ;;  %6399 = vst [vmem:[#allocation44_spill] sm:$0xff] %v5139_v49  ;;  %1312 = vperm.xlu1 %3884, %v3430_v46   ;;  %v479_v41 = vadd.f32 %v5023_v38, %v5018_v55  ;;  %v3843_v49 = vpop.f32.mrf.mxu1  ;;  %v4084_v55 = vld [vmem:[%s6342_s3 + $0x28] sm:$0xff]   ;;  %v5166_v18 = vpop.eup %4227 }
 0x10b   :  { %4247 = vtanh.f32 %v474_v62  ;;  %v3819_v40 = vpop.f32.mrf.mxu0  ;;  %v490_v62 = vadd.f32 %v5029_v63, %v5023_v38  ;;  %v482_v63 = vadd.f32 %v5023_v38, %v5036_v42  ;;  %3649 = vmatpush3.bf16.msra.mxu1 %v4084_v55  ;;  %v4085_v42 = vld [vmem:[%s6342_s3 + $0x60] sm:$0xff]  }
 0x10c   :  { %v538_v46 = vadd.f32 %v3819_v40, %v5023_v38  ;;  %4249 = vtanh.f32 %v631_v3  ;;  %v625_v21 = vpop.f32.mrf.mxu1  ;;  %3650 = vmatprep.subr.bf16.mxu1 %v4085_v42  ;;  %v4088_v42 = vld [vmem:[%s6342_s3 + $0x18] sm:$0xff]  }
 0x10d   :  { %4251 = vtanh.f32 %v487_v34  ;;  %v5158_v35 = vpop.f32.mrf.mxu0  ;;  %v5168_v3 = vpop.permute.xlu0 %1096 }
 0x10e   :  { %6401 = vst [vmem:[#allocation46_spill] sm:$0xff] %v5158_v35  ;;  %4253 = vtanh.f32 %v538_v46  ;;  %6402 = vst [vmem:[#allocation47_spill] sm:$0xff] %v5168_v3  ;;  %v5170_v34 = vpop.eup %4229  ;;  %v5179_v46 = vpop.permute.xlu1 %1641  ;;  %v503_v3 = vadd.f32 %v5044_v54, %v5023_v38  ;;  %v495_v54 = vadd.f32 %v5023_v38, %v5055_v11  ;;  %v4087_v11 = vld [vmem:[%s6342_s3 + $0x58] sm:$0xff]  }
 0x10f   :  { %v3822_v40 = vpop.f32.mrf.mxu0  ;;  %4255 = vtanh.f32 %v623_v36  ;;  %v5174_v23 = vpop.eup %4231  ;;  %6403 = vst [vmem:[#allocation48_spill] sm:$0xff] %v5179_v46  ;;  %v4086_v36 = vld [vmem:[%s6342_s3 + $0x20] sm:$0xff]  }
 0x110   :  { %4257 = vtanh.f32 %v479_v41  ;;  %v551_v44 = vadd.f32 %v3822_v40, %v5023_v38  ;;  %v5177_v20 = vpop.eup %4233  ;;  %v5198_v46 = vpop.f32.mrf.mxu1  ;;  %3651 = vmatpush3.bf16.msra.mxu1 %v4086_v36  ;;  %v498_v36 = vadd.f32 %v5023_v38, %v5072_v37  ;;  %v4089_v37 = vld [vmem:[%s6342_s3 + $0x50] sm:$0xff]  }
 0x111   :  { %4259 = vtanh.f32 %v490_v62  ;;  %v542_v47 = vpop.f32.mrf.mxu0  ;;  %v5189_v41 = vpop.eup %4235  ;;  %3652 = vmatprep.subr.bf16.mxu1 %v4087_v11 }
 0x112   :  { %6404 = vst [vmem:[#allocation49_spill] sm:$0xff] %v5189_v41  ;;  %4261 = vtanh.f32 %v551_v44  ;;  %v543_v62 = vadd.f32 %v5023_v38, %v542_v47  ;;  %v5192_v58 = vpop.permute.xlu0 %865  ;;  %v5194_v40 = vpop.eup %4237  ;;  %v506_v44 = vadd.f32 %v5063_v15, %v5023_v38  ;;  %v634_v15 = vadd.f32 %v3843_v49, %v5023_v38 }
 0x113   :  { %6405 = vst [vmem:[#allocation50_spill] sm:$0xff] %v5192_v58  ;;  %4263 = vtanh.f32 %v482_v63  ;;  %v3823_v55 = vpop.f32.mrf.mxu0  ;;  %v4240_v30 = vpop.eup %4239 }
 0x114   :  { %4265 = vtanh.f32 %v543_v62  ;;  %v554_v7 = vadd.f32 %v3823_v55, %v5023_v38  ;;  %v5201_v31 = vpop.eup %4241  ;;  %v5205_v47 = vpop.permute.xlu1 %3886  ;;  %3653 = vmatpush3.bf16.msra.mxu1 %v4088_v42 }
 0x115   :  { %4267 = vtanh.f32 %v503_v3  ;;  %6406 = vst [vmem:[#allocation51_spill] sm:$0xff] %v5205_v47  ;;  %v545_v63 = vpop.f32.mrf.mxu0  ;;  %v5213_v62 = vpop.eup %4243  ;;  %3654 = vmatprep.subr.bf16.mxu1 %v4089_v37 }
 0x116   :  { %4269 = vtanh.f32 %v554_v7  ;;  %v546_v3 = vadd.f32 %v5023_v38, %v545_v63  ;;  %v5216_v55 = vpop.permute.xlu0 %1656  ;;  %v638_v25 = vpop.f32.mrf.mxu1 }
 0x117   :  { %6407 = vst [vmem:[#allocation52_spill] sm:$0xff] %v5216_v55  ;;  %v4246_v58 = vpop.eup %4245  ;;  %4271 = vtanh.f32 %v495_v54  ;;  %v3826_v47 = vpop.f32.mrf.mxu0  ;;  %v4090_v54 = vld [vmem:[%s6342_s3 + $0x10] sm:$0xff]  }
 0x118   :  { %v4248_v24 = vpop.eup %4247  ;;  %v5221_v12 = vadd.f32 %v4246_v58, %v4240_v30  ;;  %4273 = vtanh.f32 %v546_v3  ;;  %v5225_v7 = vpop.permute.xlu1 %3891  ;;  %v567_v63 = vadd.f32 %v3826_v47, %v5023_v38  ;;  %v626_v47 = vadd.f32 %v5023_v38, %v625_v21  ;;  %3655 = vmatpush3.bf16.msra.mxu1 %v4090_v54  ;;  %v4091_v21 = vld [vmem:[%s6342_s3 + $0x48] sm:$0xff]  }
 0x119   :  { %v5223_v35 = vpop.eup %4249  ;;  %4275 = vtanh.f32 %v506_v44  ;;  %6409 = vst [vmem:[#allocation54_spill] sm:$0xff] %v5225_v7  ;;  %v558_v49 = vpop.f32.mrf.mxu0  ;;  %v519_v54 = vadd.f32 %v5081_v43, %v5023_v38  ;;  %3656 = vmatprep.subr.bf16.mxu1 %v4091_v21 }
 0x11a   :  { %6408 = vst [vmem:[#allocation53_spill] sm:$0xff] %v5221_v12  ;;  %v4252_v30 = vpop.eup %4251  ;;  %v559_v58 = vadd.f32 %v5023_v38, %v558_v49  ;;  %v5235_v11 = vpop.permute.xlu0 %1430  ;;  %4277 = vtanh.f32 %v634_v15  ;;  %v5244_v49 = vmul.f32 0.0, %v4773_v51 }
 0x11b   :  { %6410 = vst [vmem:[#allocation55_spill] sm:$0xff] %v5235_v11  ;;  %v4254_v44 = vpop.eup %4253  ;;  %4279 = vtanh.f32 %v498_v36  ;;  %v3827_v3 = vpop.f32.mrf.mxu0  ;;  %v639_v36 = vadd.f32 %v5023_v38, %v638_v25 }
 0x11c   :  { %v3847_v42 = vpop.f32.mrf.mxu1  ;;  %v5238_v7 = vpop.eup %4255  ;;  %v5240_v55 = vadd.f32 %v4254_v44, %v4248_v24  ;;  %4281 = vtanh.f32 %v559_v58  ;;  %v570_v12 = vadd.f32 %v3827_v3, %v5023_v38  ;;  %v4092_v24 = vld [vmem:[%s6342_s3 + $0x8] sm:$0xff]   ;;  %v735_v58 = vadd.f32 %v4252_v30, %v5110_v1 }
 0x11d   :  { %v4258_v41 = vpop.eup %4257  ;;  %4283 = vtanh.f32 %v567_v63  ;;  %v561_v15 = vpop.f32.mrf.mxu0  ;;  %v650_v44 = vadd.f32 %v3847_v42, %v5023_v38  ;;  %v511_v1 = vadd.f32 %v5023_v38, %v5089_v10  ;;  %3657 = vmatpush3.bf16.msra.mxu1 %v4092_v24  ;;  %v4093_v10 = vld [vmem:[%s6342_s3 + $0x40] sm:$0xff]  }
 0x11e   :  { %6411 = vst [vmem:[#allocation56_spill] sm:$0xff] %v5240_v55  ;;  %v5246_v11 = vpop.permute.xlu1 %1415  ;;  %v4260_v37 = vpop.eup %4259  ;;  %4285 = vtanh.f32 %v570_v12  ;;  %v562_v51 = vadd.f32 %v5023_v38, %v561_v15  ;;  %3658 = vmatprep.subr.bf16.mxu1 %v4093_v10 }
 0x11f   :  { %6412 = vst [vmem:[#allocation57_spill] sm:$0xff] %v5246_v11  ;;  %v5257_v63 = vpop.permute.xlu0 %1106  ;;  %v4262_v25 = vpop.eup %4261  ;;  %4287 = vtanh.f32 %v626_v47  ;;  %v733_v11 = vadd.f32 %v4258_v41, %v5117_v6  ;;  %v736_v43 = vadd.f32 %v4260_v37, %v5124_v28  ;;  %v4094_v6 = vld [vmem:[%s6342_s3] sm:$0xff]  }
 0x120   :  { %6413 = vst [vmem:[#allocation58_spill] sm:$0xff] %v5257_v63  ;;  %v3830_v3 = vpop.f32.mrf.mxu0  ;;  %v4264_v55 = vpop.eup %4263  ;;  %v751_v12 = vadd.f32 %v4262_v25, %v735_v58  ;;  %4289 = vtanh.f32 %v562_v51 }
 0x121   :  { %v4266_v30 = vpop.eup %4265  ;;  %4291 = vtanh.f32 %v639_v36  ;;  %v522_v36 = vadd.f32 %v5096_v39, %v5023_v38  ;;  %v734_v37 = vadd.f32 %v4264_v55, %v5128_v29  ;;  %3659 = vmatpush3.bf16.msra.mxu1 %v4094_v6 }
 0x122   :  { %v574_v15 = vpop.f32.mrf.mxu0  ;;  %v5265_v63 = vpop.permute.xlu1 %1081  ;;  %v749_v47 = vadd.f32 %v4266_v30, %v733_v11  ;;  %4293 = vtanh.f32 %v650_v44  ;;  %v767_v28 = vadd.f32 %v5177_v20, %v751_v12  ;;  %v514_v30 = vadd.f32 %v5023_v38, %v5104_v53 }
 0x123   :  { %v4268_v42 = vpop.eup %4267  ;;  %v575_v21 = vadd.f32 %v5023_v38, %v574_v15  ;;  %v5269_v13 = vpop.permute.xlu0 %875  ;;  %4295 = vtanh.f32 %v519_v54  ;;  %v647_v53 = vadd.f32 %v5198_v46, %v5023_v38 }
 0x124   :  { %v4270_v41 = vpop.eup %4269  ;;  %v3831_v11 = vpop.f32.mrf.mxu0  ;;  %4297 = vtanh.f32 %v511_v1  ;;  %v765_v58 = vadd.f32 %v5194_v40, %v749_v47  ;;  %v5292_v15 = vmul.f32 0.25, %v767_v28 }
 0x125   :  { %v4272_v24 = vpop.eup %4271  ;;  %v752_v51 = vadd.f32 %v4270_v41, %v736_v43  ;;  %v641_v44 = vpop.f32.mrf.mxu1  ;;  %4299 = vtanh.f32 %v575_v21  ;;  %v586_v55 = vadd.f32 %v3831_v11, %v5023_v38  ;;  %v583_v41 = vadd.f32 %v3830_v3, %v5023_v38 }
 0x126   :  { %v4274_v25 = vpop.eup %4273  ;;  %v5284_v54 = vpop.permute.xlu1 %860  ;;  %v5286_v20 = vmul.f32 0.25, %v765_v58  ;;  %4301 = vtanh.f32 %v522_v36  ;;  %v642_v47 = vadd.f32 %v5023_v38, %v641_v44  ;;  %v737_v10 = vadd.f32 %v4272_v24, %v5144_v27 }
 0x127   :  { %v4276_v39 = vpop.eup %4275  ;;  %v768_v12 = vadd.f32 %v5201_v31, %v752_v51  ;;  %v750_v29 = vadd.f32 %v4274_v25, %v734_v37  ;;  %v5290_v40 = vpop.permute.xlu0 %1666  ;;  %v739_v36 = vadd.f32 %v4268_v42, %v5137_v0  ;;  %4303 = vtanh.f32 %v514_v30 }
 0x128   :  { %v4278_v1 = vpop.eup %4277  ;;  %v577_v43 = vpop.f32.mrf.mxu0  ;;  %v740_v28 = vadd.f32 %v4276_v39, %v5149_v22  ;;  %v1233_v46 = vmul.f32 %v4771_v50, %v5286_v20  ;;  %4305 = vtanh.f32 %v586_v55  ;;  %v1012_v42 = vmul.f32 %v4825_v17, %v5292_v15 }
 0x129   :  { %v4280_v21 = vpop.eup %4279  ;;  %v5298_v6 = vmul.f32 0.25, %v768_v12  ;;  %v766_v31 = vadd.f32 %v5213_v62, %v750_v29  ;;  %v578_v62 = vadd.f32 %v5023_v38, %v577_v43  ;;  %4307 = vtanh.f32 %v583_v41 }
 0x12a   :  { %v4282_v11 = vpop.eup %4281  ;;  %v5304_v37 = vpop.permute.xlu1 %1651  ;;  %v738_v0 = vadd.f32 %v4280_v21, %v5154_v57  ;;  %v3895_v22 = vpack.i.bf16 %v1233_v46, %v5244_v49  ;;  %v1235_v39 = vmul.f32 %v4781_v59, %v5292_v15  ;;  %v3485_v59 = vld [vmem:[%s6338_s5 + $0x400] sm:$0xff]  ;;  %v1010_v21 = vmul.f32 %v4805_v9, %v5286_v20 }
 0x12b   :  { %v4284_v58 = vpop.eup %4283  ;;  %v5308_v51 = vmul.f32 0.25, %v766_v31  ;;  %v753_v27 = vadd.f32 %v4282_v11, %v737_v10  ;;  %v5311_v24 = vpop.permute.xlu0 %1440  ;;  %v1013_v50 = vmul.f32 %v4823_v16, %v5298_v6  ;;  %4309 = vtanh.f32 %v578_v62 }
 0x12c   :  { %v4286_v3 = vpop.eup %4285  ;;  %v755_v29 = vadd.f32 %v4284_v58, %v739_v36  ;;  %3896 = vrot.lane.b32.xlu0 %v3895_v22, %s4374_s24  ;;  %v5347_v11 = vpop.f32.mrf.mxu0  ;;  %4311 = vtanh.f32 %v647_v53 }
 0x12d   :  { %v4288_v44 = vpop.eup %4287  ;;  %v769_v25 = vadd.f32 %v5238_v7, %v753_v27  ;;  %v756_v30 = vadd.f32 %v4286_v3, %v740_v28  ;;  %v3900_v49 = vpack.i.bf16 %v1013_v50, %v1012_v42  ;;  %v1011_v17 = vmul.f32 %v4803_v8, %v5308_v51  ;;  %v5353_v58 = vpop.f32.mrf.mxu1 }
 0x12e   :  { %v4290_v12 = vpop.eup %4289  ;;  %v5323_v57 = vpop.permute.xlu1 %1425  ;;  %v1234_v16 = vmul.f32 %v4783_v60, %v5308_v51  ;;  %v1459_v8 = vmul.f32 %v4975_v61, %v5292_v15  ;;  %v4095_v60 = vld [vmem:[%s6342_s3 + $0xf8] sm:$0xff]   ;;  %v1458_v28 = vmul.f32 %v4939_v19, %v5308_v51  ;;  %v771_v61 = vadd.f32 %v5223_v35, %v755_v29 }
 0x12f   :  { %v5329_v55 = vpop.eup %4291  ;;  %v5331_v7 = vmul.f32 0.25, %v769_v25  ;;  %v5333_v43 = vpop.permute.xlu0 %1116  ;;  %v772_v31 = vadd.f32 %v4278_v1, %v756_v30  ;;  %v754_v41 = vadd.f32 %v4290_v12, %v738_v0  ;;  %3901 = vrot.lane.b32.xlu1 %v3900_v49, %s4374_s24  ;;  %3708 = vmatprep.subr.bf16.mxu1 %v4095_v60  ;;  %v3910_v1 = vpack.i.bf16 %v1011_v17, %v1010_v21  ;;  %v4097_v19 = vld [vmem:[%s6342_s3 + $0x118] sm:$0xff]  }
 0x130   :  { %v5345_v10 = vpop.eup %4293  ;;  %v3905_v36 = vpack.i.bf16 %v1235_v39, %v1234_v16  ;;  %1719 = vperm.xlu0 %3883, %v3485_v59   ;;  %v3915_v62 = vpack.i.bf16 %v1459_v8, %v1458_v28  ;;  %v463_v0 = vadd.f32 %v5023_v38, %v4998_v56  ;;  %4313 = vtanh.f32 %v642_v47  ;;  %v590_v42 = vpop.f32.mrf.mxu0  ;;  %3852 = vmatprep.subr.bf16.mxu0 %v4097_v19 }
 0x131   :  { %v4296_v9 = vpop.eup %4295  ;;  %v5364_v35 = vmul.f32 0.25, %v772_v31  ;;  %v770_v53 = vadd.f32 %v4288_v44, %v754_v41  ;;  %v1237_v50 = vmul.f32 %v4792_v4, %v5331_v7  ;;  %v527_v56 = vadd.f32 %v5023_v38, %v5132_v45  ;;  %v654_v12 = vpop.f32.mrf.mxu1  ;;  %3853 = vmatpush3.bf16.msra.mxu0 %v4097_v19 }
 0x132   :  { %v4298_v46 = vpop.eup %4297  ;;  %v5355_v27 = vpop.permute.xlu1 %1091  ;;  %v466_v47 = vadd.f32 %v5023_v38, %v5009_v26  ;;  %v5374_v39 = vmul.f32 0.25, %v771_v61  ;;  %v1236_v4 = vmul.f32 %v4794_v5, %v5298_v6  ;;  %4315 = vtanh.f32 %v463_v0 }
 0x133   :  { %v4300_v3 = vpop.eup %4299  ;;  %v5359_v22 = vpop.permute.xlu0 %885  ;;  %3911 = vrot.lane.b32.xlu1 %v3910_v1, %s4374_s24  ;;  %v741_v30 = vadd.f32 %v4298_v46, %v5170_v34  ;;  %v1461_v34 = vmul.f32 %v5027_v48, %v5331_v7  ;;  %v591_v49 = vadd.f32 %v5023_v38, %v590_v42  ;;  %v5386_v16 = vmul.f32 0.25, %v770_v53  ;;  %v6415_v53 = vld [vmem:[#allocation49_spill] sm:$0xff]  ;;  %v6416_v42 = vld [vmem:[#allocation46_spill] sm:$0xff] }
 0x134   :  { %v4302_v25 = vpop.eup %4301  ;;  %3906 = vrot.lane.b32.xlu0 %v3905_v36, %s4374_s24  ;;  %v5388_v59 = vpop.f32.mrf.mxu0  ;;  %v3920_v21 = vpack.i.bf16 %v1237_v50, %v1236_v4  ;;  %v1460_v5 = vmul.f32 %v4977_v2, %v5298_v6  ;;  %v1687_v48 = vmul.f32 %v5007_v14, %v5364_v35  ;;  %4317 = vtanh.f32 %v527_v56 }
 0x135   :  { %v4304_v29 = vpop.eup %4303  ;;  %v757_v45 = vadd.f32 %v4300_v3, %v741_v30  ;;  %v744_v8 = vadd.f32 %v4302_v25, %v5174_v23  ;;  %v655_v60 = vadd.f32 %v5023_v38, %v654_v12  ;;  %4319 = vtanh.f32 %v466_v47  ;;  %v5408_v3 = vpop.f32.mrf.mxu1  ;;  %v6417_v30 = vld [vmem:[#allocation10_spill] sm:$0xff] }
 0x136   :  { %v5377_v44 = vpop.permute.xlu1 %870  ;;  %v4306_v26 = vpop.eup %4305  ;;  %v3925_v36 = vpack.i.bf16 %v1461_v34, %v1460_v5  ;;  %v1686_v28 = vmul.f32 %v4965_v52, %v5374_v39  ;;  %v1017_v2 = vmul.f32 %v4863_v32, %v5364_v35  ;;  %4321 = vtanh.f32 %v591_v49  ;;  %v6414_v32 = vld [vmem:[#allocation11_spill] sm:$0xff] }
 0x137   :  { %v5384_v17 = vpop.permute.xlu0 %1676  ;;  %3916 = vrot.lane.b32.xlu1 %v3915_v62, %s4374_s24  ;;  %v4308_v31 = vpop.eup %4307  ;;  %v760_v46 = vadd.f32 %v4306_v26, %v744_v8  ;;  %v773_v14 = vadd.f32 %v5329_v55, %v757_v45  ;;  %v743_v1 = vadd.f32 %v4296_v9, %v5166_v18  ;;  %v1016_v52 = vmul.f32 %v4865_v33, %v5374_v39  ;;  %v6418_v33 = vld [vmem:[#allocation14_spill] sm:$0xff]  ;;  %v6419_v8 = vld [vmem:[#allocation15_spill] sm:$0xff] }
 0x138   :  { %3921 = vrot.lane.b32.xlu0 %v3920_v21, %s4374_s24  ;;  %v4310_v61 = vpop.eup %4309  ;;  %v593_v62 = vpop.f32.mrf.mxu0  ;;  %v3935_v0 = vpack.i.bf16 %v1687_v48, %v1686_v28  ;;  %v1238_v19 = vmul.f32 %v6414_v32, %v5386_v16  ;;  %v742_v55 = vadd.f32 %v4304_v29, %v6415_v53  ;;  %v530_v50 = vadd.f32 %v5023_v38, %v6416_v42  ;;  %v6423_v42 = vld [vmem:[#allocation42_spill] sm:$0xff] }
 0x139   :  { %4323 = vtanh.f32 %v655_v60  ;;  %v759_v25 = vadd.f32 %v4308_v31, %v743_v1  ;;  %v3930_v9 = vpack.i.bf16 %v1017_v2, %v1016_v52  ;;  %v1239_v56 = vmul.f32 %v6417_v30, %v5374_v39  ;;  %v4312_v12 = vpop.eup %4311  ;;  %v657_v21 = vpop.f32.mrf.mxu1  ;;  %v6420_v31 = vld [vmem:[#allocation30_spill] sm:$0xff] }
 0x13a   :  { %v5398_v41 = vpop.permute.xlu1 %1661  ;;  %v1015_v47 = vmul.f32 %v6418_v33, %v5386_v16  ;;  %v5425_v4 = vmul.f32 0.25, %v773_v14  ;;  %v758_v34 = vadd.f32 %v4310_v61, %v742_v55  ;;  %v776_v29 = vadd.f32 %v5345_v10, %v760_v46  ;;  %v6421_v14 = vld [vmem:[#allocation27_spill] sm:$0xff]  ;;  %v6422_v1 = vld [vmem:[#allocation34_spill] sm:$0xff] }
 0x13b   :  { %v5405_v23 = vpop.permute.xlu0 %1450  ;;  %3926 = vrot.lane.b32.xlu1 %v3925_v36, %s4374_s24  ;;  %v594_v45 = vadd.f32 %v5023_v38, %v593_v62  ;;  %v3940_v48 = vpack.i.bf16 %v1239_v56, %v1238_v19  ;;  %v1014_v60 = vmul.f32 %v6419_v8, %v5331_v7  ;;  %v1685_v36 = vmul.f32 %v6420_v31, %v5386_v16  ;;  %v6427_v8 = vld [vmem:[#allocation38_spill] sm:$0xff]  ;;  %v6428_v31 = vld [vmem:[#allocation48_spill] sm:$0xff] }
 0x13c   :  { %3936 = vrot.lane.b32.xlu0 %v3935_v0, %s4374_s24  ;;  %4325 = vtanh.f32 %v530_v50  ;;  %v599_v10 = vadd.f32 %v5347_v11, %v5023_v38  ;;  %v775_v28 = vadd.f32 %v4312_v12, %v759_v25  ;;  %v1684_v61 = vmul.f32 %v6421_v14, %v5331_v7  ;;  %v6424_v25 = vld [vmem:[#allocation12_spill] sm:$0xff] }
 0x13d   :  { %v4314_v26 = vpop.eup %4313  ;;  %v3945_v46 = vpack.i.bf16 %v1015_v47, %v1014_v60  ;;  %v1462_v62 = vmul.f32 %v6422_v1, %v5386_v16  ;;  %v5446_v0 = vmul.f32 0.25, %v776_v29  ;;  %4327 = vtanh.f32 %v594_v45  ;;  %v6426_v45 = vld [vmem:[#allocation57_spill] sm:$0xff] }
 0x13e   :  { %v5419_v18 = vpop.permute.xlu1 %1435  ;;  %v774_v52 = vadd.f32 %v4314_v26, %v758_v34  ;;  %v658_v32 = vadd.f32 %v5023_v38, %v657_v21  ;;  %v3950_v55 = vpack.i.bf16 %v1685_v36, %v1684_v61  ;;  %v1463_v50 = vmul.f32 %v6423_v42, %v5374_v39  ;;  %v6425_v34 = vld [vmem:[#allocation13_spill] sm:$0xff]  ;;  %v6429_v61 = vld [vmem:[#allocation36_spill] sm:$0xff] }
 0x13f   :  { %v1499_v49 = vpop.permute.xlu0 %1498  ;;  %3931 = vrot.lane.b32.xlu1 %v3930_v9, %s4374_s24  ;;  %v4316_v11 = vpop.eup %4315  ;;  %v1241_v9 = vmul.f32 %v6424_v25, %v5425_v4  ;;  %4329 = vtanh.f32 %v599_v10  ;;  %v663_v30 = vadd.f32 %v5353_v58, %v5023_v38  ;;  %v5459_v33 = vmul.f32 0.25, %v775_v28 }
 0x140   :  { %v5430_v5 = vmul.f32 %v1499_v49, %v5331_v7  ;;  %3941 = vrot.lane.b32.xlu0 %v3940_v48, %s4374_s24  ;;  %v3955_v12 = vpack.i.bf16 %v1463_v50, %v1462_v62  ;;  %v1240_v29 = vmul.f32 %v6425_v34, %v5364_v35  ;;  %v1465_v49 = vmul.f32 %v6426_v45, %v5425_v4  ;;  %v6430_v62 = vld [vmem:[#allocation26_spill] sm:$0xff]  ;;  %v6431_v50 = vld [vmem:[#allocation24_spill] sm:$0xff] }
 0x141   :  { %v4318_v56 = vpop.eup %4317  ;;  %4331 = vtanh.f32 %v658_v32  ;;  %v5470_v38 = vmul.f32 0.25, %v774_v52  ;;  %v1464_v60 = vmul.f32 %v6427_v8, %v5364_v35  ;;  %v1691_v36 = vmul.f32 %v6428_v31, %v5446_v0 }
 0x142   :  { %v5440_v2 = vpop.permute.xlu1 %1101  ;;  %v4320_v26 = vpop.eup %4319  ;;  %v3960_v58 = vpack.i.bf16 %v1241_v9, %v1240_v29  ;;  %v745_v10 = vadd.f32 %v4318_v56, %v4316_v11  ;;  %4333 = vtanh.f32 %v663_v30  ;;  %v1690_v1 = vmul.f32 %v6429_v61, %v5459_v33  ;;  %v6432_v9 = vld [vmem:[#allocation17_spill] sm:$0xff]  ;;  %v6433_v29 = vld [vmem:[#allocation16_spill] sm:$0xff] }
 0x143   :  { %v1268_v19 = vpop.permute.xlu0 %1267  ;;  %3946 = vrot.lane.b32.xlu1 %v3945_v46, %s4374_s24  ;;  %v4322_v48 = vpop.eup %4321  ;;  %v3965_v14 = vpack.i.bf16 %v1465_v49, %v1464_v60  ;;  %v1021_v52 = vmul.f32 %v6430_v62, %v5446_v0  ;;  %v1020_v25 = vmul.f32 %v6431_v50, %v5459_v33  ;;  %v1242_v30 = vmul.f32 %v6432_v9, %v5470_v38  ;;  %v6434_v49 = vld [vmem:[#allocation21_spill] sm:$0xff] }
 0x144   :  { %v5450_v53 = vmul.f32 %v1268_v19, %v5286_v20  ;;  %3951 = vrot.lane.b32.xlu0 %v3950_v55, %s4374_s24  ;;  %v761_v32 = vadd.f32 %v4322_v48, %v745_v10  ;;  %v4104_v55 = vld [vmem:[%s6342_s3 + $0x110] sm:$0xff]   ;;  %v3975_v42 = vpack.i.bf16 %v1691_v36, %v1690_v1  ;;  %v1243_v45 = vmul.f32 %v6433_v29, %v5459_v33  ;;  %v6438_v29 = vld [vmem:[#allocation33_spill] sm:$0xff] }
 0x145   :  { %3854 = vmatprep.subr.bf16.mxu0 %v4104_v55  ;;  %v3970_v34 = vpack.i.bf16 %v1021_v52, %v1020_v25  ;;  %v1019_v48 = vmul.f32 %v6434_v49, %v5470_v38  ;;  %v4107_v49 = vld [vmem:[%s6342_s3 + $0x108] sm:$0xff]  }
 0x146   :  { %v5462_v47 = vpop.permute.xlu1 %880  ;;  %v4324_v28 = vpop.eup %4323  ;;  %3855 = vmatpush3.bf16.msra.mxu0 %v4104_v55  ;;  %v3980_v10 = vpack.i.bf16 %v1243_v45, %v1242_v30  ;;  %v6437_v30 = vld [vmem:[#allocation53_spill] sm:$0xff]  ;;  %v1688_v45 = vmul.f32 %v6438_v29, %v5425_v4  ;;  %v6444_v29 = vld [vmem:[#allocation22_spill] sm:$0xff] }
 0x147   :  { %v5468_v21 = vpop.permute.xlu0 %1508  ;;  %3956 = vrot.lane.b32.xlu1 %v3955_v12, %s4374_s24  ;;  %v777_v36 = vadd.f32 %v4324_v28, %v761_v32  ;;  %v3487_v28 = vld [vmem:[%s6338_s5 + $0x410] sm:$0xff]  ;;  %3856 = vmatprep.subr.bf16.mxu0 %v4107_v49 }
 0x148   :  { %3961 = vrot.lane.b32.xlu0 %v3960_v58, %s4374_s24  ;;  %v4371_v58 = vld [vmem:[%s6341_s2] ss:$0 sm:$0xff] }
 0x149   :  { %v4326_v56 = vpop.eup %4325  ;;  %v602_v8 = vadd.f32 %v4371_v58, %v5388_v59  ;;  %v666_v59 = vadd.f32 %v4371_v58, %v5408_v3  ;;  %v3486_v3 = vld [vmem:[%s6338_s5 + $0x408] sm:$0xff] }
 0x14a   :  { %v5478_v46 = vpop.permute.xlu1 %1671  ;;  %v4328_v31 = vpop.eup %4327  ;;  %v746_v62 = vadd.f32 %v4326_v56, %v4320_v26  ;;  %v6436_v26 = vld [vmem:[#allocation40_spill] sm:$0xff]  ;;  %3857 = vmatpush3.bf16.msra.mxu0 %v4107_v49 }
 0x14b   :  { %v1278_v19 = vpop.permute.xlu0 %1277  ;;  %3966 = vrot.lane.b32.xlu1 %v3965_v14, %s4374_s24  ;;  %v6435_v14 = vld [vmem:[#allocation20_spill] sm:$0xff]  ;;  %4335 = vtanh.f32 %v602_v8  ;;  %v1689_v9 = vmul.f32 %v6436_v26, %v5470_v38 }
 0x14c   :  { %v5488_v11 = vmul.f32 %v1278_v19, %v5292_v15  ;;  %3976 = vrot.lane.b32.xlu0 %v3975_v42, %s4374_s24  ;;  %v1018_v61 = vmul.f32 %v6435_v14, %v5425_v4  ;;  %v4330_v1 = vpop.eup %4329  ;;  %v5518_v42 = vmul.f32 0.25, %v777_v36  ;;  %v762_v50 = vadd.f32 %v4328_v31, %v746_v62  ;;  %v6439_v31 = vld [vmem:[#allocation18_spill] sm:$0xff] }
 0x14d   :  { %v763_v56 = vadd.f32 %v4330_v1, %v6437_v30  ;;  %4337 = vtanh.f32 %v666_v59  ;;  %v3990_v8 = vpack.i.bf16 %v1689_v9, %v1688_v45  ;;  %v6440_v1 = vld [vmem:[#allocation19_spill] sm:$0xff] }
 0x14e   :  { %v5496_v12 = vpop.permute.xlu1 %1445  ;;  %v3985_v19 = vpack.i.bf16 %v1019_v48, %v1018_v61  ;;  %v4332_v32 = vpop.eup %4331  ;;  %v1245_v36 = vmul.f32 %v6439_v31, %v5518_v42  ;;  %v1244_v62 = vmul.f32 %v6440_v1, %v5446_v0  ;;  %v6446_v31 = vld [vmem:[#allocation56_spill] sm:$0xff] }
 0x14f   :  { %v5506_v60 = vpop.permute.xlu0 %1518  ;;  %3971 = vrot.lane.b32.xlu1 %v3970_v34, %s4374_s24  ;;  %v4334_v48 = vpop.eup %4333  ;;  %v778_v58 = vadd.f32 %v4332_v32, %v762_v50  ;;  %v6443_v50 = vld [vmem:[#allocation44_spill] sm:$0xff] }
 0x150   :  { %3981 = vrot.lane.b32.xlu0 %v3980_v10, %s4374_s24  ;;  %v3488_v10 = vld [vmem:[%s6338_s5 + $0x418] sm:$0xff]  ;;  %v779_v14 = vadd.f32 %v4334_v48, %v763_v56  ;;  %v1466_v26 = vmul.f32 %v6443_v50, %v5470_v38  ;;  %v1467_v56 = vmul.f32 %v5323_v57, %v5459_v33  ;;  %v3489_v50 = vld [vmem:[%s6338_s5 + $0x420] sm:$0xff] }
 0x151   :  { %v5550_v59 = vmul.f32 0.25, %v778_v58  ;;  %v6445_v58 = vld [vmem:[#allocation23_spill] sm:$0xff]  ;;  %v3432_v57 = vld [vmem:[%s6338_s5 + $0x258] sm:$0xff] }
 0x152   :  { %v5512_v52 = vpop.permute.xlu1 %1111  ;;  %v5555_v32 = vmul.f32 0.25, %v779_v14  ;;  %v4000_v49 = vpack.i.bf16 %v1467_v56, %v1466_v26 }
 0x153   :  { %v1288_v55 = vpop.permute.xlu0 %1287  ;;  %3986 = vrot.lane.b32.xlu1 %v3985_v19, %s4374_s24  ;;  %v4110_v19 = vld [vmem:[%s6342_s3 + $0x100] sm:$0xff]   ;;  %6441 = vst [vmem:[#allocation11_spill] sm:$0xff] %v5550_v59  ;;  %v1246_v45 = vmul.f32 %v6444_v29, %v5550_v59 }
 0x154   :  { %v5521_v25 = vmul.f32 %v1288_v55, %v5331_v7  ;;  %1729 = vperm.xlu0 %3883, %v3487_v28   ;;  %v3995_v55 = vpack.i.bf16 %v1245_v36, %v1244_v62  ;;  %3858 = vmatprep.subr.bf16.mxu0 %v4110_v19  ;;  %v3463_v28 = vld [vmem:[%s6338_s5 + $0x350] sm:$0xff]  ;;  %6442 = vst [vmem:[#allocation49_spill] sm:$0xff] %v5555_v32  ;;  %v3465_v29 = vld [vmem:[%s6338_s5 + $0x360] sm:$0xff] }
 0x155   :  { %3859 = vmatpush3.bf16.msra.mxu0 %v4110_v19  ;;  %v3431_v19 = vld [vmem:[%s6338_s5 + $0x250] sm:$0xff] }
 0x156   :  { %v5530_v34 = vpop.permute.xlu1 %890 }
 0x157   :  { %1724 = vperm.xlu1 %3884, %v3486_v3   ;;  %v3464_v3 = vld [vmem:[%s6338_s5 + $0x358] sm:$0xff] }
 0x158   :  { %3991 = vrot.lane.b32.xlu0 %v3990_v8, %s4374_s24  ;;  %v4336_v30 = vpop.eup %4335  ;;  %v1247_v8 = vmul.f32 %v6445_v58, %v5555_v32  ;;  %v1469_v58 = vmul.f32 %v5419_v18, %v5518_v42  ;;  %v3434_v18 = vld [vmem:[%s6338_s5 + $0x268] sm:$0xff] }
 0x159   :  { %v764_v36 = vadd.f32 %v4336_v30, %v6446_v31  ;;  %v3491_v30 = vld [vmem:[%s6338_s5 + $0x430] sm:$0xff]  ;;  %v6449_v31 = vld [vmem:[#allocation55_spill] sm:$0xff] }
 0x15a   :  { %v5543_v61 = vpop.permute.xlu1 %1681  ;;  %v4338_v14 = vpop.eup %4337 }
 0x15b   :  { %1734 = vperm.xlu1 %3884, %v3488_v10   ;;  %v4005_v10 = vpack.i.bf16 %v1247_v8, %v1246_v45  ;;  %v6448_v45 = vld [vmem:[#allocation52_spill] sm:$0xff] }
 0x15c   :  { %3996 = vrot.lane.b32.xlu0 %v3995_v55, %s4374_s24  ;;  %v780_v55 = vadd.f32 %v4338_v14, %v764_v36  ;;  %v1468_v36 = vmul.f32 %v6449_v31, %v5446_v0  ;;  %v3466_v14 = vld [vmem:[%s6338_s5 + $0x368] sm:$0xff]  ;;  %v1470_v31 = vmul.f32 %v5311_v24, %v5550_v59 }
 0x15e   :  { %v5560_v9 = vpop.permute.xlu1 %1455  ;;  %v5591_v26 = vmul.f32 0.25, %v780_v55  ;;  %v3493_v55 = vld [vmem:[%s6338_s5 + $0x440] sm:$0xff] }
 0x15f   :  { %1543 = vperm.xlu1 %3884, %v3463_v28   ;;  %v3490_v28 = vld [vmem:[%s6338_s5 + $0x428] sm:$0xff] }
 0x160   :  { %1548 = vperm.xlu0 %3883, %v3464_v3   ;;  %6447 = vst [vmem:[#allocation46_spill] sm:$0xff] %v5591_v26  ;;  %v3492_v3 = vld [vmem:[%s6338_s5 + $0x438] sm:$0xff]  ;;  %v1695_v56 = vmul.f32 %v5398_v41, %v5591_v26  ;;  %v4015_v41 = vpack.i.bf16 %v1469_v58, %v1468_v36  ;;  %v1696_v36 = vmul.f32 0.0, %v5290_v40 }
 0x161   :  { %v3468_v40 = vld [vmem:[%s6338_s5 + $0x378] sm:$0xff] }
 0x162   :  { %v5569_v48 = vpop.permute.xlu1 %1493 }
 0x163   :  { %4001 = vrot.lane.b32.xlu1 %v4000_v49, %s4374_s24  ;;  %v1694_v49 = vmul.f32 %v6448_v45, %v5555_v32 }
 0x164   :  { %4006 = vrot.lane.b32.xlu0 %v4005_v10, %s4374_s24 }
 0x165   :  { %v4010_v8 = vpack.i.bf16 %v1695_v56, %v1694_v49  ;;  %v3467_v56 = vld [vmem:[%s6338_s5 + $0x370] sm:$0xff]  ;;  %v6450_v49 = vld [vmem:[#allocation43_spill] sm:$0xff] }
 0x166   :  { %v1273_v1 = vpop.permute.xlu1 %1272  ;;  %v1692_v58 = vmul.f32 %v6450_v49, %v5518_v42 }
 0x167   :  { %v5580_v62 = vmul.f32 %v1273_v1, %v5308_v51  ;;  %1322 = vperm.xlu1 %3884, %v3432_v57   ;;  %v3433_v1 = vld [vmem:[%s6338_s5 + $0x260] sm:$0xff] }
 0x168   :  { %1317 = vperm.xlu0 %3883, %v3431_v19   ;;  %v3494_v19 = vld [vmem:[%s6338_s5 + $0x448] sm:$0xff] }
 0x16a   :  { %v5610_v10 = vpop.permute.xlu1 %1503 }
 0x16b   :  { %1744 = vperm.xlu1 %3884, %v3490_v28  }
 0x16c   :  { %1739 = vperm.xlu0 %3883, %v3489_v50   ;;  %v3496_v50 = vld [vmem:[%s6338_s5 + $0x458] sm:$0xff] }
 0x16e   :  { %v5620_v57 = vpop.permute.xlu1 %1282 }
 0x16f   :  { %1754 = vperm.xlu1 %3884, %v3492_v3   ;;  %v3495_v3 = vld [vmem:[%s6338_s5 + $0x450] sm:$0xff] }
 0x170   :  { %1749 = vperm.xlu0 %3883, %v3491_v30   ;;  %v1693_v30 = vmul.f32 %v5304_v37, %v5550_v59 }
 0x172   :  { %v5631_v28 = vpop.permute.xlu1 %1513  ;;  %v4020_v37 = vpack.i.bf16 %v1693_v30, %v1692_v58 }
 0x173   :  { %1553 = vperm.xlu1 %3884, %v3465_v29   ;;  %v1471_v29 = vmul.f32 %v5496_v12, %v5555_v32 }
 0x174   :  { %4011 = vrot.lane.b32.xlu0 %v4010_v8, %s4374_s24  ;;  %v1697_v8 = vmul.f32 0.0, %v5478_v46  ;;  %v3436_v46 = vld [vmem:[%s6338_s5 + $0x278] sm:$0xff] }
 0x176   :  { %v5646_v45 = vpop.permute.xlu1 %1292  ;;  %v4025_v12 = vpack.i.bf16 %v1697_v8, %v1696_v36  ;;  %v3499_v8 = vld [vmem:[%s6338_s5 + $0x470] sm:$0xff] }
 0x177   :  { %4016 = vrot.lane.b32.xlu1 %v4015_v41, %s4374_s24  ;;  %v4030_v41 = vpack.i.bf16 %v1471_v29, %v1470_v31  ;;  %v1472_v29 = vmul.f32 %v5405_v23, %v5591_v26  ;;  %v1698_v23 = vmul.f32 0.0, %v5384_v17 }
 0x178   :  { %1558 = vperm.xlu0 %3883, %v3466_v14   ;;  %v5654_v14 = vpop.permute.xlu0 %1528 }
 0x17b   :  { %1332 = vperm.xlu1 %3884, %v3434_v18   ;;  %v5657_v18 = vpop.permute.xlu1 %1523 }
 0x17c   :  { %1327 = vperm.xlu0 %3883, %v3433_v1   ;;  %v5667_v24 = vpop.permute.xlu0 %1297  ;;  %v3498_v1 = vld [vmem:[%s6338_s5 + $0x468] sm:$0xff] }
 0x17f   :  { %1764 = vperm.xlu1 %3884, %v3494_v19   ;;  %v5672_v19 = vpop.permute.xlu1 %1302 }
 0x180   :  { %1759 = vperm.xlu0 %3883, %v3493_v55   ;;  %v3435_v55 = vld [vmem:[%s6338_s5 + $0x270] sm:$0xff]  ;;  %v5681_v30 = vpop.permute.xlu0 %1538 }
 0x181   :  { %6451 = vst [vmem:[#allocation10_spill] sm:$0xff] %v5681_v30 }
 0x183   :  { %1774 = vperm.xlu1 %3884, %v3496_v50   ;;  %v3500_v50 = vld [vmem:[%s6338_s5 + $0x478] sm:$0xff]  ;;  %v5688_v49 = vpop.permute.xlu1 %1533 }
 0x184   :  { %1769 = vperm.xlu0 %3883, %v3495_v3   ;;  %v1473_v3 = vmul.f32 0.0, %v5560_v9  ;;  %6452 = vst [vmem:[#allocation14_spill] sm:$0xff] %v5688_v49  ;;  %v1699_v9 = vmul.f32 0.0, %v5543_v61  ;;  %v5694_v31 = vpop.permute.xlu0 %1307 }
 0x186   :  { %v4040_v58 = vpack.i.bf16 %v1473_v3, %v1472_v29  ;;  %v6456_v3 = vld [vmem:[#allocation28_spill] sm:$0xff]  ;;  %v6457_v29 = vld [vmem:[#allocation25_spill] sm:$0xff] }
 0x187   :  { %1563 = vperm.xlu1 %3884, %v3467_v56   ;;  %v3497_v56 = vld [vmem:[%s6338_s5 + $0x460] sm:$0xff] }
 0x188   :  { %4021 = vrot.lane.b32.xlu0 %v4020_v37, %s4374_s24  ;;  %v6453_v37 = vld [vmem:[#allocation51_spill] sm:$0xff] }
 0x189   :  { %v3889_v36 = vunpack.i.h.bf16 %v6453_v37 }
 0x18b   :  { %4031 = vrot.lane.b32.xlu1 %v4030_v41, %s4374_s24  ;;  %v3888_v41 = vunpack.i.l.bf16 %v6453_v37 }
 0x18c   :  { %4026 = vrot.lane.b32.xlu0 %v4025_v12, %s4374_s24  ;;  %v5700_v12 = vpop.permute.xlu1 %1312 }
 0x18f   :  { %1342 = vperm.xlu1 %3884, %v3436_v46   ;;  %v6454_v46 = vld [vmem:[#allocation3_spill] sm:$0xff] }
 0x190   :  { %1568 = vperm.xlu0 %3883, %v3468_v40   ;;  %v893_v40 = vmul.f32 0.0, %v6454_v46 }
 0x192   :  { %v2070_v17 = vsel %vm2069_vm3, %v893_v40, %v3888_v41  ;;  %v4098_v40 = vld [vmem:[%s6342_s3 + $0xf0] sm:$0xff]  }
 0x193   :  { %1784 = vperm.xlu1 %3884, %v3498_v1   ;;  %v6455_v1 = vld [vmem:[#allocation5_spill] sm:$0xff] }
 0x194   :  { %1337 = vperm.xlu0 %3883, %v3435_v55   ;;  %v894_v55 = vmul.f32 0.0, %v6455_v1  ;;  %v6459_v1 = vld [vmem:[#allocation8_spill] sm:$0xff] }
 0x196   :  { %v2071_v37 = vsel %vm2069_vm3, %v894_v55, %v3889_v36  ;;  %v4096_v36 = vld [vmem:[%s6342_s3 + $0xb8] sm:$0xff]  }
 0x197   :  { %1794 = vperm.xlu1 %3884, %v3500_v50   ;;  %v4035_v50 = vpack.i.bf16 %v1699_v9, %v1698_v23  ;;  %v900_v9 = vmul.f32 %v6459_v1, %v5292_v15  ;;  %v2134_v41 = vpack.c.bf16 %v2071_v37, %v2070_v17  ;;  %v4101_v17 = vld [vmem:[%s6342_s3 + $0xa8] sm:$0xff]  }
 0x198   :  { %1779 = vperm.xlu0 %3883, %v3497_v56   ;;  %v1120_v56 = vmul.f32 0.0, %v6456_v3 }
 0x19b   :  { %4041 = vrot.lane.b32.xlu1 %v4040_v58, %s4374_s24  ;;  %v1119_v58 = vmul.f32 0.0, %v6457_v29 }
 0x19c   :  { %1789 = vperm.xlu0 %3883, %v3499_v8   ;;  %v6458_v8 = vld [vmem:[#allocation9_spill] sm:$0xff] }
 0x19d   :  { %v899_v46 = vmul.f32 %v6458_v8, %v5308_v51  ;;  %v6460_v8 = vld [vmem:[#allocation54_spill] sm:$0xff] }
 0x19e   :  { %v3897_v61 = vpop.permute.xlu0 %3896  ;;  %v3893_v1 = vunpack.i.l.bf16 %v6460_v8 }
 0x19f   :  { %v3899_v49 = vunpack.i.h.bf16 %v3897_v61  ;;  %v3898_v30 = vunpack.i.l.bf16 %v3897_v61 }
 0x1a0   :  { %4036 = vrot.lane.b32.xlu0 %v4035_v50, %s4374_s24 }
 0x1a1   :  { %v3902_v26 = vpop.permute.xlu1 %3901  ;;  %v2086_v3 = vsel %vm2069_vm3, %v1119_v58, %v3898_v30  ;;  %v2087_v29 = vsel %vm2069_vm3, %v1120_v56, %v3899_v49  ;;  %v4099_v49 = vld [vmem:[%s6342_s3 + $0xb0] sm:$0xff]  }
 0x1a2   :  { %v3904_v23 = vunpack.i.h.bf16 %v3902_v26  ;;  %v3903_v59 = vunpack.i.l.bf16 %v3902_v26  ;;  %v2135_v61 = vpack.c.bf16 %v2087_v29, %v2086_v3  ;;  %v4102_v29 = vld [vmem:[%s6342_s3 + $0xe0] sm:$0xff]  }
 0x1a4   :  { %v5722_v55 = vsel %vm2069_vm3, %v899_v46, %v3903_v59  ;;  %v5725_v50 = vsel %vm2069_vm3, %v900_v9, %v3904_v23  ;;  %2525 = vmatprep.mubr.bf16.mxu1 %v2135_v61  ;;  %v4100_v59 = vld [vmem:[%s6342_s3 + $0xe8] sm:$0xff]   ;;  %v3894_v46 = vunpack.i.h.bf16 %v6460_v8  ;;  %v6463_v61 = vld [vmem:[#allocation2_spill] sm:$0xff] }
 0x1a5   :  { %v5727_v26 = vpop.permute.xlu1 %3911  ;;  %2526 = vmatmul.mubr.bf16.vlgmr.msra.gmra.mxu1 %v2134_v41 }
 0x1a6   :  { %3709 = vmatpush3.bf16.msra.mxu1 %v4096_v36  ;;  %v895_v36 = vmul.f32 0.0, %v6463_v61 }
 0x1a7   :  { %3710 = vmatprep.subr.bf16.mxu1 %v4098_v40 }
 0x1a8   :  { %v2072_v61 = vsel %vm2069_vm3, %v895_v36, %v3893_v1  ;;  %v6466_v1 = vld [vmem:[#allocation29_spill] sm:$0xff] }
 0x1a9   :  { %v3917_v56 = vpop.permute.xlu1 %3916  ;;  %v1122_v36 = vmul.f32 %v6466_v1, %v5286_v20  ;;  %v6467_v1 = vld [vmem:[#allocation37_spill] sm:$0xff] }
 0x1aa   :  { %v3919_v58 = vunpack.i.h.bf16 %v3917_v56  ;;  %v3918_v37 = vunpack.i.l.bf16 %v3917_v56  ;;  %3711 = vmatpush3.bf16.msra.mxu1 %v4099_v49  ;;  %v6464_v49 = vld [vmem:[#allocation4_spill] sm:$0xff]  ;;  %v1348_v56 = vmul.f32 %v5620_v57, %v5298_v6 }
 0x1ab   :  { %v5750_v3 = vpop.permute.xlu0 %1719  ;;  %3712 = vmatprep.subr.bf16.mxu1 %v4100_v59  ;;  %v4103_v59 = vld [vmem:[%s6342_s3 + $0xa0] sm:$0xff]  }
 0x1ac   :  { %v5744_v9 = vsel %vm2069_vm3, %v5580_v62, %v3919_v58  ;;  %v5748_v23 = vsel %vm2069_vm3, %v5450_v53, %v3918_v37  ;;  %v896_v62 = vmul.f32 0.0, %v6464_v49  ;;  %v6465_v37 = vld [vmem:[#allocation32_spill] sm:$0xff]  ;;  %v4105_v49 = vld [vmem:[%s6342_s3 + $0xd8] sm:$0xff]  }
 0x1ad   :  { %6461 = vst [vmem:[#allocation15_spill] sm:$0xff] %v5744_v9  ;;  %6462 = vst [vmem:[#allocation30_spill] sm:$0xff] %v5748_v23  ;;  %v3927_v40 = vpop.permute.xlu1 %3926  ;;  %v1121_v8 = vmul.f32 0.0, %v6465_v37 }
 0x1ae   :  { %v3929_v53 = vunpack.i.h.bf16 %v3927_v40  ;;  %v3928_v58 = vunpack.i.l.bf16 %v3927_v40  ;;  %3713 = vmatpush3.bf16.msra.mxu1 %v4101_v17  ;;  %v2073_v41 = vsel %vm2069_vm3, %v896_v62, %v3894_v46  ;;  %v1123_v46 = vmul.f32 %v6467_v1, %v5308_v51 }
 0x1af   :  { %v3907_v30 = vpop.permute.xlu0 %3906  ;;  %3714 = vmatprep.subr.bf16.mxu1 %v4102_v29  ;;  %v2139_v23 = vpack.c.bf16 %v2073_v41, %v2072_v61  ;;  %v3914_v41 = vunpack.i.h.bf16 %v5727_v26  ;;  %v3913_v61 = vunpack.i.l.bf16 %v5727_v26  ;;  %v1574_v51 = vmul.f32 %v5468_v21, %v5374_v39  ;;  %v4109_v26 = vld [vmem:[%s6342_s3 + $0x90] sm:$0xff]   ;;  %v4111_v21 = vld [vmem:[%s6342_s3 + $0xc8] sm:$0xff]  }
 0x1b0   :  { %v5772_v57 = vsel %vm2069_vm3, %v5488_v11, %v3928_v58  ;;  %v5775_v17 = vsel %vm2069_vm3, %v1348_v56, %v3929_v53  ;;  %v3909_v40 = vunpack.i.h.bf16 %v3907_v30  ;;  %v3908_v37 = vunpack.i.l.bf16 %v3907_v30  ;;  %v4106_v30 = vld [vmem:[%s6342_s3 + $0x98] sm:$0xff]  }
 0x1b1   :  { %v5777_v32 = vpop.permute.xlu1 %3931 }
 0x1b2   :  { %v2088_v29 = vsel %vm2069_vm3, %v1121_v8, %v3908_v37  ;;  %v2089_v62 = vsel %vm2069_vm3, %v1122_v36, %v3909_v40  ;;  %3715 = vmatpush3.bf16.msra.mxu1 %v4103_v59  ;;  %v6468_v8 = vld [vmem:[#allocation31_spill] sm:$0xff]  ;;  %v4108_v59 = vld [vmem:[%s6342_s3 + $0xd0] sm:$0xff]  }
 0x1b3   :  { %v3922_v11 = vpop.permute.xlu0 %3921  ;;  %v2140_v58 = vpack.c.bf16 %v2089_v62, %v2088_v29  ;;  %3716 = vmatprep.subr.bf16.mxu1 %v4105_v49  ;;  %v1124_v37 = vmul.f32 %v6468_v8, %v5292_v15  ;;  %v6469_v36 = vld [vmem:[#allocation7_spill] sm:$0xff] }
 0x1b4   :  { %v3924_v56 = vunpack.i.h.bf16 %v3922_v11  ;;  %v3923_v53 = vunpack.i.l.bf16 %v3922_v11  ;;  %v897_v29 = vmul.f32 0.0, %v6469_v36  ;;  %v6470_v11 = vld [vmem:[#allocation6_spill] sm:$0xff]  ;;  %v6472_v36 = vld [vmem:[#allocation35_spill] sm:$0xff] }
 0x1b5   :  { %v5788_v9 = vpop.permute.xlu1 %3946  ;;  %2533 = vmatprep.mubr.bf16.mxu1 %v2140_v58  ;;  %v898_v1 = vmul.f32 %v6470_v11, %v5286_v20 }
 0x1b6   :  { %2534 = vmatmul.mubr.bf16.gmra.mxu1 %v2139_v23  ;;  %v2090_v49 = vsel %vm2069_vm3, %v1123_v46, %v3923_v53  ;;  %v2091_v40 = vsel %vm2069_vm3, %v1124_v37, %v3924_v56  ;;  %v1573_v23 = vmul.f32 %v5610_v10, %v5386_v16  ;;  %v1350_v46 = vmul.f32 %v5646_v45, %v5386_v16  ;;  %v6471_v10 = vld [vmem:[#allocation45_spill] sm:$0xff] }
 0x1b7   :  { %v3937_v15 = vpop.permute.xlu0 %3936  ;;  %v2145_v62 = vpack.c.bf16 %v2091_v40, %v2090_v49  ;;  %3717 = vmatpush3.bf16.msra.mxu1 %v4106_v30  ;;  %v2074_v8 = vsel %vm2069_vm3, %v897_v29, %v3913_v61  ;;  %v2075_v37 = vsel %vm2069_vm3, %v898_v1, %v3914_v41  ;;  %v1125_v49 = vmul.f32 %v6471_v10, %v5298_v6  ;;  %v4112_v61 = vld [vmem:[%s6342_s3 + $0x88] sm:$0xff]  }
 0x1b8   :  { %v3939_v58 = vunpack.i.h.bf16 %v3937_v15  ;;  %v3938_v56 = vunpack.i.l.bf16 %v3937_v15  ;;  %3718 = vmatprep.subr.bf16.mxu1 %v4108_v59  ;;  %v1126_v15 = vmul.f32 %v6472_v36, %v5331_v7 }
 0x1b9   :  { %v3957_v53 = vpop.permute.xlu1 %3956  ;;  %2541 = vmatprep.mubr.bf16.mxu1 %v2145_v62 }
 0x1ba   :  { %v3959_v20 = vunpack.i.h.bf16 %v3957_v53  ;;  %v3958_v30 = vunpack.i.l.bf16 %v3957_v53  ;;  %v5821_v45 = vsel %vm2069_vm3, %v1573_v23, %v3938_v56  ;;  %v5824_v40 = vsel %vm2069_vm3, %v1574_v51, %v3939_v58 }
 0x1bb   :  { %v3942_v59 = vpop.permute.xlu0 %3941  ;;  %3719 = vmatpush3.bf16.msra.mxu1 %v4109_v26  ;;  %v2142_v41 = vpack.c.bf16 %v5824_v40, %v5821_v45  ;;  %v2144_v23 = vpack.c.bf16 %v2075_v37, %v2074_v8  ;;  %v4113_v26 = vld [vmem:[%s6342_s3 + $0xc0] sm:$0xff]   ;;  %v1351_v56 = vmul.f32 %v5667_v24, %v5374_v39 }
 0x1bc   :  { %v5835_v29 = vsel %vm2069_vm3, %v5521_v25, %v3958_v30  ;;  %v5838_v62 = vsel %vm2069_vm3, %v1350_v46, %v3959_v20  ;;  %v3944_v51 = vunpack.i.h.bf16 %v3942_v59  ;;  %v3943_v11 = vunpack.i.l.bf16 %v3942_v59  ;;  %3720 = vmatprep.subr.bf16.mxu1 %v4111_v21  ;;  %v4114_v37 = vld [vmem:[%s6342_s3 + $0x80] sm:$0xff]  }
 0x1bd   :  { %v3967_v1 = vpop.permute.xlu1 %3966  ;;  %v2146_v58 = vpack.c.bf16 %v5838_v62, %v5835_v29  ;;  %v1352_v25 = vmul.f32 %v5672_v19, %v5364_v35  ;;  %v1571_v19 = vmul.f32 %v5569_v48, %v5298_v6  ;;  %v905_v48 = vmul.f32 %v5269_v13, %v5364_v35 }
 0x1be   :  { %v3969_v46 = vunpack.i.h.bf16 %v3967_v1  ;;  %v3968_v53 = vunpack.i.l.bf16 %v3967_v1  ;;  %2542 = vmatmul.mubr.bf16.gmra.mxu1 %v2144_v23  ;;  %v2092_v20 = vsel %vm2069_vm3, %v1125_v49, %v3943_v11  ;;  %v2093_v21 = vsel %vm2069_vm3, %v1126_v15, %v3944_v51 }
 0x1bf   :  { %v3952_v30 = vpop.permute.xlu0 %3951  ;;  %v2150_v8 = vpack.c.bf16 %v2093_v21, %v2092_v20  ;;  %3721 = vmatpush3.bf16.msra.mxu1 %v4112_v61  ;;  %v907_v61 = vmul.f32 %v5359_v22, %v5470_v38  ;;  %v908_v51 = vmul.f32 %v5530_v34, %v5459_v33  ;;  %v1127_v23 = vmul.f32 %v5265_v63, %v5386_v16 }
 0x1c0   :  { %v5855_v10 = vsel %vm2069_vm3, %v1351_v56, %v3968_v53  ;;  %v5858_v24 = vsel %vm2069_vm3, %v1352_v25, %v3969_v46  ;;  %v3954_v59 = vunpack.i.h.bf16 %v3952_v30  ;;  %v3953_v49 = vunpack.i.l.bf16 %v3952_v30  ;;  %3722 = vmatprep.subr.bf16.mxu1 %v4113_v26 }
 0x1c1   :  { %v3972_v36 = vpop.permute.xlu1 %3971  ;;  %v2151_v15 = vpack.c.bf16 %v5858_v24, %v5855_v10  ;;  %2549 = vmatprep.mubr.bf16.mxu1 %v2150_v8  ;;  %v906_v22 = vmul.f32 %v5462_v47, %v5425_v4  ;;  %v3949_v30 = vunpack.i.h.bf16 %v5788_v9  ;;  %v3948_v8 = vunpack.i.l.bf16 %v5788_v9 }
 0x1c2   :  { %v3974_v11 = vunpack.i.h.bf16 %v3972_v36  ;;  %v3973_v1 = vunpack.i.l.bf16 %v3972_v36  ;;  %v5873_v26 = vsel %vm2069_vm3, %v1571_v19, %v3953_v49  ;;  %v5877_v56 = vsel %vm2069_vm3, %v5430_v5, %v3954_v59  ;;  %v6473_v5 = vld [vmem:[#allocation39_spill] sm:$0xff] }
 0x1c3   :  { %v3962_v34 = vpop.permute.xlu0 %3961  ;;  %3723 = vmatpush3.bf16.msra.mxu1 %v4114_v37  ;;  %v2137_v13 = vpack.c.bf16 %v5877_v56, %v5873_v26  ;;  %v1128_v21 = vmul.f32 %v6473_v5, %v5374_v39  ;;  %v902_v37 = vmul.f32 %v5284_v54, %v5331_v7  ;;  %v6474_v49 = vpack.c.bf16 %v5725_v50, %v5722_v55 }
 0x1c4   :  { %v5882_v25 = vsel %vm2069_vm3, %v907_v61, %v3973_v1  ;;  %v5885_v46 = vsel %vm2069_vm3, %v908_v51, %v3974_v11  ;;  %v3964_v63 = vunpack.i.h.bf16 %v3962_v34  ;;  %v3963_v53 = vunpack.i.l.bf16 %v3962_v34  ;;  %v6475_v51 = vld [vmem:[#allocation41_spill] sm:$0xff] }
 0x1c5   :  { %v3987_v20 = vpop.permute.xlu1 %3986  ;;  %v2169_v47 = vpack.c.bf16 %v5885_v46, %v5882_v25  ;;  %v901_v11 = vmul.f32 %v6475_v51, %v5298_v6  ;;  %v1578_v1 = vmul.f32 %v5654_v14, %v5459_v33  ;;  %v1577_v7 = vmul.f32 %v5657_v18, %v5470_v38 }
 0x1c6   :  { %v3989_v19 = vunpack.i.h.bf16 %v3987_v20  ;;  %v3988_v59 = vunpack.i.l.bf16 %v3987_v20  ;;  %2550 = vmatmul.mubr.bf16.gmra.mxu1 %v6474_v49  ;;  %v2094_v36 = vsel %vm2069_vm3, %v1127_v23, %v3963_v53  ;;  %v2095_v61 = vsel %vm2069_vm3, %v1128_v21, %v3964_v63 }
 0x1c7   :  { %v3977_v9 = vpop.permute.xlu0 %3976  ;;  %v2155_v34 = vpack.c.bf16 %v2095_v61, %v2094_v36  ;;  %v2078_v6 = vsel %vm2069_vm3, %v901_v11, %v3948_v8  ;;  %v2079_v14 = vsel %vm2069_vm3, %v902_v37, %v3949_v30  ;;  %v6476_v8 = vld [vmem:[#allocation47_spill] sm:$0xff]  ;;  %v3934_v30 = vunpack.i.h.bf16 %v5777_v32  ;;  %v6477_v11 = vld [vmem:[#allocation50_spill] sm:$0xff] }
 0x1c8   :  { %v5907_v20 = vsel %vm2069_vm3, %v905_v48, %v3988_v59  ;;  %v5910_v54 = vsel %vm2069_vm3, %v906_v22, %v3989_v19  ;;  %v3979_v55 = vunpack.i.h.bf16 %v3977_v9  ;;  %v3978_v50 = vunpack.i.l.bf16 %v3977_v9 }
 0x1c9   :  { %v2164_v23 = vpack.c.bf16 %v5910_v54, %v5907_v20  ;;  %2557 = vmatprep.mubr.bf16.mxu1 %v2155_v34  ;;  %v1129_v22 = vmul.f32 %v5355_v27, %v5364_v35  ;;  %v2154_v19 = vpack.c.bf16 %v2079_v14, %v2078_v6  ;;  %v1130_v59 = vmul.f32 %v6476_v8, %v5425_v4 }
 0x1ca   :  { %v5919_v63 = vsel %vm2069_vm3, %v1577_v7, %v3978_v50  ;;  %v5922_v48 = vsel %vm2069_vm3, %v1578_v1, %v3979_v55  ;;  %v3933_v37 = vunpack.i.l.bf16 %v5777_v32  ;;  %v904_v27 = vmul.f32 %v5377_v44, %v5374_v39 }
 0x1cb   :  { %v3982_v18 = vpop.permute.xlu0 %3981  ;;  %v2152_v53 = vpack.c.bf16 %v5922_v48, %v5919_v63  ;;  %v903_v1 = vmul.f32 %v6477_v11, %v5386_v16  ;;  %v1797_v32 = vmul.f32 %v5750_v3, %v5386_v16  ;;  %v1576_v7 = vmul.f32 %v5506_v60, %v5425_v4 }
 0x1cc   :  { %v3984_v5 = vunpack.i.h.bf16 %v3982_v18  ;;  %v3983_v21 = vunpack.i.l.bf16 %v3982_v18  ;;  %v2081_v20 = vsel %vm2069_vm3, %v904_v27, %v3934_v30  ;;  %v1575_v44 = vmul.f32 %v5631_v28, %v5364_v35 }
 0x1cd   :  { %v2080_v34 = vsel %vm2069_vm3, %v903_v1, %v3933_v37  ;;  %v1131_v60 = vmul.f32 %v5440_v2, %v5470_v38  ;;  %v1354_v11 = vmul.f32 %v5700_v12, %v5470_v38 }
 0x1ce   :  { %2558 = vmatmul.mubr.bf16.gmra.mxu1 %v2154_v19  ;;  %v2096_v49 = vsel %vm2069_vm3, %v1129_v22, %v3983_v21  ;;  %v2097_v36 = vsel %vm2069_vm3, %v1130_v59, %v3984_v5  ;;  %v2159_v22 = vpack.c.bf16 %v2081_v20, %v2080_v34  ;;  %v1134_v34 = vmul.f32 %v5333_v43, %v5518_v42 }
 0x1cf   :  { %v1730_v61 = vpop.permute.xlu0 %1729  ;;  %v2160_v51 = vpack.c.bf16 %v2097_v36, %v2096_v49  ;;  %v1133_v20 = vmul.f32 %v5512_v52, %v5446_v0 }
 0x1d0   :  { %v1799_v18 = vmul.f32 %v1730_v61, %v5364_v35  ;;  %v6478_v35 = vld [vmem:[#allocation58_spill] sm:$0xff] }
 0x1d1   :  { %2565 = vmatprep.mubr.bf16.mxu1 %v2160_v51  ;;  %v1132_v30 = vmul.f32 %v6478_v35, %v5459_v33  ;;  %v1353_v51 = vmul.f32 %v5694_v31, %v5425_v4 }
 0x1d2   :  { %v1725_v9 = vpop.permute.xlu1 %1724 }
 0x1d3   :  { %v1798_v54 = vmul.f32 %v1725_v9, %v5374_v39  ;;  %v3992_v55 = vpop.permute.xlu0 %3991 }
 0x1d4   :  { %v3994_v6 = vunpack.i.h.bf16 %v3992_v55  ;;  %v3993_v14 = vunpack.i.l.bf16 %v3992_v55 }
 0x1d5   :  { %v2138_v50 = vpack.c.bf16 %v1798_v54, %v1797_v32 }
 0x1d6   :  { %v1735_v5 = vpop.permute.xlu1 %1734  ;;  %2566 = vmatmul.mubr.bf16.gmra.mxu1 %v2159_v22  ;;  %v2122_v39 = vsel %vm2069_vm3, %v1575_v44, %v3993_v14  ;;  %v2123_v16 = vsel %vm2069_vm3, %v1576_v7, %v3994_v6 }
 0x1d7   :  { %v1800_v21 = vmul.f32 %v1735_v5, %v5425_v4  ;;  %3860 = vmatprep.mubr.msk.bf16.mxu0 %vm2069_vm3, %v2138_v50  ;;  %v3997_v28 = vpop.permute.xlu0 %3996  ;;  %v2147_v3 = vpack.c.bf16 %v2123_v16, %v2122_v39 }
 0x1d8   :  { %v3999_v8 = vunpack.i.h.bf16 %v3997_v28  ;;  %v3998_v59 = vunpack.i.l.bf16 %v3997_v28 }
 0x1d9   :  { %v2143_v19 = vpack.c.bf16 %v1800_v21, %v1799_v18 }
 0x1da   :  { %v5956_v37 = vpop.permute.xlu1 %1543  ;;  %v2098_v49 = vsel %vm2069_vm3, %v1131_v60, %v3998_v59  ;;  %v2099_v36 = vsel %vm2069_vm3, %v1132_v30, %v3999_v8  ;;  %v6480_v60 = vld [vmem:[#allocation30_spill] sm:$0xff]  ;;  %v6483_v30 = vld [vmem:[#allocation49_spill] sm:$0xff] }
 0x1db   :  { %3861 = vmatmul.mubr.msk.bf16.vlgmr.msra.gmra.mxu0 %vm2069_vm3, %v2143_v19  ;;  %v5961_v27 = vpop.permute.xlu0 %1548  ;;  %v2165_v61 = vpack.c.bf16 %v2099_v36, %v2098_v49  ;;  %v6482_v19 = vpack.c.bf16 %v5775_v17, %v5772_v57  ;;  %v6484_v36 = vld [vmem:[#allocation11_spill] sm:$0xff]  ;;  %v6485_v17 = vld [vmem:[#allocation46_spill] sm:$0xff] }
 0x1dd   :  { %2573 = vmatprep.mubr.bf16.mxu1 %v2165_v61 }
 0x1de   :  { %v4002_v2 = vpop.permute.xlu1 %4001  ;;  %2574 = vmatmul.mubr.bf16.gmra.mxu1 %v2164_v23 }
 0x1df   :  { %v4004_v1 = vunpack.i.h.bf16 %v4002_v2  ;;  %v4003_v9 = vunpack.i.l.bf16 %v4002_v2  ;;  %v4007_v32 = vpop.permute.xlu0 %4006 }
 0x1e0   :  { %v4009_v54 = vunpack.i.h.bf16 %v4007_v32  ;;  %v4008_v7 = vunpack.i.l.bf16 %v4007_v32 }
 0x1e1   :  { %v5972_v44 = vsel %vm2069_vm3, %v1353_v51, %v4003_v9  ;;  %v5975_v4 = vsel %vm2069_vm3, %v1354_v11, %v4004_v1  ;;  %v6486_v1 = vld [vmem:[#allocation10_spill] sm:$0xff] }
 0x1e2   :  { %v5977_v31 = vpop.permute.xlu1 %1322  ;;  %v2156_v12 = vpack.c.bf16 %v5975_v4, %v5972_v44  ;;  %v2100_v23 = vsel %vm2069_vm3, %v1133_v20, %v4008_v7  ;;  %v2101_v43 = vsel %vm2069_vm3, %v1134_v34, %v4009_v54  ;;  %v1580_v9 = vmul.f32 %v6486_v1, %v5518_v42  ;;  %v6487_v34 = vld [vmem:[#allocation14_spill] sm:$0xff] }
 0x1e3   :  { %v5983_v55 = vpop.permute.xlu0 %1317  ;;  %v2170_v52 = vpack.c.bf16 %v2101_v43, %v2100_v23  ;;  %v1579_v29 = vmul.f32 %v6487_v34, %v5446_v0  ;;  %v1581_v23 = vmul.f32 %v5956_v37, %v6484_v36  ;;  %v1582_v43 = vmul.f32 %v5961_v27, %v6483_v30 }
 0x1e4   :  { %v1356_v37 = vmul.f32 %v5977_v31, %v5446_v0  ;;  %v1355_v27 = vmul.f32 %v5983_v55, %v5459_v33 }
 0x1e5   :  { %2581 = vmatprep.mubr.bf16.mxu1 %v2170_v52 }
 0x1e6   :  { %v1745_v50 = vpop.permute.xlu1 %1744  ;;  %2582 = vmatmul.mubr.bf16.gmra.mxu1 %v2169_v47  ;;  %v6479_v47 = vld [vmem:[#allocation15_spill] sm:$0xff] }
 0x1e7   :  { %v1740_v6 = vpop.permute.xlu0 %1739  ;;  %2622 = vmatprep.mubr.bf16.mxu1 %v2137_v13  ;;  %v1802_v14 = vmul.f32 %v1745_v50, %v5459_v33  ;;  %v6481_v28 = vpack.c.bf16 %v6479_v47, %v6480_v60 }
 0x1e8   :  { %v1801_v22 = vmul.f32 %v1740_v6, %v5470_v38 }
 0x1ea   :  { %v1755_v18 = vpop.permute.xlu1 %1754  ;;  %v2148_v5 = vpack.c.bf16 %v1802_v14, %v1801_v22 }
 0x1eb   :  { %v1750_v21 = vpop.permute.xlu0 %1749  ;;  %v1804_v39 = vmul.f32 %v1755_v18, %v5518_v42 }
 0x1ec   :  { %v1803_v16 = vmul.f32 %v1750_v21, %v5446_v0  ;;  %3864 = vmatprep.mubr.msk.bf16.mxu0 %vm2069_vm3, %v2148_v5 }
 0x1ee   :  { %v1554_v25 = vpop.permute.xlu1 %1553  ;;  %v2153_v46 = vpack.c.bf16 %v1804_v39, %v1803_v16  ;;  %2623 = vmatmul.mubr.bf16.vlgmr.msra.gmra.mxu1 %v6481_v28 }
 0x1ef   :  { %v4012_v26 = vpop.permute.xlu0 %4011  ;;  %2630 = vmatprep.mubr.bf16.mxu1 %v2142_v41  ;;  %v1583_v39 = vmul.f32 %v1554_v25, %v6485_v17 }
 0x1f0   :  { %3865 = vmatmul.mubr.msk.bf16.gmra.mxu0 %vm2069_vm3, %v2153_v46  ;;  %v4014_v48 = vunpack.i.h.bf16 %v4012_v26 }
 0x1f2   :  { %v4017_v38 = vpop.permute.xlu1 %4016  ;;  %v2129_v6 = vsel %vm2069_vm3, %v1582_v43, %v4014_v48  ;;  %v4117_v48 = vld [vmem:[%s6343_s6 + $0x74] ss:$8 sps:$4 sm:$0xff]   ;;  %v4130_v43 = vld [vmem:[%s6343_s6 + $0x20] ss:$8 sps:$4 sm:$0xff]  }
 0x1f3   :  { %v1559_v56 = vpop.permute.xlu0 %1558  ;;  %v4019_v24 = vunpack.i.h.bf16 %v4017_v38  ;;  %3216 = vmatprep.subr.bf16.mxu1 %v4117_v48  ;;  %v4196_v48 = vld [vmem:[%s6343_s6 + $0x1c0] ss:$8 sps:$4 sm:$0xff]  }
 0x1f4   :  { %v1584_v16 = vmul.f32 0.0, %v1559_v56 }
 0x1f5   :  { %v2113_v47 = vsel %vm2069_vm3, %v1356_v37, %v4019_v24  ;;  %v4138_v24 = vld [vmem:[%s6343_s6 + $0x4] ss:$8 sps:$4 sm:$0xff]  }
 0x1f6   :  { %v6003_v13 = vpop.permute.xlu1 %1332  ;;  %2631 = vmatmul.mubr.bf16.gmra.mxu1 %v6482_v19  ;;  %v4147_v37 = vld [vmem:[%s6343_s6 + $0xe4] ss:$8 sps:$4 sm:$0xff]  }
 0x1f7   :  { %v6008_v8 = vpop.permute.xlu0 %1327  ;;  %2638 = vmatprep.mubr.bf16.mxu1 %v2147_v3  ;;  %v1358_v25 = vmul.f32 %v6003_v13, %v6484_v36 }
 0x1f8   :  { %v1357_v56 = vmul.f32 %v6008_v8, %v5518_v42 }
 0x1fa   :  { %v1765_v59 = vpop.permute.xlu1 %1764 }
 0x1fb   :  { %v1760_v35 = vpop.permute.xlu0 %1759  ;;  %v1806_v49 = vmul.f32 %v1765_v59, %v6483_v30 }
 0x1fc   :  { %v1805_v45 = vmul.f32 %v1760_v35, %v6484_v36 }
 0x1fe   :  { %v1775_v40 = vpop.permute.xlu1 %1774  ;;  %v2158_v41 = vpack.c.bf16 %v1806_v49, %v1805_v45  ;;  %2639 = vmatmul.mubr.bf16.gmra.mxu1 %v2146_v58 }
 0x1ff   :  { %v1770_v61 = vpop.permute.xlu0 %1769  ;;  %2646 = vmatprep.mubr.bf16.mxu1 %v2152_v53  ;;  %v1808_v57 = vmul.f32 0.0, %v1775_v40  ;;  %v4013_v53 = vunpack.i.l.bf16 %v4012_v26 }
 0x200   :  { %v1807_v3 = vmul.f32 %v1770_v61, %v6485_v17  ;;  %3868 = vmatprep.mubr.msk.bf16.mxu0 %vm2069_vm3, %v2158_v41 }
 0x201   :  { %v2128_v50 = vsel %vm2069_vm3, %v1581_v23, %v4013_v53  ;;  %v4121_v53 = vld [vmem:[%s6343_s6 + $0x50] ss:$8 sps:$4 sm:$0xff]   ;;  %v4129_v23 = vld [vmem:[%s6343_s6 + $0x34] ss:$8 sps:$4 sm:$0xff]  }
 0x202   :  { %v1564_v2 = vpop.permute.xlu1 %1563  ;;  %v2163_v51 = vpack.c.bf16 %v1808_v57, %v1807_v3  ;;  %v2162_v14 = vpack.c.bf16 %v2129_v6, %v2128_v50  ;;  %v4133_v50 = vld [vmem:[%s6343_s6 + $0x10] ss:$8 sps:$4 sm:$0xff]   ;;  %v4135_v6 = vld [vmem:[%s6343_s6 + $0x14] ss:$8 sps:$4 sm:$0xff]  }
 0x203   :  { %v4022_v11 = vpop.permute.xlu0 %4021  ;;  %v1585_v61 = vmul.f32 0.0, %v1564_v2 }
 0x204   :  { %v4024_v62 = vunpack.i.h.bf16 %v4022_v11  ;;  %v4023_v58 = vunpack.i.l.bf16 %v4022_v11  ;;  %3869 = vmatmul.mubr.msk.bf16.gmra.mxu0 %vm2069_vm3, %v2163_v51 }
 0x206   :  { %v4032_v63 = vpop.permute.xlu1 %4031  ;;  %2647 = vmatmul.mubr.bf16.gmra.mxu1 %v2151_v15  ;;  %v2126_v20 = vsel %vm2069_vm3, %v1579_v29, %v4023_v58  ;;  %v2127_v32 = vsel %vm2069_vm3, %v1580_v9, %v4024_v62  ;;  %v4018_v15 = vunpack.i.l.bf16 %v4017_v38 }
 0x207   :  { %v4027_v54 = vpop.permute.xlu0 %4026  ;;  %v2157_v7 = vpack.c.bf16 %v2127_v32, %v2126_v20  ;;  %v4034_v26 = vunpack.i.h.bf16 %v4032_v63  ;;  %v4033_v33 = vunpack.i.l.bf16 %v4032_v63  ;;  %v4115_v63 = vld [vmem:[%s6343_s6 + $0x70] ss:$8 sps:$4 sm:$0xff]   ;;  %v4123_v20 = vld [vmem:[%s6343_s6 + $0x54] ss:$8 sps:$4 sm:$0xff]   ;;  %v4124_v32 = vld [vmem:[%s6343_s6 + $0x40] ss:$8 sps:$4 sm:$0xff]  }
 0x208   :  { %v4029_v22 = vunpack.i.h.bf16 %v4027_v54  ;;  %v4028_v18 = vunpack.i.l.bf16 %v4027_v54  ;;  %v2112_v46 = vsel %vm2069_vm3, %v1355_v27, %v4018_v15  ;;  %3217 = vmatpush1.bf16.msra.mxu1 %v4115_v63  ;;  %v4126_v54 = vld [vmem:[%s6343_s6 + $0x44] ss:$8 sps:$4 sm:$0xff]   ;;  %v4139_v15 = vld [vmem:[%s6343_s6 + $0xf0] ss:$8 sps:$4 sm:$0xff]   ;;  %v4148_v27 = vld [vmem:[%s6343_s6 + $0x160] ss:$8 sps:$4 sm:$0xff]  }
 0x209   :  { %2654 = vmatprep.mubr.bf16.mxu1 %v2157_v7  ;;  %v2161_v31 = vpack.c.bf16 %v2113_v47, %v2112_v46  ;;  %v2114_v49 = vsel %vm2069_vm3, %v1357_v56, %v4033_v33  ;;  %v2115_v45 = vsel %vm2069_vm3, %v1358_v25, %v4034_v26  ;;  %v4127_v7 = vld [vmem:[%s6343_s6 + $0x30] ss:$8 sps:$4 sm:$0xff]   ;;  %v4156_v47 = vld [vmem:[%s6343_s6 + $0x154] ss:$8 sps:$4 sm:$0xff]   ;;  %v4169_v33 = vld [vmem:[%s6343_s6 + $0xa0] ss:$8 sps:$4 sm:$0xff]  }
 0x20a   :  { %v1343_v52 = vpop.permute.xlu1 %1342  ;;  %v2130_v60 = vsel %vm2069_vm3, %v1583_v39, %v4028_v18  ;;  %v2131_v44 = vsel %vm2069_vm3, %v1584_v16, %v4029_v22  ;;  %v2166_v42 = vpack.c.bf16 %v2115_v45, %v2114_v49  ;;  %v4142_v22 = vld [vmem:[%s6343_s6 + $0x170] ss:$8 sps:$4 sm:$0xff]   ;;  %v4144_v18 = vld [vmem:[%s6343_s6 + $0x174] ss:$8 sps:$4 sm:$0xff]   ;;  %v4174_v25 = vld [vmem:[%s6343_s6 + $0x124] ss:$8 sps:$4 sm:$0xff]  }
 0x20b   :  { %v1569_v10 = vpop.permute.xlu0 %1568  ;;  %v2167_v55 = vpack.c.bf16 %v2131_v44, %v2130_v60  ;;  %v1360_v9 = vmul.f32 %v1343_v52, %v6485_v17  ;;  %v4120_v17 = vld [vmem:[%s6343_s6 + $0x64] ss:$8 sps:$4 sm:$0xff]   ;;  %3257 = vmatprep.subr.bf16.mxu0 %v4144_v18  ;;  %v4151_v39 = vld [vmem:[%s6343_s6 + $0xd0] ss:$8 sps:$4 sm:$0xff]   ;;  %v4153_v16 = vld [vmem:[%s6343_s6 + $0xd4] ss:$8 sps:$4 sm:$0xff]  }
 0x20c   :  { %v1586_v3 = vmul.f32 0.0, %v1569_v10  ;;  %3218 = vmatprep.subr.bf16.mxu1 %v4120_v17  ;;  %v4132_v52 = vld [vmem:[%s6343_s6 + $0x24] ss:$8 sps:$4 sm:$0xff]   ;;  %v4136_v10 = vld [vmem:[%s6343_s6] ss:$8 sps:$4 sm:$0xff]   ;;  %3258 = vmatpush1.bf16.msra.mxu0 %v4142_v22 }
 0x20d   :  { %v4154_v46 = vld [vmem:[%s6343_s6 + $0x150] ss:$8 sps:$4 sm:$0xff]   ;;  %v4157_v60 = vld [vmem:[%s6343_s6 + $0xc0] ss:$8 sps:$4 sm:$0xff]   ;;  %v4159_v44 = vld [vmem:[%s6343_s6 + $0xc4] ss:$8 sps:$4 sm:$0xff]  }
 0x20e   :  { %v1785_v5 = vpop.permute.xlu1 %1784  ;;  %2655 = vmatmul.mubr.bf16.gmra.mxu1 %v2156_v12  ;;  %v4168_v26 = vld [vmem:[%s6343_s6 + $0x134] ss:$8 sps:$4 sm:$0xff]   ;;  %v4178_v49 = vld [vmem:[%s6343_s6 + $0x110] ss:$8 sps:$4 sm:$0xff]   ;;  %v4210_v22 = vld [vmem:[%s6343_s6 + $0x184] ss:$8 sps:$4 sm:$0xff]  }
 0x20f   :  { %v1338_v21 = vpop.permute.xlu0 %1337  ;;  %2662 = vmatprep.mubr.bf16.mxu1 %v2162_v14  ;;  %v1810_v12 = vmul.f32 0.0, %v1785_v5  ;;  %v4141_v14 = vld [vmem:[%s6343_s6 + $0xf4] ss:$8 sps:$4 sm:$0xff]   ;;  %v4145_v5 = vld [vmem:[%s6343_s6 + $0xe0] ss:$8 sps:$4 sm:$0xff]  }
 0x210   :  { %v1359_v34 = vmul.f32 %v1338_v21, %v6483_v30  ;;  %v4118_v30 = vld [vmem:[%s6343_s6 + $0x60] ss:$8 sps:$4 sm:$0xff]   ;;  %v4150_v21 = vld [vmem:[%s6343_s6 + $0x164] ss:$8 sps:$4 sm:$0xff]   ;;  %v4201_v17 = vld [vmem:[%s6343_s6 + $0x1b4] ss:$8 sps:$4 sm:$0xff]  }
 0x211   :  { %3219 = vmatpush1.bf16.msra.mxu1 %v4118_v30  ;;  %3259 = vmatprep.subr.bf16.mxu0 %v4150_v21 }
 0x212   :  { %v1795_v28 = vpop.permute.xlu1 %1794  ;;  %3220 = vmatprep.subr.bf16.mxu1 %v4123_v20  ;;  %3260 = vmatpush1.bf16.msra.mxu0 %v4148_v27 }
 0x213   :  { %v1780_v4 = vpop.permute.xlu0 %1779  ;;  %v1812_v59 = vmul.f32 0.0, %v1795_v28  ;;  %3261 = vmatprep.subr.bf16.mxu0 %v4156_v47  ;;  %v4163_v28 = vld [vmem:[%s6343_s6 + $0xb0] ss:$8 sps:$4 sm:$0xff]  }
 0x214   :  { %v1809_v0 = vmul.f32 0.0, %v1780_v4  ;;  %v4160_v4 = vld [vmem:[%s6343_s6 + $0x140] ss:$8 sps:$4 sm:$0xff]  }
 0x215   :  { %3221 = vmatpush1.bf16.msra.mxu1 %v4121_v53 }
 0x216   :  { %v2168_v38 = vpack.c.bf16 %v1810_v12, %v1809_v0  ;;  %2663 = vmatmul.mubr.bf16.gmra.mxu1 %v2161_v31  ;;  %v4042_v40 = vpop.permute.xlu1 %4041  ;;  %3222 = vmatprep.subr.bf16.mxu1 %v4126_v54  ;;  %v4162_v12 = vld [vmem:[%s6343_s6 + $0x144] ss:$8 sps:$4 sm:$0xff]   ;;  %v4165_v0 = vld [vmem:[%s6343_s6 + $0xb4] ss:$8 sps:$4 sm:$0xff]   ;;  %v4166_v31 = vld [vmem:[%s6343_s6 + $0x130] ss:$8 sps:$4 sm:$0xff]  }
 0x217   :  { %v1790_v19 = vpop.permute.xlu0 %1789  ;;  %2670 = vmatprep.mubr.bf16.mxu1 %v2167_v55  ;;  %v4044_v8 = vunpack.i.h.bf16 %v4042_v40  ;;  %v4043_v36 = vunpack.i.l.bf16 %v4042_v40  ;;  %3262 = vmatpush1.bf16.msra.mxu0 %v4154_v46  ;;  %v4171_v55 = vld [vmem:[%s6343_s6 + $0xa4] ss:$8 sps:$4 sm:$0xff]   ;;  %v4180_v40 = vld [vmem:[%s6343_s6 + $0x114] ss:$8 sps:$4 sm:$0xff]  }
 0x218   :  { %v1811_v35 = vmul.f32 0.0, %v1790_v19  ;;  %3872 = vmatprep.mubr.msk.bf16.mxu0 %vm2069_vm3, %v2168_v38  ;;  %3263 = vmatprep.subr.bf16.mxu0 %v4162_v12  ;;  %v4172_v38 = vld [vmem:[%s6343_s6 + $0x120] ss:$8 sps:$4 sm:$0xff]  }
 0x219   :  { %v2116_v2 = vsel %vm2069_vm3, %v1359_v34, %v4043_v36  ;;  %v2117_v62 = vsel %vm2069_vm3, %v1360_v9, %v4044_v8  ;;  %3223 = vmatpush1.bf16.msra.mxu1 %v4124_v32  ;;  %v4187_v8 = vld [vmem:[%s6343_s6 + $0x1f0] ss:$8 sps:$4 sm:$0xff]   ;;  %v4189_v36 = vld [vmem:[%s6343_s6 + $0x1f4] ss:$8 sps:$4 sm:$0xff]  }
 0x21a   :  { %v2173_v41 = vpack.c.bf16 %v1812_v59, %v1811_v35  ;;  %v2171_v58 = vpack.c.bf16 %v2117_v62, %v2116_v2  ;;  %3224 = vmatprep.subr.bf16.mxu1 %v4129_v23  ;;  %v4175_v59 = vld [vmem:[%s6343_s6 + $0x90] ss:$8 sps:$4 sm:$0xff]   ;;  %v4177_v35 = vld [vmem:[%s6343_s6 + $0x94] ss:$8 sps:$4 sm:$0xff]   ;;  %v4198_v62 = vld [vmem:[%s6343_s6 + $0x1c4] ss:$8 sps:$4 sm:$0xff]  }
 0x21b   :  { %v4037_v57 = vpop.permute.xlu0 %4036  ;;  %3264 = vmatpush1.bf16.msra.mxu0 %v4160_v4  ;;  %v4195_v9 = vld [vmem:[%s6343_s6 + $0x1d4] ss:$8 sps:$4 sm:$0xff]   ;;  %v4199_v32 = vld [vmem:[%s6343_s6 + $0x1b0] ss:$8 sps:$4 sm:$0xff]  }
 0x21c   :  { %v4039_v51 = vunpack.i.h.bf16 %v4037_v57  ;;  %v4038_v13 = vunpack.i.l.bf16 %v4037_v57  ;;  %3873 = vmatmul.mubr.msk.bf16.gmra.mxu0 %vm2069_vm3, %v2173_v41  ;;  %3265 = vmatprep.subr.bf16.mxu0 %v4168_v26  ;;  %v4181_v57 = vld [vmem:[%s6343_s6 + $0x80] ss:$8 sps:$4 sm:$0xff]  }
 0x21d   :  { %3225 = vmatpush1.bf16.msra.mxu1 %v4127_v7  ;;  %v4204_v7 = vld [vmem:[%s6343_s6 + $0x1a4] ss:$8 sps:$4 sm:$0xff]  }
 0x21e   :  { %2671 = vmatmul.mubr.bf16.gmra.mxu1 %v2166_v42  ;;  %v2132_v11 = vsel %vm2069_vm3, %v1585_v61, %v4038_v13  ;;  %v2133_v1 = vsel %vm2069_vm3, %v1586_v3, %v4039_v51  ;;  %3226 = vmatprep.subr.bf16.mxu1 %v4132_v52  ;;  %v4183_v3 = vld [vmem:[%s6343_s6 + $0x84] ss:$8 sps:$4 sm:$0xff]   ;;  %v4184_v51 = vld [vmem:[%s6343_s6 + $0x100] ss:$8 sps:$4 sm:$0xff]  }
 0x21f   :  { %v2172_v29 = vpack.c.bf16 %v2133_v1, %v2132_v11  ;;  %3266 = vmatpush1.bf16.msra.mxu0 %v4166_v31  ;;  %v4186_v42 = vld [vmem:[%s6343_s6 + $0x104] ss:$8 sps:$4 sm:$0xff]   ;;  %v4190_v11 = vld [vmem:[%s6343_s6 + $0x1e0] ss:$8 sps:$4 sm:$0xff]  }
 0x220   :  { %3267 = vmatprep.subr.bf16.mxu0 %v4174_v25  ;;  %v4192_v1 = vld [vmem:[%s6343_s6 + $0x1e4] ss:$8 sps:$4 sm:$0xff]   ;;  %v4202_v52 = vld [vmem:[%s6343_s6 + $0x1a0] ss:$8 sps:$4 sm:$0xff]  }
 0x221   :  { %2678 = vmatprep.mubr.bf16.mxu1 %v2172_v29  ;;  %3227 = vmatpush1.bf16.msra.mxu1 %v4130_v43  ;;  %v4193_v29 = vld [vmem:[%s6343_s6 + $0x1d0] ss:$8 sps:$4 sm:$0xff]  }
 0x222   :  { %3228 = vmatprep.subr.bf16.mxu1 %v4135_v6  ;;  %v4207_v6 = vld [vmem:[%s6343_s6 + $0x194] ss:$8 sps:$4 sm:$0xff]  }
 0x223   :  { %3268 = vmatpush1.bf16.msra.mxu0 %v4172_v38 }
 0x224   :  { %3269 = vmatprep.subr.bf16.mxu0 %v4180_v40 }
 0x225   :  { %3229 = vmatpush1.bf16.msra.mxu1 %v4133_v50 }
 0x226   :  { %2679 = vmatmul.mubr.bf16.gmra.mxu1 %v2171_v58  ;;  %3230 = vmatprep.subr.bf16.mxu1 %v4138_v24 }
 0x227   :  { %3270 = vmatpush1.bf16.msra.mxu0 %v4178_v49 }
 0x228   :  { %3271 = vmatprep.subr.bf16.mxu0 %v4186_v42 }
 0x229   :  { %3231 = vmatpush1.bf16.msra.mxu1 %v4136_v10 }
 0x22a   :  { %3232 = vmatprep.subr.bf16.mxu1 %v4141_v14 }
 0x22b   :  { %3272 = vmatpush1.bf16.msra.mxu0 %v4184_v51 }
 0x22c   :  { %3273 = vmatprep.subr.bf16.mxu0 %v4189_v36 }
 0x22d   :  { %3233 = vmatpush2.bf16.msra.mxu1 %v4139_v15  ;;  %v4205_v15 = vld [vmem:[%s6343_s6 + $0x190] ss:$8 sps:$4 sm:$0xff]  }
 0x22e   :  { %3234 = vmatprep.subr.bf16.mxu1 %v4147_v37  ;;  %v4208_v37 = vld [vmem:[%s6343_s6 + $0x180] ss:$8 sps:$4 sm:$0xff]  }
 0x22f   :  { %3274 = vmatpush2.bf16.msra.mxu0 %v4187_v8 }
 0x230   :  { %3275 = vmatprep.subr.bf16.mxu0 %v4192_v1 }
 0x231   :  { %3235 = vmatpush2.bf16.msra.mxu1 %v4145_v5 }
 0x232   :  { %3236 = vmatprep.subr.bf16.mxu1 %v4153_v16 }
 0x233   :  { %3276 = vmatpush2.bf16.msra.mxu0 %v4190_v11 }
 0x234   :  { %3277 = vmatprep.subr.bf16.mxu0 %v4195_v9 }
 0x235   :  { %3237 = vmatpush2.bf16.msra.mxu1 %v4151_v39 }
 0x236   :  { %3238 = vmatprep.subr.bf16.mxu1 %v4159_v44 }
 0x237   :  { %3278 = vmatpush2.bf16.msra.mxu0 %v4193_v29 }
 0x238   :  { %3279 = vmatprep.subr.bf16.mxu0 %v4198_v62 }
 0x239   :  { %3239 = vmatpush2.bf16.msra.mxu1 %v4157_v60 }
 0x23a   :  { %3240 = vmatprep.subr.bf16.mxu1 %v4165_v0 }
 0x23b   :  { %3280 = vmatpush2.bf16.msra.mxu0 %v4196_v48 }
 0x23c   :  { %3281 = vmatprep.subr.bf16.mxu0 %v4201_v17 }
 0x23d   :  { %3241 = vmatpush2.bf16.msra.mxu1 %v4163_v28 }
 0x23e   :  { %3242 = vmatprep.subr.bf16.mxu1 %v4171_v55 }
 0x23f   :  { %3282 = vmatpush2.bf16.msra.mxu0 %v4199_v32 }
 0x240   :  { %3283 = vmatprep.subr.bf16.mxu0 %v4204_v7 }
 0x241   :  { %3243 = vmatpush2.bf16.msra.mxu1 %v4169_v33 }
 0x242   :  { %3244 = vmatprep.subr.bf16.mxu1 %v4177_v35 }
 0x243   :  { %3284 = vmatpush2.bf16.msra.mxu0 %v4202_v52 }
 0x244   :  { %3285 = vmatprep.subr.bf16.mxu0 %v4207_v6 }
 0x245   :  { %3245 = vmatpush2.bf16.msra.mxu1 %v4175_v59 }
 0x246   :  { %3246 = vmatprep.subr.bf16.mxu1 %v4183_v3 }
 0x247   :  { %3286 = vmatpush2.bf16.msra.mxu0 %v4205_v15 }
 0x248   :  { %3287 = vmatprep.subr.bf16.mxu0 %v4210_v22 }
 0x249   :  { %3247 = vmatpush2.bf16.msra.mxu1 %v4181_v57 }
 0x24b   :  { %3288 = vmatpush2.bf16.msra.mxu0 %v4208_v37 }
 0x265   :  { %v3660_v56 = vpop.f32.mrf.mxu1 }
 0x267   :  { %v3661_v19 = vpop.f32.mrf.mxu1 }
 0x268   :  { %v6191_v45 = vadd.f32 %v3661_v19, %v3660_v56 }
 0x269   :  { %v3663_v41 = vpop.f32.mrf.mxu1 }
 0x26b   :  { %v3664_v61 = vpop.f32.mrf.mxu1 }
 0x26c   :  { %v6205_v13 = vadd.f32 %v3664_v61, %v3663_v41  ;;  %v6293_v61 = vld [vmem:[%s6344_s4] ss:$0 sm:$0xff] }
 0x26d   :  { %v2528_v42 = vadd.f32 %v6191_v45, %v6293_v61 }
 0x276   :  { %v3666_v34 = vpop.f32.mrf.mxu1 }
 0x278   :  { %v3667_v2 = vpop.f32.mrf.mxu1 }
 0x279   :  { %v6231_v58 = vadd.f32 %v3667_v2, %v3666_v34  ;;  %v2531_v34 = vadd.f32 %v6205_v13, %v6293_v61 }
 0x27a   :  { %v3669_v63 = vpop.f32.mrf.mxu1 }
 0x27b   :  { %v2536_v17 = vadd.f32 %v6231_v58, %v6293_v61 }
 0x27c   :  { %v3670_v30 = vpop.f32.mrf.mxu1 }
 0x27d   :  { %v6239_v53 = vadd.f32 %v3670_v30, %v3669_v63 }
 0x27e   :  { %v3672_v20 = vpop.f32.mrf.mxu1 }
 0x27f   :  { %v2539_v13 = vadd.f32 %v6239_v53, %v6293_v61 }
 0x280   :  { %v3673_v54 = vpop.f32.mrf.mxu1 }
 0x281   :  { %v6247_v23 = vadd.f32 %v3673_v54, %v3672_v20 }
 0x282   :  { %v3675_v43 = vpop.f32.mrf.mxu1 }
 0x283   :  { %v2544_v58 = vadd.f32 %v6247_v23, %v6293_v61 }
 0x284   :  { %v3676_v50 = vpop.f32.mrf.mxu1 }
 0x285   :  { %v6255_v10 = vadd.f32 %v3676_v50, %v3675_v43 }
 0x286   :  { %v3678_v24 = vpop.f32.mrf.mxu1 }
 0x287   :  { %v2547_v53 = vadd.f32 %v6255_v10, %v6293_v61 }
 0x288   :  { %v3679_v14 = vpop.f32.mrf.mxu1 }
 0x289   :  { %v6263_v18 = vadd.f32 %v3679_v14, %v3678_v24 }
 0x28a   :  { %v6265_v5 = vpop.f32.mrf.mxu1 }
 0x28b   :  { %v2552_v23 = vadd.f32 %v6263_v18, %v6293_v61 }
 0x28c   :  { %v6270_v27 = vpop.f32.mrf.mxu1 }
 0x28e   :  { %v3684_v21 = vpop.f32.mrf.mxu1 }
 0x290   :  { %v3685_v39 = vpop.f32.mrf.mxu1 }
 0x291   :  { %v6272_v16 = vadd.f32 %v3685_v39, %v3684_v21 }
 0x292   :  { %v3687_v46 = vpop.f32.mrf.mxu1 }
 0x294   :  { %v3688_v47 = vpop.f32.mrf.mxu1 }
 0x295   :  { %v6274_v60 = vadd.f32 %v3688_v47, %v3687_v46 }
 0x296   :  { %v3690_v44 = vpop.f32.mrf.mxu1 }
 0x298   :  { %v3691_v4 = vpop.f32.mrf.mxu1 }
 0x299   :  { %v6276_v12 = vadd.f32 %v3691_v4, %v3690_v44 }
 0x29a   :  { %v3693_v28 = vpop.f32.mrf.mxu1 }
 0x29b   :  { %v3862_v40 = vpop.f32.mrf.mxu0 }
 0x29c   :  { %v3694_v0 = vpop.f32.mrf.mxu1 }
 0x29d   :  { %v6278_v31 = vadd.f32 %v3694_v0, %v3693_v28  ;;  %v2721_v3 = vpop.f32.mrf.mxu0 }
 0x29e   :  { %v3696_v26 = vpop.f32.mrf.mxu1 }
 0x29f   :  { %v3863_v1 = vpop.f32.mrf.mxu0 }
 0x2a0   :  { %v3697_v33 = vpop.f32.mrf.mxu1 }
 0x2a1   :  { %v6280_v55 = vadd.f32 %v3697_v33, %v3696_v26  ;;  %v2724_v48 = vpop.f32.mrf.mxu0 }
 0x2a2   :  { %v3699_v38 = vpop.f32.mrf.mxu1 }
 0x2a4   :  { %v3700_v25 = vpop.f32.mrf.mxu1 }
 0x2a5   :  { %v6282_v56 = vadd.f32 %v3700_v25, %v3699_v38 }
 0x2a6   :  { %v3702_v19 = vpop.f32.mrf.mxu1 }
 0x2a8   :  { %v3703_v59 = vpop.f32.mrf.mxu1 }
 0x2a9   :  { %v6284_v35 = vadd.f32 %v3703_v59, %v3702_v19  ;;  %v3683_v19 = vadd.f32 %v6270_v27, %v6265_v5  ;;  %v2560_v5 = vadd.f32 %v6272_v16, %v6293_v61 }
 0x2aa   :  { %v6286_v49 = vpop.f32.mrf.mxu1 }
 0x2ac   :  { %v6288_v41 = vpop.f32.mrf.mxu1 }
 0x2ae   :  { %v3724_v57 = vpop.f32.mrf.mxu1 }
 0x2b0   :  { %v3725_v51 = vpop.f32.mrf.mxu1  ;;  %v3866_v7 = vpop.f32.mrf.mxu0 }
 0x2b1   :  { %v3726_v8 = vadd.f32 %v3725_v51, %v3724_v57 }
 0x2b2   :  { %v3727_v36 = vpop.f32.mrf.mxu1  ;;  %v2737_v15 = vpop.f32.mrf.mxu0 }
 0x2b3   :  { %v2625_v11 = vadd.f32 %v3726_v8, %v2528_v42  ;;  %v2555_v8 = vadd.f32 %v3683_v19, %v6293_v61 }
 0x2b4   :  { %v3728_v9 = vpop.f32.mrf.mxu1  ;;  %v3867_v46 = vpop.f32.mrf.mxu0 }
 0x2b5   :  { %v3729_v29 = vadd.f32 %v3728_v9, %v3727_v36  ;;  %v2722_v2 = vadd.f32 %v2721_v3, %v2625_v11 }
 0x2b6   :  { %v3730_v62 = vpop.f32.mrf.mxu1  ;;  %v2740_v38 = vpop.f32.mrf.mxu0 }
 0x2b7   :  { %v2628_v63 = vadd.f32 %v3729_v29, %v2531_v34  ;;  %4339 = vtanh.f32 %v2722_v2 }
 0x2b8   :  { %v3731_v30 = vpop.f32.mrf.mxu1 }
 0x2b9   :  { %v2725_v20 = vadd.f32 %v2724_v48, %v2628_v63  ;;  %v3732_v32 = vadd.f32 %v3731_v30, %v3730_v62 }
 0x2ba   :  { %v3733_v45 = vpop.f32.mrf.mxu1 }
 0x2bb   :  { %4341 = vtanh.f32 %v2725_v20  ;;  %v2633_v54 = vadd.f32 %v3732_v32, %v2536_v17 }
 0x2bc   :  { %v3734_v43 = vpop.f32.mrf.mxu1 }
 0x2bd   :  { %v3735_v52 = vadd.f32 %v3734_v43, %v3733_v45  ;;  %v2730_v50 = vadd.f32 %v3862_v40, %v2633_v54  ;;  %v2563_v45 = vadd.f32 %v6274_v60, %v6293_v61 }
 0x2be   :  { %v3736_v6 = vpop.f32.mrf.mxu1 }
 0x2bf   :  { %v2636_v24 = vadd.f32 %v3735_v52, %v2539_v13  ;;  %4343 = vtanh.f32 %v2730_v50 }
 0x2c0   :  { %v3737_v14 = vpop.f32.mrf.mxu1 }
 0x2c1   :  { %v2733_v22 = vadd.f32 %v3863_v1, %v2636_v24  ;;  %v3738_v37 = vadd.f32 %v3737_v14, %v3736_v6  ;;  %v2568_v24 = vadd.f32 %v6276_v12, %v6293_v61 }
 0x2c2   :  { %v3739_v21 = vpop.f32.mrf.mxu1 }
 0x2c3   :  { %4345 = vtanh.f32 %v2733_v22  ;;  %v2641_v39 = vadd.f32 %v3738_v37, %v2544_v58 }
 0x2c4   :  { %v3740_v47 = vpop.f32.mrf.mxu1  ;;  %v4340_v0 = vpop.eup %4339 }
 0x2c5   :  { %v2738_v44 = vadd.f32 %v2737_v15, %v2641_v39  ;;  %v3741_v4 = vadd.f32 %v3740_v47, %v3739_v21  ;;  %v3870_v51 = vpop.f32.mrf.mxu0 }
 0x2c6   :  { %v3742_v28 = vpop.f32.mrf.mxu1 }
 0x2c7   :  { %4347 = vtanh.f32 %v2738_v44  ;;  %v2644_v26 = vadd.f32 %v3741_v4, %v2547_v53  ;;  %v2753_v29 = vpop.f32.mrf.mxu0 }
 0x2c8   :  { %v4342_v33 = vpop.eup %4341  ;;  %v3743_v25 = vpop.f32.mrf.mxu1 }
 0x2c9   :  { %v2741_v59 = vadd.f32 %v2740_v38, %v2644_v26  ;;  %v3744_v40 = vadd.f32 %v3743_v25, %v3742_v28  ;;  %v2800_v57 = vadd.f32 %v4342_v33, %v4340_v0  ;;  %v3871_v20 = vpop.f32.mrf.mxu0  ;;  %v2576_v33 = vadd.f32 %v6280_v55, %v6293_v61 }
 0x2ca   :  { %v3745_v3 = vpop.f32.mrf.mxu1 }
 0x2cb   :  { %4349 = vtanh.f32 %v2741_v59  ;;  %v2649_v10 = vadd.f32 %v3744_v40, %v2552_v23  ;;  %v2756_v6 = vpop.f32.mrf.mxu0 }
 0x2cc   :  { %v3746_v42 = vpop.f32.mrf.mxu1  ;;  %v4344_v9 = vpop.eup %4343 }
 0x2cd   :  { %v2746_v36 = vadd.f32 %v3866_v7, %v2649_v10  ;;  %v3747_v11 = vadd.f32 %v3746_v42, %v3745_v3  ;;  %v2579_v10 = vadd.f32 %v6282_v56, %v6293_v61 }
 0x2ce   :  { %v3748_v1 = vpop.f32.mrf.mxu1 }
 0x2cf   :  { %4351 = vtanh.f32 %v2746_v36  ;;  %v2652_v18 = vadd.f32 %v3747_v11, %v2555_v8 }
 0x2d0   :  { %v4346_v34 = vpop.eup %4345  ;;  %v3749_v2 = vpop.f32.mrf.mxu1 }
 0x2d1   :  { %v2749_v27 = vadd.f32 %v3867_v46, %v2652_v18  ;;  %v3750_v62 = vadd.f32 %v3749_v2, %v3748_v1  ;;  %v2804_v63 = vadd.f32 %v4346_v34, %v4344_v9  ;;  %v2571_v46 = vadd.f32 %v6278_v31, %v6293_v61 }
 0x2d2   :  { %v3751_v48 = vpop.f32.mrf.mxu1  ;;  %v2584_v18 = vadd.f32 %v6284_v35, %v6293_v61  ;;  %v3707_v2 = vadd.f32 %v6288_v41, %v6286_v49 }
 0x2d3   :  { %4353 = vtanh.f32 %v2749_v27  ;;  %v2657_v30 = vadd.f32 %v3750_v62, %v2560_v5 }
 0x2d4   :  { %v4348_v17 = vpop.eup %4347  ;;  %v3752_v32 = vpop.f32.mrf.mxu1 }
 0x2d5   :  { %v3753_v54 = vadd.f32 %v3752_v32, %v3751_v48  ;;  %v2801_v7 = vadd.f32 %v4348_v17, %v2800_v57  ;;  %v2754_v43 = vadd.f32 %v2753_v29, %v2657_v30  ;;  %v2587_v30 = vadd.f32 %v3707_v2, %v6293_v61 }
 0x2d6   :  { %v3754_v13 = vpop.f32.mrf.mxu1 }
 0x2d7   :  { %v2660_v52 = vadd.f32 %v3753_v54, %v2563_v45  ;;  %4355 = vtanh.f32 %v2754_v43 }
 0x2d8   :  { %v4350_v50 = vpop.eup %4349  ;;  %v3755_v16 = vpop.f32.mrf.mxu1 }
 0x2d9   :  { %v2757_v15 = vadd.f32 %v2756_v6, %v2660_v52  ;;  %v3756_v14 = vadd.f32 %v3755_v16, %v3754_v13  ;;  %v2802_v58 = vadd.f32 %v4350_v50, %v2801_v7 }
 0x2da   :  { %v3757_v22 = vpop.f32.mrf.mxu1 }
 0x2db   :  { %4357 = vtanh.f32 %v2757_v15  ;;  %v2665_v37 = vadd.f32 %v3756_v14, %v2568_v24  ;;  %v2803_v59 = vmul.f32 0.25, %v2802_v58 }
 0x2dc   :  { %v4352_v21 = vpop.eup %4351  ;;  %v3758_v60 = vpop.f32.mrf.mxu1 }
 0x2dd   :  { %v3874_v39 = vpop.f32.mrf.mxu0  ;;  %v3759_v47 = vadd.f32 %v3758_v60, %v3757_v22  ;;  %v2805_v53 = vadd.f32 %v4352_v21, %v2804_v63  ;;  %v2762_v44 = vadd.f32 %v3870_v51, %v2665_v37  ;;  %v2816_v11 = vpack.c.bf16 %v2803_v59, %v2803_v59 }
 0x2de   :  { %v3760_v4 = vpop.f32.mrf.mxu1  ;;  %v2886_v60 = vlaneseq }
 0x2df   :  { %v2668_v28 = vadd.f32 %v3759_v47, %v2571_v46  ;;  %v2769_v12 = vpop.f32.mrf.mxu0  ;;  %4359 = vtanh.f32 %v2762_v44  ;;  %v2884_v47 = vld [vmem:[%s6345_s7] sm:$0x3] }
 0x2e0   :  { %v4354_v0 = vpop.eup %4353  ;;  %v3761_v26 = vpop.f32.mrf.mxu1 }
 0x2e1   :  { %v2765_v23 = vadd.f32 %v3871_v20, %v2668_v28  ;;  %v3762_v38 = vadd.f32 %v3761_v26, %v3760_v4  ;;  %v2806_v25 = vadd.f32 %v4354_v0, %v2805_v53  ;;  %v3875_v57 = vpop.f32.mrf.mxu0 }
 0x2e2   :  { %v3763_v19 = vpop.f32.mrf.mxu1 }
 0x2e3   :  { %4361 = vtanh.f32 %v2765_v23  ;;  %v2673_v40 = vadd.f32 %v3762_v38, %v2576_v33  ;;  %v2807_v31 = vmul.f32 0.25, %v2806_v25  ;;  %v2772_v34 = vpop.f32.mrf.mxu0 }
 0x2e4   :  { %v3764_v3 = vpop.f32.mrf.mxu1  ;;  %v4356_v55 = vpop.eup %4355 }
 0x2e5   :  { %v2770_v51 = vadd.f32 %v2769_v12, %v2673_v40  ;;  %v3765_v42 = vadd.f32 %v3764_v3, %v3763_v19  ;;  %v2817_v8 = vpack.c.bf16 %v2807_v31, %v2807_v31 }
 0x2e6   :  { %v3766_v36 = vpop.f32.mrf.mxu1 }
 0x2e7   :  { %4363 = vtanh.f32 %v2770_v51  ;;  %v2676_v1 = vadd.f32 %v3765_v42, %v2579_v10  ;;  %3248 = vmatprep.mubr.bf16.mxu1 %v2817_v8 }
 0x2e8   :  { %v4358_v9 = vpop.eup %4357  ;;  %v3767_v29 = vpop.f32.mrf.mxu1  ;;  %3249 = vmatmul.mubr.bf16.vlgmr.msra.gmra.mxu1 %v2816_v11 }
 0x2e9   :  { %v2773_v56 = vadd.f32 %v2772_v34, %v2676_v1  ;;  %v3768_v5 = vadd.f32 %v3767_v29, %v3766_v36  ;;  %v2808_v27 = vadd.f32 %v4358_v9, %v4356_v55 }
 0x2ea   :  { %v3769_v62 = vpop.f32.mrf.mxu1 }
 0x2eb   :  { %4365 = vtanh.f32 %v2773_v56  ;;  %v2681_v63 = vadd.f32 %v3768_v5, %v2584_v18 }
 0x2ec   :  { %v3770_v48 = vpop.f32.mrf.mxu1  ;;  %v4360_v32 = vpop.eup %4359 }
 0x2ed   :  { %v2778_v17 = vadd.f32 %v3874_v39, %v2681_v63  ;;  %v3771_v20 = vadd.f32 %v3770_v48, %v3769_v62  ;;  %v2887_v39 = vshrl.u32 %v2886_v60, 7 }
 0x2ef   :  { %4367 = vtanh.f32 %v2778_v17  ;;  %v2684_v35 = vadd.f32 %v3771_v20, %v2587_v30  ;;  %v2888_v46 = vsub.s32 0, %v2887_v39  ;;  %v2892_v53 = vsub.s32 1, %v2887_v39 }
 0x2f0   :  { %v4362_v45 = vpop.eup %4361 }
 0x2f1   :  { %v2781_v54 = vadd.f32 %v3875_v57, %v2684_v35  ;;  %v2812_v7 = vadd.f32 %v4362_v45, %v4360_v32  ;;  %v2889_v44 = vrot.slane %v2884_v47, %v2888_v46  ;;  %v2893_v4 = vrot.slane %v2884_v47, %v2892_v53 }
 0x2f3   :  { %4369 = vtanh.f32 %v2781_v54 }
 0x2f4   :  { %v4364_v43 = vpop.eup %4363 }
 0x2f5   :  { %v2809_v49 = vadd.f32 %v4364_v43, %v2808_v27 }
 0x2f8   :  { %v4366_v41 = vpop.eup %4365 }
 0x2f9   :  { %v2810_v13 = vadd.f32 %v4366_v41, %v2809_v49 }
 0x2fb   :  { %v2811_v24 = vmul.f32 0.25, %v2810_v13 }
 0x2fc   :  { %v4368_v52 = vpop.eup %4367 }
 0x2fd   :  { %v2813_v50 = vadd.f32 %v4368_v52, %v2812_v7  ;;  %v2818_v14 = vpack.c.bf16 %v2811_v24, %v2811_v24 }
 0x300   :  { %v4370_v6 = vpop.eup %4369 }
 0x301   :  { %v2814_v16 = vadd.f32 %v4370_v6, %v2813_v50 }
 0x303   :  { %v2815_v15 = vmul.f32 0.25, %v2814_v16 }
 0x305   :  { %v2819_v61 = vpack.c.bf16 %v2815_v15, %v2815_v15 }
 0x307   :  { %3289 = vmatprep.mubr.bf16.mxu0 %v2819_v61 }
 0x308   :  { %3290 = vmatmul.mubr.bf16.vlgmr.msra.gmra.mxu0 %v2818_v14 }
 0x3a8   :  { %v3250_v58 = vpop.f32.mrf.mxu1 }
 0x3a9   :  { %v3251_v28 = vadd.f32 %v3250_v58, %v2889_v44 }
 0x3aa   :  { %v3252_v22 = vpop.f32.mrf.mxu1 }
 0x3ab   :  { %v3253_v12 = vadd.f32 %v3252_v22, %v2893_v4 }
 0x3ac   :  { %v3254_v37 = vpop.f32.mrf.mxu1 }
 0x3ae   :  { %v3255_v21 = vpop.f32.mrf.mxu1 }
 0x3c8   :  { %v3291_v0 = vpop.f32.mrf.mxu0 }
 0x3c9   :  { %v3292_v26 = vadd.f32 %v3291_v0, %v3251_v28 }
 0x3ca   :  { %v3293_v33 = vpop.f32.mrf.mxu0 }
 0x3cb   :  { %v3298_v23 = vmax.f32 %v3292_v26, 0.0  ;;  %v3294_v38 = vadd.f32 %v3293_v33, %v3253_v12 }
 0x3cc   :  { %v3295_v25 = vpop.f32.mrf.mxu0 }
 0x3cd   :  { %3300 = vst [vmem:[%s6346_s8] sm:$0xff] %v3298_v23  ;;  %v3299_v19 = vmax.f32 %v3294_v38, 0.0 }
 0x3ce   :  { %v3296_v59 = vpop.f32.mrf.mxu0 }
 0x3cf   :  { %3301 = vst [vmem:[%s6346_s8 + $0x8] sm:$0xff] %v3299_v19 }

</bundles_post_ra>
